<compile_context>
chip_gen: v5e
topology: v5e:2x2
jax: 0.10.0
libtpu: 0.0.40
codegen_flags: <defaults>
</compile_context>

<pallas_src>
import jax
import jax.numpy as jnp
from jax.experimental import pallas as pl
from jax.experimental.pallas import tpu as pltpu


# ---------------------------------------------------------------------------
# Kernel
# ---------------------------------------------------------------------------
def _tree_lstm_level_kernel(x_ref, hs_ref, cs_ref,
                            w4_ref, u4t_ref, uf_ref, b_ref,
                            h_ref, c_ref):
    """One block of `block_b` tree nodes (same tree depth), fully fused.

    x_ref   : (Bb, X)       node embeddings (any float dtype)
    hs_ref  : (Bb, N*H)     child hidden states, children packed along lanes
    cs_ref  : (Bb, N*H)     child memory cells,  children packed along lanes
    w4_ref  : (X, 4H)    md packed x-path weights  [Wi | Wo | Wu | Wf]^T
    u4t_ref : (N*H, 4H)  md packed h-path weights  tile([Ui | Uo | Uu | 0]^T, N)
                            -> the child-sum is folded into this single dot
    uf_ref  : (H, H)     md per-child forget path  Uf^T
    b_ref   : (1, 4H)   f32 packed biases          [bi | bo | bu | bf]
    h_ref   : (Bb, H)   f32 output hidden state
    c_ref   : (Bb, H)   f32 output memory cell
    """
    h_size = uf_ref.shape[0]
    n_children = hs_ref.shape[1] // h_size
    md = w4_ref.dtype                       # matmul dtype (bf16 or f32)

    # Fused lane-dense gate pre-activations [i | o | u | f_x]: two MXU dots,
    # 4H = 128 output lanes, f32 accumulate.  The second dot also performs the
    # child-sum (U is tiled along K), so hs never needs an explicit reduction.
    pre = (
        jnp.dot(x_ref[...].astype(md), w4_ref[...],
                preferred_element_type=jnp.float32)
        + jnp.dot(hs_ref[...].astype(md), u4t_ref[...],
                  preferred_element_type=jnp.float32)
        + b_ref[...]
    )                                       # (Bb, 4H) f32

    # Gates (all elementwise math in f32; i|o sigmoided in one contiguous pass).
    io = jax.nn.sigmoid(pre[:, 0:2 * h_size])
    i = io[:, 0:h_size]
    o = io[:, h_size:2 * h_size]
    u = jnp.tanh(pre[:, 2 * h_size:3 * h_size])
    pre_f = pre[:, 3 * h_size:4 * h_size]   # W_f x + b_f

    # Child-by-child forget-gate accumulation: only one (Bb, H) f is live at a
    # time (bounded vreg/spill pressure even for large node blocks); the cs
    # contribution is accumulated in f32 after an in-kernel upcast.
    uf = uf_ref[...]
    c = i * u                               # (Bb, H) f32
    for j in range(n_children):
        lo, hi = j * h_size, (j + 1) * h_size
        f_j = jax.nn.sigmoid(
            pre_f + jnp.dot(hs_ref[:, lo:hi].astype(md), uf,
                            preferred_element_type=jnp.float32))
        c = c + f_j * cs_ref[:, lo:hi].astype(jnp.float32)

    h_ref[...] = (o * jnp.tanh(c)).astype(h_ref.dtype)
    c_ref[...] = c.astype(c_ref.dtype)


# ---------------------------------------------------------------------------
# Parameter packing (done ONCE, outside the per-level / per-node calls)
# ---------------------------------------------------------------------------
def pack_tree_lstm_params(w_iou, u_iou, b_iou, w_f, u_f, b_f, *, n_children,
                          matmul_dtype=jnp.bfloat16):
    """Pre-transpose / pre-concatenate / pre-tile the module parameters."""
    h_size, _x_size = w_f.shape
    wi, wo, wu = (w_iou[k].T for k in range(3))            # (X, H)
    ui, uo, uu = (u_iou[k].T for k in range(3))            # (H, H)

    w4 = jnp.concatenate([wi, wo, wu, w_f.T], axis=1).astype(matmul_dtype)  # (X, 4H)
    u4 = jnp.concatenate(
        [ui, uo, uu, jnp.zeros((h_size, h_size), jnp.float32)], axis=1)     # (H, 4H)
    # Tile along K so hs2 (B, N*H) @ u4t == (sum_j h_j) @ [Ui|Uo|Uu|0].
    u4t = jnp.tile(u4, (n_children, 1)).astype(matmul_dtype)                # (N*H, 4H)
    uf = u_f.T.astype(matmul_dtype)                                         # (H, H)

    bf_vec = b_f[:, 0] if b_f.ndim == 2 else b_f
    bias = jnp.concatenate([b_iou[0], b_iou[1], b_iou[2], bf_vec])
    bias = bias.reshape(1, 4 * h_size).astype(jnp.float32)                  # (1, 4H)
    return w4, u4t, uf, bias


# ---------------------------------------------------------------------------
# Wrappers
# ---------------------------------------------------------------------------
def _round_up(v, m):
    return (v + m - 1) // m * m


def _pick_block_b(n_nodes, bytes_per_node, *,
                  vmem_budget_bytes=16 * 1024 * 1024, max_block=1024):
    """Largest node block (multiple of 8) whose double-buffered streaming
    blocks fit the budget, then split so the grid always has >=2 steps when a
    whole level would otherwise land in a single block (v7x megacore)."""
    cap = vmem_budget_bytes // (2 * bytes_per_node)        # 2x: double buffering
    blk = min(max_block, max(8, (cap // 8) * 8))
    if n_nodes > 8 and blk >= n_nodes:
        blk = max(8, _round_up((n_nodes + 1) // 2, 8))
    return int(blk)


def tree_lstm_level(x, hs, cs, packed_params, *, block_b=None):
    """Apply the Child-Sum Tree-LSTM cell to a whole level of B nodes at once.

    x : (B, x_size); hs, cs : (B, n_children, h_size).  Pad absent children
    with zeros (a zero child contributes nothing).  hs/cs are streamed in the
    dtype they are given in (bf16 recommended for the HBM-bound generations).
    Returns (h, c), each (B, h_size) float32.
    """
    w4, u4t, uf, bias = packed_params
    n_nodes, x_size = x.shape
    _, n_children, h_size = hs.shape

    # Contiguous reshapes only (no HBM copies, no dtype casts in the wrapper).
    hs2 = hs.reshape(n_nodes, n_children * h_size)
    cs2 = cs.reshape(n_nodes, n_children * h_size)

    if block_b is None:
        bytes_per_node = (x.dtype.itemsize * x_size
                          + (hs2.dtype.itemsize + cs2.dtype.itemsize)
                          * n_children * h_size
                          + 2 * 4 * h_size)                # two f32 outputs
        block_b = _pick_block_b(n_nodes, bytes_per_node)
    block_b = max(8, (block_b // 8) * 8)                   # sublane multiple

    # No padding: the trailing partial block is masked by Pallas (OOB output
    # rows are dropped; garbage input rows only affect dropped output rows).
    grid = (pl.cdiv(n_nodes, block_b),)

    h, c = pl.pallas_call(
        _tree_lstm_level_kernel,
        out_shape=(jax.ShapeDtypeStruct((n_nodes, h_size), jnp.float32),
                   jax.ShapeDtypeStruct((n_nodes, h_size), jnp.float32)),
        grid=grid,
        in_specs=[
            # Streaming per-node inputs.
            pl.BlockSpec((block_b, x_size), lambda b: (b, 0)),
            pl.BlockSpec((block_b, n_children * h_size), lambda b: (b, 0)),
            pl.BlockSpec((block_b, n_children * h_size), lambda b: (b, 0)),
            # Weights / bias: constant block index -> fetched once, VMEM-resident.
            pl.BlockSpec((x_size, 4 * h_size), lambda b: (0, 0)),
            pl.BlockSpec((n_children * h_size, 4 * h_size), lambda b: (0, 0)),
            pl.BlockSpec((h_size, h_size), lambda b: (0, 0)),
            pl.BlockSpec((1, 4 * h_size), lambda b: (0, 0)),
        ],
        out_specs=(pl.BlockSpec((block_b, h_size), lambda b: (b, 0)),
                   pl.BlockSpec((block_b, h_size), lambda b: (b, 0))),
        compiler_params=pltpu.CompilerParams(
            # Node blocks are independent: shard across TensorCores on v7x.
            dimension_semantics=("parallel",),
            # Raise v5e's 16 MiB default scoped limit; safe on v6e/v7x too.
            vmem_limit_bytes=32 * 1024 * 1024,
        ),
    )(x, hs2, cs2, w4, u4t, uf, bias)
    return h, c


def tree_lstm_cell(x, hs, cs, w_iou, u_iou, b_iou, w_f, u_f, b_f,
                   *, matmul_dtype=jnp.float32):
    """Single-node forward matching TreeLSTMCell.forward (convenience path)."""
    n_children = hs.shape[0]
    packed = pack_tree_lstm_params(w_iou, u_iou, b_iou, w_f, u_f, b_f,
                                   n_children=n_children,
                                   matmul_dtype=matmul_dtype)
    h, c = tree_lstm_level(x[None, :], hs[None], cs[None], packed, block_b=8)
    return h[0], c[0]


# ---------------------------------------------------------------------------
# Reference + test
# ---------------------------------------------------------------------------
def _xavier_uniform(key, shape):
    if len(shape) == 3:
        fan_in = shape[1] * shape[2]
        fan_out = shape[0] * shape[2]
    else:
        fan_out, fan_in = shape[0], shape[1]
    bound = (6.0 / (fan_in + fan_out)) ** 0.5
    return jax.random.uniform(key, shape, jnp.float32, -bound, bound)


def _ref_forward(x, hs, cs, w_iou, u_iou, b_iou, w_f, u_f, b_f):
    """Pure-JAX transliteration of the PyTorch forward (single node)."""
    h_sum = hs.sum(axis=0)
    iou = (jnp.einsum("khx,x->kh", w_iou, x)
           + jnp.einsum("khg,g->kh", u_iou, h_sum)
           + b_iou)
    i, o, u = iou[0], iou[1], iou[2]
    fs = (w_f @ x)[:, None] + u_f @ hs.T + b_f
    i, o, fs = jax.nn.sigmoid(i), jax.nn.sigmoid(o), jax.nn.sigmoid(fs)
    u = jnp.tanh(u)
    c = i * u + jnp.sum(fs * cs.T, axis=1)
    h = o * jnp.tanh(c)
    return h, c


if __name__ == "__main__":
    x_size, h_size, n_children = 16, 32, 8
    n_nodes = 100   # deliberately NOT a block multiple -> exercises the masked tail

    key = jax.random.PRNGKey(0)
    k_x, k_hs, k_cs, k_wiou, k_uiou, k_wf, k_uf = jax.random.split(key, 7)

    # Parameters (same shapes / init convention as the module).
    w_iou = _xavier_uniform(k_wiou, (3, h_size, x_size))
    u_iou = _xavier_uniform(k_uiou, (3, h_size, h_size))
    b_iou = jnp.zeros((3, h_size), jnp.float32)
    w_f = _xavier_uniform(k_wf, (h_size, x_size))
    u_f = _xavier_uniform(k_uf, (h_size, h_size))
    b_f = jnp.zeros((h_size, 1), jnp.float32)
    params = (w_iou, u_iou, b_iou, w_f, u_f, b_f)

    # Inputs for one tree level.
    xb = jax.random.normal(k_x, (n_nodes, x_size), jnp.float32)
    hsb = jax.random.normal(k_hs, (n_nodes, n_children, h_size), jnp.float32)
    csb = jax.random.normal(k_cs, (n_nodes, n_children, h_size), jnp.float32)

    ref_h, ref_c = jax.vmap(
        lambda a, b, c: _ref_forward(a, b, c, *params))(xb, hsb, csb)

    # 1) f32 weights + f32 streaming, explicit block (grid of 2, masked tail).
    packed_f32 = pack_tree_lstm_params(*params, n_children=n_children,
                                       matmul_dtype=jnp.float32)
    h32, c32 = tree_lstm_level(xb, hsb, csb, packed_f32, block_b=64)
    jax.block_until_ready((h32, c32))
    assert h32.shape == (n_nodes, h_size) and c32.shape == (n_nodes, h_size)
    assert jnp.allclose(h32, ref_h, rtol=1e-3, atol=1e-3)
    assert jnp.allclose(c32, ref_c, rtol=1e-3, atol=1e-3)

    # 2) bf16 weights + bf16 hs/cs streaming (the recommended HBM-bound path),
    #    auto block selection (splits the level into >=2 grid steps).
    packed_bf16 = pack_tree_lstm_params(*params, n_children=n_children,
                                        matmul_dtype=jnp.bfloat16)
    hs_bf = hsb.astype(jnp.bfloat16)
    cs_bf = csb.astype(jnp.bfloat16)
    hbf, cbf = tree_lstm_level(xb, hs_bf, cs_bf, packed_bf16)
    jax.block_until_ready((hbf, cbf))
    assert jnp.allclose(hbf, ref_h, rtol=1e-1, atol=1e-1)  # reduced-precision path
    assert jnp.allclose(cbf, ref_c, rtol=1e-1, atol=1e-1)

    # 3) Single-node path (exact signature of TreeLSTMCell.forward).
    h1, c1 = tree_lstm_cell(xb[0], hsb[0], csb[0], *params)
    jax.block_until_ready((h1, c1))
    assert h1.shape == (h_size,) and c1.shape == (h_size,)
    assert jnp.allclose(h1, ref_h[0], rtol=1e-3, atol=1e-3)
    assert jnp.allclose(c1, ref_c[0], rtol=1e-3, atol=1e-3)

    print("KERNEL_OK")
</pallas_src>

<mosaic_0001>
module attributes {stable_mosaic.version = 11 : i64} {
  func.func @_tree_lstm_level_kernel(%arg0: i32, %arg1: memref<64x16xf32, #tpu.memory_space<vmem>>, %arg2: memref<64x256xf32, #tpu.memory_space<vmem>>, %arg3: memref<64x256xf32, #tpu.memory_space<vmem>>, %arg4: memref<16x128xf32, #tpu.memory_space<vmem>>, %arg5: memref<256x128xf32, #tpu.memory_space<vmem>>, %arg6: memref<32x32xf32, #tpu.memory_space<vmem>>, %arg7: memref<1x128xf32, #tpu.memory_space<vmem>>, %arg8: memref<64x32xf32, #tpu.memory_space<vmem>>, %arg9: memref<64x32xf32, #tpu.memory_space<vmem>>) attributes {dimension_semantics = [#tpu.dimension_semantics<parallel>], iteration_bounds = array<i64: 2>, scalar_prefetch = 0 : i64, scratch_operands = 0 : i64, tpu.core_type = #tpu.core_type<tc>, window_params = [{transform_indices = @transform_0, window_bounds = array<i64: 64, 16>}, {transform_indices = @transform_1, window_bounds = array<i64: 64, 256>}, {transform_indices = @transform_2, window_bounds = array<i64: 64, 256>}, {pipeline_mode = #tpu.pipeline_mode<synchronous>, transform_indices = @transform_3, window_bounds = array<i64: 16, 128>}, {pipeline_mode = #tpu.pipeline_mode<synchronous>, transform_indices = @transform_4, window_bounds = array<i64: 256, 128>}, {pipeline_mode = #tpu.pipeline_mode<synchronous>, transform_indices = @transform_5, window_bounds = array<i64: 32, 32>}, {pipeline_mode = #tpu.pipeline_mode<synchronous>, transform_indices = @transform_6, window_bounds = array<i64: 1, 128>}, {transform_indices = @transform_7, window_bounds = array<i64: 64, 32>}, {transform_indices = @transform_8, window_bounds = array<i64: 64, 32>}]} {
    %c0 = arith.constant 0 : index
    %c0_0 = arith.constant 0 : index
    %0 = vector.load %arg1[%c0, %c0_0] : memref<64x16xf32, #tpu.memory_space<vmem>>, vector<64x16xf32>
    %c0_1 = arith.constant 0 : index
    %c0_2 = arith.constant 0 : index
    %1 = vector.load %arg4[%c0_1, %c0_2] : memref<16x128xf32, #tpu.memory_space<vmem>>, vector<16x128xf32>
    %cst = arith.constant dense<0.000000e+00> : vector<64x128xf32>
    %2 = tpu.matmul %0, %1, %cst {dimension_numbers = #tpu.dot_dimension_numbers<[1], [0], [0], [1], [0, 0, 1, 1], [], []>} : vector<64x16xf32>, vector<16x128xf32>, vector<64x128xf32> -> vector<64x128xf32>
    %c0_3 = arith.constant 0 : index
    %c0_4 = arith.constant 0 : index
    %3 = vector.load %arg2[%c0_3, %c0_4] : memref<64x256xf32, #tpu.memory_space<vmem>>, vector<64x256xf32>
    %c0_5 = arith.constant 0 : index
    %c0_6 = arith.constant 0 : index
    %4 = vector.load %arg5[%c0_5, %c0_6] : memref<256x128xf32, #tpu.memory_space<vmem>>, vector<256x128xf32>
    %cst_7 = arith.constant dense<0.000000e+00> : vector<64x128xf32>
    %5 = tpu.matmul %3, %4, %cst_7 {dimension_numbers = #tpu.dot_dimension_numbers<[1], [0], [0], [1], [0, 0, 1, 1], [], []>} : vector<64x256xf32>, vector<256x128xf32>, vector<64x128xf32> -> vector<64x128xf32>
    %6 = arith.addf %2, %5 : vector<64x128xf32>
    %c0_8 = arith.constant 0 : index
    %c0_9 = arith.constant 0 : index
    %7 = vector.load %arg7[%c0_8, %c0_9] : memref<1x128xf32, #tpu.memory_space<vmem>>, vector<1x128xf32>
    %8 = vector.broadcast %7 : vector<1x128xf32> to vector<64x128xf32>
    %9 = arith.addf %6, %8 : vector<64x128xf32>
    %10 = vector.extract_strided_slice %9 {offsets = [0, 0], sizes = [64, 64], strides = [1, 1]} : vector<64x128xf32> to vector<64x64xf32>
    %11 = arith.negf %10 : vector<64x64xf32>
    %12 = math.exp %11 : vector<64x64xf32>
    %cst_10 = arith.constant 1.000000e+00 : f32
    %13 = vector.broadcast %cst_10 : f32 to vector<64x64xf32>
    %14 = arith.addf %13, %12 : vector<64x64xf32>
    %15 = arith.divf %13, %14 : vector<64x64xf32>
    %16 = vector.extract_strided_slice %15 {offsets = [0, 0], sizes = [64, 32], strides = [1, 1]} : vector<64x64xf32> to vector<64x32xf32>
    %17 = vector.extract_strided_slice %15 {offsets = [0, 32], sizes = [64, 32], strides = [1, 1]} : vector<64x64xf32> to vector<64x32xf32>
    %18 = vector.extract_strided_slice %9 {offsets = [0, 64], sizes = [64, 32], strides = [1, 1]} : vector<64x128xf32> to vector<64x32xf32>
    %19 = math.tanh %18 : vector<64x32xf32>
    %20 = vector.extract_strided_slice %9 {offsets = [0, 96], sizes = [64, 32], strides = [1, 1]} : vector<64x128xf32> to vector<64x32xf32>
    %c0_11 = arith.constant 0 : index
    %c0_12 = arith.constant 0 : index
    %21 = vector.load %arg6[%c0_11, %c0_12] : memref<32x32xf32, #tpu.memory_space<vmem>>, vector<32x32xf32>
    %22 = arith.mulf %16, %19 : vector<64x32xf32>
    %c0_13 = arith.constant 0 : index
    %c0_14 = arith.constant 0 : index
    %23 = vector.load %arg2[%c0_13, %c0_14] : memref<64x256xf32, #tpu.memory_space<vmem>>, vector<64x32xf32>
    %cst_15 = arith.constant dense<0.000000e+00> : vector<64x32xf32>
    %24 = tpu.matmul %23, %21, %cst_15 {dimension_numbers = #tpu.dot_dimension_numbers<[1], [0], [0], [1], [0, 0, 1, 1], [], []>} : vector<64x32xf32>, vector<32x32xf32>, vector<64x32xf32> -> vector<64x32xf32>
    %25 = arith.addf %20, %24 : vector<64x32xf32>
    %26 = arith.negf %25 : vector<64x32xf32>
    %27 = math.exp %26 : vector<64x32xf32>
    %cst_16 = arith.constant 1.000000e+00 : f32
    %28 = vector.broadcast %cst_16 : f32 to vector<64x32xf32>
    %29 = arith.addf %28, %27 : vector<64x32xf32>
    %30 = arith.divf %28, %29 : vector<64x32xf32>
    %c0_17 = arith.constant 0 : index
    %c0_18 = arith.constant 0 : index
    %31 = vector.load %arg3[%c0_17, %c0_18] : memref<64x256xf32, #tpu.memory_space<vmem>>, vector<64x32xf32>
    %32 = arith.mulf %30, %31 : vector<64x32xf32>
    %33 = arith.addf %22, %32 : vector<64x32xf32>
    %c0_19 = arith.constant 0 : index
    %c32 = arith.constant 32 : index
    %34 = vector.load %arg2[%c0_19, %c32] : memref<64x256xf32, #tpu.memory_space<vmem>>, vector<64x32xf32>
    %cst_20 = arith.constant dense<0.000000e+00> : vector<64x32xf32>
    %35 = tpu.matmul %34, %21, %cst_20 {dimension_numbers = #tpu.dot_dimension_numbers<[1], [0], [0], [1], [0, 0, 1, 1], [], []>} : vector<64x32xf32>, vector<32x32xf32>, vector<64x32xf32> -> vector<64x32xf32>
    %36 = arith.addf %20, %35 : vector<64x32xf32>
    %37 = arith.negf %36 : vector<64x32xf32>
    %38 = math.exp %37 : vector<64x32xf32>
    %cst_21 = arith.constant 1.000000e+00 : f32
    %39 = vector.broadcast %cst_21 : f32 to vector<64x32xf32>
    %40 = arith.addf %39, %38 : vector<64x32xf32>
    %41 = arith.divf %39, %40 : vector<64x32xf32>
    %c0_22 = arith.constant 0 : index
    %c32_23 = arith.constant 32 : index
    %42 = vector.load %arg3[%c0_22, %c32_23] : memref<64x256xf32, #tpu.memory_space<vmem>>, vector<64x32xf32>
    %43 = arith.mulf %41, %42 : vector<64x32xf32>
    %44 = arith.addf %33, %43 : vector<64x32xf32>
    %c0_24 = arith.constant 0 : index
    %c64 = arith.constant 64 : index
    %45 = vector.load %arg2[%c0_24, %c64] : memref<64x256xf32, #tpu.memory_space<vmem>>, vector<64x32xf32>
    %cst_25 = arith.constant dense<0.000000e+00> : vector<64x32xf32>
    %46 = tpu.matmul %45, %21, %cst_25 {dimension_numbers = #tpu.dot_dimension_numbers<[1], [0], [0], [1], [0, 0, 1, 1], [], []>} : vector<64x32xf32>, vector<32x32xf32>, vector<64x32xf32> -> vector<64x32xf32>
    %47 = arith.addf %20, %46 : vector<64x32xf32>
    %48 = arith.negf %47 : vector<64x32xf32>
    %49 = math.exp %48 : vector<64x32xf32>
    %cst_26 = arith.constant 1.000000e+00 : f32
    %50 = vector.broadcast %cst_26 : f32 to vector<64x32xf32>
    %51 = arith.addf %50, %49 : vector<64x32xf32>
    %52 = arith.divf %50, %51 : vector<64x32xf32>
    %c0_27 = arith.constant 0 : index
    %c64_28 = arith.constant 64 : index
    %53 = vector.load %arg3[%c0_27, %c64_28] : memref<64x256xf32, #tpu.memory_space<vmem>>, vector<64x32xf32>
    %54 = arith.mulf %52, %53 : vector<64x32xf32>
    %55 = arith.addf %44, %54 : vector<64x32xf32>
    %c0_29 = arith.constant 0 : index
    %c96 = arith.constant 96 : index
    %56 = vector.load %arg2[%c0_29, %c96] : memref<64x256xf32, #tpu.memory_space<vmem>>, vector<64x32xf32>
    %cst_30 = arith.constant dense<0.000000e+00> : vector<64x32xf32>
    %57 = tpu.matmul %56, %21, %cst_30 {dimension_numbers = #tpu.dot_dimension_numbers<[1], [0], [0], [1], [0, 0, 1, 1], [], []>} : vector<64x32xf32>, vector<32x32xf32>, vector<64x32xf32> -> vector<64x32xf32>
    %58 = arith.addf %20, %57 : vector<64x32xf32>
    %59 = arith.negf %58 : vector<64x32xf32>
    %60 = math.exp %59 : vector<64x32xf32>
    %cst_31 = arith.constant 1.000000e+00 : f32
    %61 = vector.broadcast %cst_31 : f32 to vector<64x32xf32>
    %62 = arith.addf %61, %60 : vector<64x32xf32>
    %63 = arith.divf %61, %62 : vector<64x32xf32>
    %c0_32 = arith.constant 0 : index
    %c96_33 = arith.constant 96 : index
    %64 = vector.load %arg3[%c0_32, %c96_33] : memref<64x256xf32, #tpu.memory_space<vmem>>, vector<64x32xf32>
    %65 = arith.mulf %63, %64 : vector<64x32xf32>
    %66 = arith.addf %55, %65 : vector<64x32xf32>
    %c0_34 = arith.constant 0 : index
    %c128 = arith.constant 128 : index
    %67 = vector.load %arg2[%c0_34, %c128] : memref<64x256xf32, #tpu.memory_space<vmem>>, vector<64x32xf32>
    %cst_35 = arith.constant dense<0.000000e+00> : vector<64x32xf32>
    %68 = tpu.matmul %67, %21, %cst_35 {dimension_numbers = #tpu.dot_dimension_numbers<[1], [0], [0], [1], [0, 0, 1, 1], [], []>} : vector<64x32xf32>, vector<32x32xf32>, vector<64x32xf32> -> vector<64x32xf32>
    %69 = arith.addf %20, %68 : vector<64x32xf32>
    %70 = arith.negf %69 : vector<64x32xf32>
    %71 = math.exp %70 : vector<64x32xf32>
    %cst_36 = arith.constant 1.000000e+00 : f32
    %72 = vector.broadcast %cst_36 : f32 to vector<64x32xf32>
    %73 = arith.addf %72, %71 : vector<64x32xf32>
    %74 = arith.divf %72, %73 : vector<64x32xf32>
    %c0_37 = arith.constant 0 : index
    %c128_38 = arith.constant 128 : index
    %75 = vector.load %arg3[%c0_37, %c128_38] : memref<64x256xf32, #tpu.memory_space<vmem>>, vector<64x32xf32>
    %76 = arith.mulf %74, %75 : vector<64x32xf32>
    %77 = arith.addf %66, %76 : vector<64x32xf32>
    %c0_39 = arith.constant 0 : index
    %c160 = arith.constant 160 : index
    %78 = vector.load %arg2[%c0_39, %c160] : memref<64x256xf32, #tpu.memory_space<vmem>>, vector<64x32xf32>
    %cst_40 = arith.constant dense<0.000000e+00> : vector<64x32xf32>
    %79 = tpu.matmul %78, %21, %cst_40 {dimension_numbers = #tpu.dot_dimension_numbers<[1], [0], [0], [1], [0, 0, 1, 1], [], []>} : vector<64x32xf32>, vector<32x32xf32>, vector<64x32xf32> -> vector<64x32xf32>
    %80 = arith.addf %20, %79 : vector<64x32xf32>
    %81 = arith.negf %80 : vector<64x32xf32>
    %82 = math.exp %81 : vector<64x32xf32>
    %cst_41 = arith.constant 1.000000e+00 : f32
    %83 = vector.broadcast %cst_41 : f32 to vector<64x32xf32>
    %84 = arith.addf %83, %82 : vector<64x32xf32>
    %85 = arith.divf %83, %84 : vector<64x32xf32>
    %c0_42 = arith.constant 0 : index
    %c160_43 = arith.constant 160 : index
    %86 = vector.load %arg3[%c0_42, %c160_43] : memref<64x256xf32, #tpu.memory_space<vmem>>, vector<64x32xf32>
    %87 = arith.mulf %85, %86 : vector<64x32xf32>
    %88 = arith.addf %77, %87 : vector<64x32xf32>
    %c0_44 = arith.constant 0 : index
    %c192 = arith.constant 192 : index
    %89 = vector.load %arg2[%c0_44, %c192] : memref<64x256xf32, #tpu.memory_space<vmem>>, vector<64x32xf32>
    %cst_45 = arith.constant dense<0.000000e+00> : vector<64x32xf32>
    %90 = tpu.matmul %89, %21, %cst_45 {dimension_numbers = #tpu.dot_dimension_numbers<[1], [0], [0], [1], [0, 0, 1, 1], [], []>} : vector<64x32xf32>, vector<32x32xf32>, vector<64x32xf32> -> vector<64x32xf32>
    %91 = arith.addf %20, %90 : vector<64x32xf32>
    %92 = arith.negf %91 : vector<64x32xf32>
    %93 = math.exp %92 : vector<64x32xf32>
    %cst_46 = arith.constant 1.000000e+00 : f32
    %94 = vector.broadcast %cst_46 : f32 to vector<64x32xf32>
    %95 = arith.addf %94, %93 : vector<64x32xf32>
    %96 = arith.divf %94, %95 : vector<64x32xf32>
    %c0_47 = arith.constant 0 : index
    %c192_48 = arith.constant 192 : index
    %97 = vector.load %arg3[%c0_47, %c192_48] : memref<64x256xf32, #tpu.memory_space<vmem>>, vector<64x32xf32>
    %98 = arith.mulf %96, %97 : vector<64x32xf32>
    %99 = arith.addf %88, %98 : vector<64x32xf32>
    %c0_49 = arith.constant 0 : index
    %c224 = arith.constant 224 : index
    %100 = vector.load %arg2[%c0_49, %c224] : memref<64x256xf32, #tpu.memory_space<vmem>>, vector<64x32xf32>
    %cst_50 = arith.constant dense<0.000000e+00> : vector<64x32xf32>
    %101 = tpu.matmul %100, %21, %cst_50 {dimension_numbers = #tpu.dot_dimension_numbers<[1], [0], [0], [1], [0, 0, 1, 1], [], []>} : vector<64x32xf32>, vector<32x32xf32>, vector<64x32xf32> -> vector<64x32xf32>
    %102 = arith.addf %20, %101 : vector<64x32xf32>
    %103 = arith.negf %102 : vector<64x32xf32>
    %104 = math.exp %103 : vector<64x32xf32>
    %cst_51 = arith.constant 1.000000e+00 : f32
    %105 = vector.broadcast %cst_51 : f32 to vector<64x32xf32>
    %106 = arith.addf %105, %104 : vector<64x32xf32>
    %107 = arith.divf %105, %106 : vector<64x32xf32>
    %c0_52 = arith.constant 0 : index
    %c224_53 = arith.constant 224 : index
    %108 = vector.load %arg3[%c0_52, %c224_53] : memref<64x256xf32, #tpu.memory_space<vmem>>, vector<64x32xf32>
    %109 = arith.mulf %107, %108 : vector<64x32xf32>
    %110 = arith.addf %99, %109 : vector<64x32xf32>
    %111 = math.tanh %110 : vector<64x32xf32>
    %112 = arith.mulf %17, %111 : vector<64x32xf32>
    %c0_54 = arith.constant 0 : index
    %c0_55 = arith.constant 0 : index
    %113 = vector.load %arg8[%c0_54, %c0_55] : memref<64x32xf32, #tpu.memory_space<vmem>>, vector<64x32xf32>
    tpu.vector_store %arg8[%c0_54, %c0_55], %112 {strides = array<i32>} : memref<64x32xf32, #tpu.memory_space<vmem>>, vector<64x32xf32>,
    %c0_56 = arith.constant 0 : index
    %c0_57 = arith.constant 0 : index
    %114 = vector.load %arg9[%c0_56, %c0_57] : memref<64x32xf32, #tpu.memory_space<vmem>>, vector<64x32xf32>
    tpu.vector_store %arg9[%c0_56, %c0_57], %110 {strides = array<i32>} : memref<64x32xf32, #tpu.memory_space<vmem>>, vector<64x32xf32>,
    return
  }
  func.func @transform_0(%arg0: i32) -> (i32, i32) {
    %c0_i32 = arith.constant 0 : i32
    %c0_i32_0 = arith.constant 0 : i32
    return %arg0, %c0_i32 : i32, i32
  }
  func.func @transform_1(%arg0: i32) -> (i32, i32) {
    %c0_i32 = arith.constant 0 : i32
    %c0_i32_0 = arith.constant 0 : i32
    return %arg0, %c0_i32 : i32, i32
  }
  func.func @transform_2(%arg0: i32) -> (i32, i32) {
    %c0_i32 = arith.constant 0 : i32
    %c0_i32_0 = arith.constant 0 : i32
    return %arg0, %c0_i32 : i32, i32
  }
  func.func @transform_3(%arg0: i32) -> (i32, i32) {
    %c0_i32 = arith.constant 0 : i32
    %c0_i32_0 = arith.constant 0 : i32
    %c0_i32_1 = arith.constant 0 : i32
    return %c0_i32, %c0_i32_0 : i32, i32
  }
  func.func @transform_4(%arg0: i32) -> (i32, i32) {
    %c0_i32 = arith.constant 0 : i32
    %c0_i32_0 = arith.constant 0 : i32
    %c0_i32_1 = arith.constant 0 : i32
    return %c0_i32, %c0_i32_0 : i32, i32
  }
  func.func @transform_5(%arg0: i32) -> (i32, i32) {
    %c0_i32 = arith.constant 0 : i32
    %c0_i32_0 = arith.constant 0 : i32
    %c0_i32_1 = arith.constant 0 : i32
    return %c0_i32, %c0_i32_0 : i32, i32
  }
  func.func @transform_6(%arg0: i32) -> (i32, i32) {
    %c0_i32 = arith.constant 0 : i32
    %c0_i32_0 = arith.constant 0 : i32
    %c0_i32_1 = arith.constant 0 : i32
    return %c0_i32, %c0_i32_0 : i32, i32
  }
  func.func @transform_7(%arg0: i32) -> (i32, i32) {
    %c0_i32 = arith.constant 0 : i32
    %c0_i32_0 = arith.constant 0 : i32
    return %arg0, %c0_i32 : i32, i32
  }
  func.func @transform_8(%arg0: i32) -> (i32, i32) {
    %c0_i32 = arith.constant 0 : i32
    %c0_i32_0 = arith.constant 0 : i32
    return %arg0, %c0_i32 : i32, i32
  }
}

</mosaic_0001>

<bundles_post_ra>
// kernel: tpu_custom_call.1
= control target key start
LH: loop header
LB: loop body
LE: loop exit
PB: predicated region body
PF: predicated region fallthrough
CT: control target
= control target key end

     0   :  { %s8209_s0 = inlined_call_operand.vmem [shape: f32[100,16], index: 0, kind: input, shape index: {}]   ;;  %s8210_s1 = inlined_call_operand.hbm [shape: f32[100,256], index: 1, kind: input, shape index: {}]   ;;  %s8211_s2 = inlined_call_operand.hbm [shape: f32[100,256], index: 2, kind: input, shape index: {}]   ;;  %s8212_s3 = inlined_call_operand.vmem [shape: f32[16,128], index: 3, kind: input, shape index: {}]   ;;  %s8213_s4 = inlined_call_operand.hbm [shape: f32[256,128], index: 4, kind: input, shape index: {}]   ;;  %s8214_s5 = inlined_call_operand.vmem [shape: f32[32,32], index: 5, kind: input, shape index: {}]   ;;  %s8215_s6 = inlined_call_operand.vmem [shape: f32[1,128], index: 6, kind: input, shape index: {}]   ;;  %s8216_s7 = inlined_call_operand.vmem [shape: f32[100,32], index: 7, kind: output, shape index: {0}]   ;;  %s8217_s8 = inlined_call_operand.vmem [shape: f32[100,32], index: 8, kind: output, shape index: {1}]  }
   0x1   :  { %8233 = sst [smem:[#allocation32_spill]] %s8213_s4 }
   0x2   :  { %14 = vsyncpa [#allocation3], 0 }
   0x3   :  { %16 = vsyncpa [#allocation3 + $0x1], 0 }
   0x4   :  { %17 = vsyncpa [#allocation5], 0 }
   0x5   :  { %19 = vsyncpa [#allocation5 + $0x1], 0  ;;  %s5266_s27 = smov 0   ;;  %s5268_s28 = smov 0  }
   0x6   :  { %s5270_s29 = smov 0   ;;  %s5272_s30 = smov 0  }
   0x7 LB: > { %s5285_s9 = sadd.s32 4294967295, %s5143_s30   ;;  %s5288_s10 = sadd.s32 1, %s5143_s30   ;;  %s5143_s30 = sphi %s5272_s30, %s8422_s30   ;;  %s5139_s29 = sphi %s5270_s29, %s8426_s29   ;;  %s5135_s28 = sphi %s5268_s28, %s8425_s28   ;;  %s5131_s27 = sphi %s5266_s27, %s8424_s27  }
   0x8   : > { %8234 = sst [smem:[#allocation12_spill]] %s5288_s10  ;;  %s55_s11 = ssub.s32 %s5143_s30, %s5288_s10 }
   0x9   : > { %s58_s12 = sadd.s32 1, %s5139_s29  ;;  %p56_p0 = scmp.eq.s32.totalorder %s55_s11, 0 }
   0xa   : > { %p65_p1 = scmp.ne.s32.totalorder %s5139_s29, %s5135_s28  ;;  %p66_p2 = scmp.eq.s32.totalorder %s5143_s30, 0 }
   0xb   : > { %p71_p3 = scmp.ne.s32.totalorder %s5135_s28, %s5131_s27  ;;  %p8221_p5 = scmp.eq.s32.totalorder %s5285_s9, 0 }
   0xc   : > { %s5298_s13 = scalar_select %p56_p0, %s5139_s29, %s58_s12  }
   0xd   : > { %p5300_p4 = por %p66_p2, %p65_p1  ;;  %p205_p6 = scmp.eq.s32.totalorder %s5285_s9, 1 }
   0xe   : > { %8235 = sst [smem:[#allocation13_spill]] %s5298_s13  ;;  %p4181_p7 = scmp.ge.s32.totalorder %s5143_s30, 1 }
   0xf   : > { %p5309_p8 = por %p8221_p5, %p71_p3  ;;  %p244_p9 = scmp.lt.s32.totalorder %s5143_s30, 3 }
  0x10   : > { %p5314_p10 = por %p205_p6, %p65_p1  ;;  %s8240_s4 = sld [smem:[#allocation32_spill]] }
  0x11   : > { %p5318_p11 = pnand %p4181_p7, %p244_p9  ;;  %s5209_s21 = smov [#allocation6]  }
  0x12   : > { %s8238_s16 = scalar_select %p5314_p10, 1, 0 }
  0x13   : > { %p4408_p12 = pneg %p5318_p11  ;;  %s260_s22 = sshll.u32 %s5209_s21, 4  ;;  %s261_s22 = int_to_ptr.vmem [resolvable:$true] %s260_s22 }
  0x14   : > { %s5210_s23 = smov 128   ;;  %s5211_s24 = smov 8  }
  0x15   : > { %p4409_p13 = pnand %p4408_p12, %p8221_p5  ;;  %p4183_p0 = scmp.ge.s32.totalorder %s5143_s30, 2 }
  0x16   : > { %s258_s20 = sshll.u32 %s8240_s4, 4  ;;  %s259_s20 = int_to_ptr.hbm [resolvable:$true] %s258_s20 }
  0x17   : > { %4411 = dma.hbm_to_vmem [thread:$0]  (!%p4409_p13), %s259_s20, 4096, %s261_s22, [#allocation5], %s5210_s23, %s5210_s23, %s5211_s24  }
  0x18   : > { %276 = sbr.rel (%p4183_p0) target bundleno = 102 (0x66), region = 32 }
  0x1d   : > { %296 = sbr.rel (!%p5300_p4) target bundleno = 66 (0x42), region = 40  ;;  %s297_s25 = sand.u32 (%p5300_p4), 1, %s5139_s29  }
  0x1e   : > { %s4185_s26 = sshll.u32 (%p5300_p4), %s5143_s30, 3  ;;  %s4184_s27 = sshll.u32 (%p5300_p4), %s297_s25, 7 }
  0x1f   : > { %s303_s11 = ssub.s32 (%p5300_p4), 13, %s4185_s26  ;;  %s5337_s20 = scalar_lea.sflag (%p5300_p4), [#allocation3], %s297_s25 }
  0x20   : > { %p304_p1 = scmp.lt.s32.totalorder (%p5300_p4), %s303_s11, 8  ;;  %s301_s21 = scalar_lea.vmem (%p5300_p4), [#allocation2], %s4184_s27 }
  0x22   : > { %s8428_s11 = smov (!%p304_p1, %s303_s11), 8 }
  0x23   : > { %s4386_s12 = sshll.u32 %s8428_s11, 4 }
  0x24   : > { %s308_s18 = ssub.s32 128, %s4386_s12 }
  0x25   : > { %s309_s19 = sshll.u32 %s308_s18, 4 }
  0x26   : > { %310 = vsyncadd %s5337_s20, %s309_s19  ;;  %p5340_p2 = scmp.ne.s32.totalorder %s4386_s12, 0  ;;  %s4388_s23 = sshll.u32 %s5143_s30, 7 }
  0x27   : > { %s314_s4 = scalar_lea.hbm %s8210_s1, %s4388_s23  ;;  %s5348_s13 = sshll.u32 %s301_s21, 4  ;;  %s319_s13 = int_to_ptr.vmem [resolvable:$true] %s5348_s13 }
  0x28   : > { %s316_s25 = sshll.u32 %s314_s4, 4  ;;  %s8218_s27 = sshll.u32 %s8428_s11, 8  ;;  %s5351_s25 = int_to_ptr.hbm [resolvable:$true] %s316_s25 }
  0x29   : > { %s4959_s18 = sshra.s32 %s5351_s25, 4  ;;  %s4961_s12 = sshrl.u32 %s8218_s27, 4  ;;  %s4960_s18 = int_to_ptr.hbm [resolvable:$true] %s4959_s18 }
  0x2a   : > { %s4966_s19 = scalar_lea.hbm %s4960_s18, %s4961_s12  ;;  %s4970_s21 = scalar_lea.hbm %s8210_s1, 208 }
  0x2b   : > { %p4967_p3 = scmp.ne.s32.totalorder %s4960_s18, %s4966_s19  ;;  %p4971_p9 = scmp.lt.s32.totalorder %s4960_s18, %s8210_s1 }
  0x2c   : > { %p4972_p12 = scmp.lt.s32.totalorder %s4970_s21, %s4966_s19 }
  0x2d   : > { %p4968_p6 = pnand %p4967_p3, %p5340_p2 }
  0x2e   : > { %p4973_p13 = por %p4972_p12, %p4971_p9 }
  0x2f   : > { %p4969_p7 = pneg %p4968_p6 }
  0x31   : > { %p4974_p0 = pnand %p4973_p13, %p4969_p7 }
  0x33   : > { %4977 = shalt.err (!%p4974_p0)
}
  0x34   : > { %s4978_s27 = sshra.s32 %s319_s13, 4  ;;  %s5212_s24 = smov [#allocation2]   ;;  %s4979_s27 = int_to_ptr.vmem [resolvable:$true] %s4978_s27 }
  0x35   : > { %s4985_s10 = scalar_lea.vmem %s4979_s27, %s4961_s12  ;;  %s4989_s23 = scalar_lea.vmem %s5212_s24, 256 }
  0x36   : > { %p4986_p1 = scmp.ne.s32.totalorder %s4979_s27, %s4985_s10  ;;  %p4991_p5 = scmp.lt.s32.totalorder %s4989_s23, %s4985_s10 }
  0x38   : > { %p4987_p3 = pnand %p4986_p1, %p5340_p2 }
  0x3a   : > { %p4988_p6 = pneg %p4987_p3 }
  0x3c   : > { %p4993_p10 = pnand %p4991_p5, %p4988_p6 }
  0x3e   : > { %4996 = shalt.err (!%p4993_p10)
}
  0x3f   : > { %s5213_s18 = smov 256   ;;  %s5214_s19 = smov 16  }
  0x40   : > { %s8242_s21 = sshll.u32 %s8428_s11, 8 }
  0x41   : > { %324 = dma.hbm_to_vmem [thread:$0]  (%p5340_p2), %s5351_s25, %s8242_s21, %s319_s13, %s5337_s20, %s5213_s18, %s5213_s18, %s5214_s19  }
  0x42 PF: > { %327 = sbr.rel (!%p5300_p4) target bundleno = 102 (0x66), region = 44  ;;  %s328_s10 = sand.u32 (%p5300_p4), 1, %s5143_s30  }
  0x43   : > { %s330_s27 = sand.u32 (%p5300_p4), 1, %s5139_s29   ;;  %s4194_s26 = sshll.u32 (%p5300_p4), %s5143_s30, 3 }
  0x44   : > { %s4193_s12 = sshll.u32 (%p5300_p4), %s330_s27, 7  ;;  %s334_s4 = ssub.s32 (%p5300_p4), 13, %s4194_s26 }
  0x45   : > { %p335_p5 = scmp.lt.s32.totalorder (%p5300_p4), %s334_s4, 8  ;;  %s5385_s13 = scalar_lea.sflag (%p5300_p4), [#allocation5], %s328_s10 }
  0x46   : > { %s332_s14 = scalar_lea.vmem (%p5300_p4), [#allocation4], %s4193_s12 }
  0x47   : > { %s8430_s4 = smov (!%p335_p5, %s334_s4), 8 }
  0x48   : > { %s4389_s22 = sshll.u32 %s8430_s4, 4 }
  0x49   : > { %s339_s24 = ssub.s32 128, %s4389_s22 }
  0x4a   : > { %s340_s11 = sshll.u32 %s339_s24, 4 }
  0x4b   : > { %341 = vsyncadd %s5385_s13, %s340_s11  ;;  %p5388_p4 = scmp.ne.s32.totalorder %s4389_s22, 0  ;;  %s4391_s25 = sshll.u32 %s5143_s30, 7 }
  0x4c   : > { %s345_s19 = scalar_lea.hbm %s8211_s2, %s4391_s25  ;;  %s5396_s21 = sshll.u32 %s332_s14, 4  ;;  %s350_s21 = int_to_ptr.vmem [resolvable:$true] %s5396_s21 }
  0x4d   : > { %s347_s10 = sshll.u32 %s345_s19, 4  ;;  %s4201_s27 = sshll.u32 %s8430_s4, 8  ;;  %s5399_s10 = int_to_ptr.hbm [resolvable:$true] %s347_s10 }
  0x4e   : > { %s4998_s12 = sshra.s32 %s5399_s10, 4  ;;  %s5000_s26 = sshrl.u32 %s4201_s27, 4  ;;  %s4999_s12 = int_to_ptr.hbm [resolvable:$true] %s4998_s12 }
  0x4f   : > { %s5005_s22 = scalar_lea.hbm %s4999_s12, %s5000_s26  ;;  %s5009_s11 = scalar_lea.hbm %s8211_s2, 208 }
  0x50   : > { %p5006_p10 = scmp.ne.s32.totalorder %s4999_s12, %s5005_s22  ;;  %p5010_p9 = scmp.lt.s32.totalorder %s4999_s12, %s8211_s2 }
  0x51   : > { %p5011_p12 = scmp.lt.s32.totalorder %s5009_s11, %s5005_s22 }
  0x52   : > { %p5007_p2 = pnand %p5006_p10, %p5388_p4 }
  0x53   : > { %p5012_p13 = por %p5011_p12, %p5010_p9 }
  0x54   : > { %p5008_p7 = pneg %p5007_p2 }
  0x56   : > { %p5013_p0 = pnand %p5012_p13, %p5008_p7 }
  0x58   : > { %5016 = shalt.err (!%p5013_p0)
}
  0x59   : > { %s5017_s23 = sshra.s32 %s350_s21, 4  ;;  %s5215_s19 = smov [#allocation4]   ;;  %s5018_s23 = int_to_ptr.vmem [resolvable:$true] %s5017_s23 }
  0x5a   : > { %s5024_s18 = scalar_lea.vmem %s5018_s23, %s5000_s26  ;;  %s5028_s30 = scalar_lea.vmem %s5215_s19, 256 }
  0x5b   : > { %p5025_p1 = scmp.ne.s32.totalorder %s5018_s23, %s5024_s18  ;;  %p5030_p5 = scmp.lt.s32.totalorder %s5028_s30, %s5024_s18 }
  0x5d   : > { %p5026_p3 = pnand %p5025_p1, %p5388_p4 }
  0x5f   : > { %p5027_p6 = pneg %p5026_p3 }
  0x61   : > { %p5032_p10 = pnand %p5030_p5, %p5027_p6 }
  0x63   : > { %5035 = shalt.err (!%p5032_p10)
}
  0x64   : > { %s5216_s12 = smov 256   ;;  %s5217_s22 = smov 16  }
  0x65   : > { %355 = dma.hbm_to_vmem [thread:$0]  (%p5388_p4), %s5399_s10, %s4201_s27, %s350_s21, %s5385_s13, %s5216_s12, %s5216_s12, %s5217_s22  }
  0x66 PF: > { %361 = sbr.rel (%p5318_p11) target bundleno = 1388 (0x56c), region = 48 }
  0x6b   : > { %s5428_s26 = sand.u32 1, %s5135_s28  }
  0x6c   : > { %s4203_s24 = sshll.u32 %s5428_s26, 7  ;;  %s364_s11 = scalar_lea.sflag [#allocation3], %s5428_s26 }
  0x6d   : > { %s5432_s14 = scalar_lea.vmem [#allocation2], %s4203_s24 }
  0x6e   : > { %5118 = dma.done.wait (%p5309_p8), %s364_s11, 2048  }
  0x6f   : > { %5120 = vsyncadd (%p5309_p8), %s364_s11, 4294965248  ;;  %s373_s4 = sand.u32 1, %s5285_s9   ;;  %s5439_s13 = scalar_lea.vmem [#allocation4], %s4203_s24 }
  0x70   : > { %s374_s17 = scalar_lea.sflag [#allocation5], %s373_s4 }
  0x71   : > { %5122 = dma.done.wait (%p5309_p8), %s374_s17, 2048  }
  0x72   : > { %5124 = vsyncadd (%p5309_p8), %s374_s17, 4294965248  ;;  %p8244_p11 = scmp.eq.s32.totalorder %s5285_s9, 0 }
  0x74   : > { %5126 = dma.done.wait (%p8244_p11), [#allocation5], 4096   ;;  %p8245_p4 = pmov %p8244_p11 }
  0x75   : > { %v5450_v0 = vld [vmem:[%s5439_s13 + $0x20] sm:$0xff]  ;;  %v5453_v1 = vld [vmem:[%s5439_s13 + $0x10] sm:$0xff]  ;;  %s5218_s20 = smov 96   ;;  %v5465_v3 = vld [vmem:[%s8214_s5 + $0x18] sm:$0xff]  ;;  %s5476_s25 = sshll.u32 %s5285_s9, 3  ;;  %vm899_vm0 = vcmask 261120  }
  0x76   : > { %5128 = vsyncadd (%p8245_p4), [#allocation5], 4294963200  ;;  %v5456_v2 = vld [vmem:[%s5439_s13] sm:$0xff]  ;;  %1177 = vrot.lane.b32.xlu0 %v5450_v0, %s5218_s20  ;;  %1175 = vrot.lane.b32.xlu2 %v5453_v1, %s5218_s20  ;;  %v510_v4 = vld [vmem:[#allocation6 + $0x78] sm:$0xff]  ;;  %p438_p8 = scmp.lt.s32.totalorder %s5476_s25, 12  ;;  %vm609_vm1 = vcmask 130048  }
  0x77   : > { %v526_v5 = vld [vmem:[#allocation6 + $0xf8] sm:$0xff]  ;;  %1173 = vrot.lane.b32.xlu1 %v5456_v2, %s5218_s20  ;;  %936 = vmatpush.msra.mxu3 %v5465_v3  ;;  %v5473_v6 = vld [vmem:[%s8214_s5 + $0x10] sm:$0xff]  ;;  %v5481_v9 = vld [vmem:[%s8214_s5 + $0x8] sm:$0xff]  ;;  %s5219_s27 = smov 64   ;;  %s5220_s23 = smov 32  }
  0x78   : > { %v509_v7 = vld [vmem:[#allocation6 + $0x70] sm:$0xff]  ;;  %527 = vmatpush.msra.mxu0 %v510_v4  ;;  %568 = vmatpush.msra.mxu1 %v526_v5  ;;  %v508_v10 = vld [vmem:[#allocation6 + $0x68] sm:$0xff]  ;;  %v5487_v12 = vld [vmem:[%s8214_s5] sm:$0xff]  ;;  %s439_s12 = scalar_select %p438_p8, %s5476_s25, 12 }
  0x79   : > { %v525_v8 = vld [vmem:[#allocation6 + $0xf0] sm:$0xff]  ;;  %937 = vmatpush.msra.mxu3 %v5473_v6  ;;  %v524_v11 = vld [vmem:[#allocation6 + $0xe8] sm:$0xff]  ;;  %v507_v13 = vld [vmem:[#allocation6 + $0x60] sm:$0xff]  ;;  %p8412_p2 = scmp.ne.s32.totalorder %s8238_s16, 0 }
  0x7a   : > { %528 = vmatpush.msra.mxu0 %v509_v7  ;;  %569 = vmatpush.msra.mxu1 %v525_v8  ;;  %v523_v14 = vld [vmem:[#allocation6 + $0xe0] sm:$0xff]  ;;  %v5495_v16 = vld [vmem:[%s5439_s13 + $0x50] sm:$0xff]  ;;  %v506_v19 = vld [vmem:[#allocation6 + $0x58] sm:$0xff]  ;;  %s4209_s11 = sshll.u32 %s439_s12, 3 }
  0x7b   : > { %938 = vmatpush.msra.mxu3 %v5481_v9  ;;  %v5492_v15 = vld [vmem:[%s5432_s14] sm:$0xff]  ;;  %v5502_v18 = vld [vmem:[%s5439_s13 + $0x30] sm:$0xff]  ;;  %v522_v20 = vld [vmem:[#allocation6 + $0xd8] sm:$0xff]  ;;  %s5532_s10 = scalar_lea.vmem %s8209_s0, %s4209_s11 }
  0x7c   : > { %529 = vmatpush.msra.mxu0 %v508_v10  ;;  %570 = vmatpush.msra.mxu1 %v524_v11  ;;  %v5499_v17 = vld [vmem:[%s5439_s13 + $0x40] sm:$0xff]  ;;  %v505_v21 = vld [vmem:[#allocation6 + $0x50] sm:$0xff]  ;;  %v504_v23 = vld [vmem:[#allocation6 + $0x48] sm:$0xff] }
  0x7d   : > { %939 = vmatpush.msra.mxu3 %v5487_v12  ;;  %v521_v22 = vld [vmem:[#allocation6 + $0xd0] sm:$0xff]  ;;  %v520_v24 = vld [vmem:[#allocation6 + $0xc8] sm:$0xff]  ;;  %v503_v26 = vld [vmem:[#allocation6 + $0x40] sm:$0xff] }
  0x7e   : > { %530 = vmatpush.msra.mxu0 %v507_v13  ;;  %571 = vmatpush.msra.mxu1 %v523_v14  ;;  %v478_v25 = vld [vmem:[%s8212_s3 + $0x8] sm:$0xff]  ;;  %v519_v27 = vld [vmem:[#allocation6 + $0xc0] sm:$0xff]  ;;  %v5524_v29 = vld [vmem:[%s5432_s14 + $0x10] sm:$0xff] }
  0x7f   : > { %4226 = vmatmul.msk.f32.vlgmr.msra.gmra.mxu3 %vm899_vm0, %v5492_v15  ;;  %1183 = vrot.lane.b32.xlu0 %v5495_v16, %s5218_s20  ;;  %v477_v28 = vld [vmem:[%s8212_s3] sm:$0xff]  ;;  %v5527_v30 = vld [vmem:[%s5439_s13 + $0x70] sm:$0xff]  ;;  %v502_v32 = vld [vmem:[#allocation6 + $0x38] sm:$0xff] }
  0x80   : > { %1181 = vrot.lane.b32.xlu2 %v5499_v17, %s5218_s20  ;;  %1179 = vrot.lane.b32.xlu1 %v5502_v18, %s5218_s20  ;;  %v5535_v31 = vld [vmem:[%s5439_s13 + $0x60] sm:$0xff]  ;;  %v518_v33 = vld [vmem:[#allocation6 + $0xb8] sm:$0xff]  ;;  %v501_v35 = vld [vmem:[#allocation6 + $0x30] sm:$0xff] }
  0x81   : > { %531 = vmatpush.msra.mxu0 %v506_v19  ;;  %572 = vmatpush.msra.mxu1 %v522_v20  ;;  %v469_v34 = vld [vmem:[%s5532_s10] sm:$0xff]  ;;  %v517_v36 = vld [vmem:[#allocation6 + $0xb0] sm:$0xff]  ;;  %v500_v37 = vld [vmem:[#allocation6 + $0x28] sm:$0xff] }
  0x82   : > { %1626 = vmatpush.msrb.mxu3 %v5465_v3  ;;  %648 = vmatpush.msra.mxu2 %v478_v25  ;;  %v516_v38 = vld [vmem:[#allocation6 + $0xa8] sm:$0xff]  ;;  %v499_v39 = vld [vmem:[#allocation6 + $0x20] sm:$0xff]  ;;  %v498_v42 = vld [vmem:[#allocation6 + $0x18] sm:$0xff] }
  0x83   : > { %532 = vmatpush.msra.mxu0 %v505_v21  ;;  %573 = vmatpush.msra.mxu1 %v521_v22  ;;  %v515_v40 = vld [vmem:[#allocation6 + $0xa0] sm:$0xff]  ;;  %v514_v43 = vld [vmem:[#allocation6 + $0x98] sm:$0xff]  ;;  %v497_v45 = vld [vmem:[#allocation6 + $0x10] sm:$0xff] }
  0x84   : > { %1627 = vmatpush.msrb.mxu3 %v5473_v6  ;;  %649 = vmatpush.msra.mxu2 %v477_v28  ;;  %v5552_v41 = vld [vmem:[%s5432_s14 + $0x20] sm:$0xff]  ;;  %v470_v46 = vld [vmem:[%s5532_s10 + $0x8] sm:$0xff]  ;;  %v513_v47 = vld [vmem:[#allocation6 + $0x90] sm:$0xff] }
  0x85   : > { %533 = vmatpush.msra.mxu0 %v504_v23  ;;  %574 = vmatpush.msra.mxu1 %v520_v24  ;;  %v5557_v44 = vld [vmem:[%s5432_s14 + $0x40] sm:$0xff]  ;;  %v496_v48 = vld [vmem:[#allocation6 + $0x8] sm:$0xff]  ;;  %v5571_v52 = vld [vmem:[%s5432_s14 + $0x30] sm:$0xff] }
  0x86   : > { %1628 = vmatpush.msrb.mxu3 %v5481_v9  ;;  %4210 = vmatmul.msk.f32.vlgmr.msra.gmra.mxu2 %vm609_vm1, %v469_v34  ;;  %v512_v49 = vld [vmem:[#allocation6 + $0x88] sm:$0xff]  ;;  %v495_v50 = vld [vmem:[#allocation6] sm:$0xff]  ;;  %v5575_v53 = vld [vmem:[%s5432_s14 + $0x50] sm:$0xff] }
  0x87   : > { %534 = vmatpush.msra.mxu0 %v503_v26  ;;  %575 = vmatpush.msra.mxu1 %v519_v27  ;;  %v511_v51 = vld [vmem:[#allocation6 + $0x80] sm:$0xff]  ;;  %v5579_v54 = vld [vmem:[%s5432_s14 + $0x8] sm:$0xff]  ;;  %v5585_v55 = vld [vmem:[%s5432_s14 + $0x70] sm:$0xff] }
  0x88   : > { %4227 = vmatmul.msk.f32.gmra.mxu3 %vm899_vm0, %v5524_v29  ;;  %1187 = vrot.lane.b32.xlu2 %v5527_v30, %s5218_s20  ;;  %v471_v56 = vld [vmem:[%s5532_s10 + $0x10] sm:$0xff]  ;;  %v5602_v57 = vld [vmem:[%s5432_s14 + $0x60] sm:$0xff]  ;;  %v5607_v58 = vld [vmem:[%s5432_s14 + $0x18] sm:$0xff] }
  0x89   : > { %1185 = vrot.lane.b32.xlu1 %v5535_v31, %s5218_s20  ;;  %1247 = vrot.lane.b32.xlu0 %v5524_v29, %s5218_s20  ;;  %v472_v59 = vld [vmem:[%s5532_s10 + $0x18] sm:$0xff]  ;;  %v5629_v60 = vld [vmem:[%s5432_s14 + $0x28] sm:$0xff] }
  0x8a   : > { %535 = vmatpush.msra.mxu0 %v502_v32  ;;  %576 = vmatpush.msra.mxu1 %v518_v33  ;;  %v473_v61 = vld [vmem:[%s5532_s10 + $0x20] sm:$0xff]  ;;  %v5650_v62 = vld [vmem:[%s5432_s14 + $0x38] sm:$0xff]  ;;  %v474_v63 = vld [vmem:[%s5532_s10 + $0x28] sm:$0xff] }
  0x8b   : > { %1629 = vmatpush.msrb.mxu3 %v5487_v12  ;;  %1289 = vmatpush.msrb.mxu2 %v5465_v3  ;;  %v475_v4 = vld [vmem:[%s5532_s10 + $0x30] sm:$0xff]  ;;  %v5681_v5 = vld [vmem:[%s5432_s14 + $0x58] sm:$0xff]  ;;  %v5694_v7 = vld [vmem:[%s5432_s14 + $0x68] sm:$0xff] }
  0x8c   : > { %536 = vmatpush.msra.mxu0 %v501_v35  ;;  %577 = vmatpush.msra.mxu1 %v517_v36  ;;  %v5792_v35 = vld [vmem:[%s8215_s6] ss:$0 sm:$0xff] }
  0x8d   : > { %2958 = vmatpush.msra.mxu3 %v5465_v3  ;;  %1290 = vmatpush.msrb.mxu2 %v5473_v6 }
  0x8e   : > { %537 = vmatpush.msra.mxu0 %v500_v37  ;;  %578 = vmatpush.msra.mxu1 %v516_v38 }
  0x8f   : > { %2959 = vmatpush.msra.mxu3 %v5473_v6  ;;  %4211 = vmatmul.msk.f32.gmra.mxu2 %vm609_vm1, %v470_v46 }
  0x90   : > { %538 = vmatpush.msra.mxu0 %v499_v39  ;;  %579 = vmatpush.msra.mxu1 %v515_v40 }
  0x91   : > { %4228 = vmatmul.msk.f32.gmra.mxu3 %vm899_vm0, %v5552_v41  ;;  %1249 = vrot.lane.b32.xlu1 %v5552_v41, %s5218_s20 }
  0x92   : > { %1245 = vrot.lane.b32.xlu2 %v5492_v15, %s5218_s20  ;;  %539 = vmatpush.msra.mxu0 %v498_v42 }
  0x93   : > { %580 = vmatpush.msra.mxu1 %v514_v43  ;;  %1253 = vrot.lane.b32.xlu0 %v5557_v44, %s5218_s20 }
  0x94   : > { %540 = vmatpush.msra.mxu0 %v497_v45  ;;  %1291 = vmatpush.msrb.mxu2 %v5481_v9 }
  0x95   : > { %581 = vmatpush.msra.mxu1 %v513_v47  ;;  %2960 = vmatpush.msra.mxu3 %v5481_v9 }
  0x96   : > { %541 = vmatpush.msra.mxu0 %v496_v48  ;;  %1292 = vmatpush.msrb.mxu2 %v5487_v12 }
  0x97   : > { %582 = vmatpush.msra.mxu1 %v512_v49  ;;  %4212 = vmatmul.msk.f32.gmra.mxu2 %vm609_vm1, %v471_v56 }
  0x98   : > { %542 = vmatpush.msra.mxu0 %v495_v50  ;;  %2621 = vmatpush.msra.mxu2 %v5465_v3 }
  0x99   : > { %583 = vmatpush.msra.mxu1 %v511_v51  ;;  %4229 = vmatmul.msk.f32.gmra.mxu3 %vm899_vm0, %v5571_v52 }
  0x9a   : > { %1255 = vrot.lane.b32.xlu1 %v5575_v53, %s5218_s20  ;;  %1251 = vrot.lane.b32.xlu2 %v5571_v52, %s5218_s20 }
  0x9b   : > { %543 = vmatmul.f32.vlgmr.msra.gmra.mxu0 %v5492_v15  ;;  %584 = vmatmul.f32.vlgmr.msra.gmra.mxu1 %v5579_v54 }
  0x9c   : > { %1259 = vrot.lane.b32.xlu0 %v5585_v55, %s5218_s20  ;;  %4398 = vmatpush.msrb.mxu1 %v5465_v3 }
  0x9d   : > { %1963 = vmatpush.msrb.mxu0 %v5465_v3  ;;  %2622 = vmatpush.msra.mxu2 %v5473_v6 }
  0x9e   : > { %2961 = vmatpush.msra.mxu3 %v5487_v12  ;;  %4399 = vmatpush.msrb.mxu1 %v5473_v6 }
  0x9f   : > { %1964 = vmatpush.msrb.mxu0 %v5473_v6  ;;  %2623 = vmatpush.msra.mxu2 %v5481_v9 }
  0xa0   : > { %4400 = vmatpush.msrb.mxu1 %v5481_v9  ;;  %4213 = vmatmul.msk.f32.gmra.mxu2 %vm609_vm1, %v472_v59 }
  0xa1   : > { %4230 = vmatmul.msk.f32.gmra.mxu3 %vm899_vm0, %v5557_v44  ;;  %1965 = vmatpush.msrb.mxu0 %v5481_v9 }
  0xa2   : > { %1512 = vrot.lane.b32.xlu1 %v5453_v1, %s5219_s27  ;;  %1257 = vrot.lane.b32.xlu2 %v5602_v57, %s5218_s20 }
  0xa3   : > { %546 = vmatmul.f32.gmra.mxu0 %v5524_v29  ;;  %587 = vmatmul.f32.gmra.mxu1 %v5607_v58 }
  0xa4   : > { %1510 = vrot.lane.b32.xlu0 %v5456_v2, %s5219_s27  ;;  %4401 = vmatpush.msrb.mxu1 %v5487_v12 }
  0xa5   : > { %2624 = vmatpush.msra.mxu2 %v5487_v12  ;;  %1966 = vmatpush.msrb.mxu0 %v5487_v12 }
  0xa6   : > { %2268 = vmatpush.msra.mxu1 %v5465_v3 }
  0xa7   : > { %3295 = vmatpush.msra.mxu0 %v5465_v3  ;;  %v5666_v3 = vld [vmem:[%s5432_s14 + $0x48] sm:$0xff] }
  0xa8   : > { %2269 = vmatpush.msra.mxu1 %v5473_v6  ;;  %4214 = vmatmul.msk.f32.gmra.mxu2 %vm609_vm1, %v473_v61 }
  0xa9   : > { %4231 = vmatmul.msk.f32.gmra.mxu3 %vm899_vm0, %v5575_v53  ;;  %3296 = vmatpush.msra.mxu0 %v5473_v6  ;;  %v476_v6 = vld [vmem:[%s5532_s10 + $0x38] sm:$0xff] }
  0xaa   : > { %1518 = vrot.lane.b32.xlu1 %v5499_v17, %s5219_s27  ;;  %1514 = vrot.lane.b32.xlu2 %v5450_v0, %s5219_s27 }
  0xab   : > { %549 = vmatmul.f32.gmra.mxu0 %v5552_v41  ;;  %590 = vmatmul.f32.gmra.mxu1 %v5629_v60 }
  0xac   : > { %1516 = vrot.lane.b32.xlu0 %v5502_v18, %s5219_s27  ;;  %2270 = vmatpush.msra.mxu1 %v5481_v9 }
  0xad   : > { %3297 = vmatpush.msra.mxu0 %v5481_v9  ;;  %v5707_v9 = vld [vmem:[%s5432_s14 + $0x78] sm:$0xff] }
  0xae   : > { %2271 = vmatpush.msra.mxu1 %v5487_v12 }
  0xaf   : > { %3298 = vmatpush.msra.mxu0 %v5487_v12 }
  0xb0   : > { %4215 = vmatmul.msk.f32.gmra.mxu2 %vm609_vm1, %v474_v63 }
  0xb1   : > { %4232 = vmatmul.msk.f32.gmra.mxu3 %vm899_vm0, %v5602_v57 }
  0xb2   : > { %1524 = vrot.lane.b32.xlu1 %v5527_v30, %s5219_s27  ;;  %1520 = vrot.lane.b32.xlu2 %v5495_v16, %s5219_s27 }
  0xb3   : > { %552 = vmatmul.f32.gmra.mxu0 %v5571_v52  ;;  %593 = vmatmul.f32.gmra.mxu1 %v5650_v62 }
  0xb4   : > { %1522 = vrot.lane.b32.xlu0 %v5535_v31, %s5219_s27 }
  0xb8   : > { %4216 = vmatmul.msk.f32.gmra.mxu2 %vm609_vm1, %v475_v4 }
  0xb9   : > { %4233 = vmatmul.msk.f32.gmra.mxu3 %vm899_vm0, %v5585_v55 }
  0xba   : > { %1582 = vrot.lane.b32.xlu1 %v5492_v15, %s5219_s27  ;;  %1584 = vrot.lane.b32.xlu2 %v5524_v29, %s5219_s27 }
  0xbb   : > { %555 = vmatmul.f32.gmra.mxu0 %v5557_v44  ;;  %596 = vmatmul.f32.gmra.mxu1 %v5666_v3 }
  0xbc   : > { %1586 = vrot.lane.b32.xlu0 %v5552_v41, %s5219_s27 }
  0xc0   : > { %4217 = vmatmul.msk.f32.gmra.mxu2 %vm609_vm1, %v476_v6 }
  0xc2   : > { %1588 = vrot.lane.b32.xlu1 %v5571_v52, %s5219_s27  ;;  %1590 = vrot.lane.b32.xlu2 %v5557_v44, %s5219_s27 }
  0xc3   : > { %558 = vmatmul.f32.gmra.mxu0 %v5575_v53  ;;  %599 = vmatmul.f32.gmra.mxu1 %v5681_v5 }
  0xc4   : > { %1592 = vrot.lane.b32.xlu0 %v5575_v53, %s5219_s27 }
  0xca   : > { %1594 = vrot.lane.b32.xlu1 %v5602_v57, %s5219_s27  ;;  %1596 = vrot.lane.b32.xlu2 %v5585_v55, %s5219_s27 }
  0xcb   : > { %561 = vmatmul.f32.gmra.mxu0 %v5602_v57  ;;  %602 = vmatmul.f32.gmra.mxu1 %v5694_v7 }
  0xcc   : > { %1849 = vrot.lane.b32.xlu0 %v5453_v1, %s5220_s23 }
  0xd0   : > { %v5704_v8 = vpop.permute.xlu2 %1175 }
  0xd2   : > { %1851 = vrot.lane.b32.xlu1 %v5450_v0, %s5220_s23  ;;  %1847 = vrot.lane.b32.xlu2 %v5456_v2, %s5220_s23 }
  0xd3   : > { %564 = vmatmul.f32.gmra.mxu0 %v5585_v55  ;;  %605 = vmatmul.f32.gmra.mxu1 %v5707_v9 }
  0xd4   : > { %1855 = vrot.lane.b32.xlu0 %v5499_v17, %s5220_s23 }
  0xda   : > { %1857 = vrot.lane.b32.xlu1 %v5495_v16, %s5220_s23  ;;  %1853 = vrot.lane.b32.xlu2 %v5502_v18, %s5220_s23  ;;  %v5721_v1 = vpop.permute.xlu2 %1181 }
  0xdc   : > { %1861 = vrot.lane.b32.xlu0 %v5527_v30, %s5220_s23 }
  0xe2   : > { %1921 = vrot.lane.b32.xlu1 %v5524_v29, %s5220_s23  ;;  %1859 = vrot.lane.b32.xlu2 %v5535_v31, %s5220_s23  ;;  %v5729_v0 = vpop.permute.xlu2 %1187 }
  0xe4   : > { %1923 = vrot.lane.b32.xlu0 %v5552_v41, %s5220_s23 }
  0xe8   : > { %v5733_v2 = vpop.permute.xlu0 %1177 }
  0xe9   : > { %v5735_v10 = vpop.permute.xlu1 %1173 }
  0xea   : > { %1925 = vrot.lane.b32.xlu1 %v5571_v52, %s5220_s23  ;;  %1919 = vrot.lane.b32.xlu2 %v5492_v15, %s5220_s23 }
  0xec   : > { %v1246_v11 = vpop.permute.xlu2 %1245  ;;  %1927 = vrot.lane.b32.xlu0 %v5557_v44, %s5220_s23 }
  0xed   : > { %4242 = vmatmul.msk.f32.vlgmr.msrb.gmra.mxu2 %vm899_vm0, %v1246_v11 }
  0xf1   : > { %v5744_v12 = vpop.permute.xlu0 %1183 }
  0xf2   : > { %1933 = vrot.lane.b32.xlu1 %v5585_v55, %s5220_s23  ;;  %1929 = vrot.lane.b32.xlu2 %v5575_v53, %s5220_s23  ;;  %v5750_v13 = vpop.permute.xlu1 %1179 }
  0xf4   : > { %v1252_v14 = vpop.permute.xlu2 %1251  ;;  %2577 = vrot.lane.b32.xlu0 %v5579_v54, %s5218_s20 }
  0xfa   : > { %1931 = vrot.lane.b32.xlu2 %v5602_v57, %s5220_s23  ;;  %2914 = vrot.lane.b32.xlu1 %v5579_v54, %s5219_s27 }
  0xfb   : > { %v5758_v15 = vpop.permute.xlu1 %1185  ;;  %v1248_v16 = vpop.permute.xlu0 %1247 }
  0xfc   : > { %v1258_v17 = vpop.permute.xlu2 %1257  ;;  %2579 = vrot.lane.b32.xlu0 %v5607_v58, %s5218_s20  ;;  %4243 = vmatmul.msk.f32.gmra.mxu2 %vm899_vm0, %v1248_v16 }
 0x102   : > { %v941_v18 = vpop.f32.mrf.mxu3  ;;  %2916 = vrot.lane.b32.xlu1 %v5607_v58, %s5219_s27 }
 0x103   : > { %v1250_v19 = vpop.permute.xlu1 %1249  ;;  %973 = vrot.lane.b32.xlu2 %v941_v18, %s5218_s20 }
 0x104   : > { %v5766_v20 = vpop.permute.xlu2 %1514  ;;  %2581 = vrot.lane.b32.xlu0 %v5629_v60, %s5218_s20  ;;  %4244 = vmatmul.msk.f32.gmra.mxu2 %vm899_vm0, %v1250_v19 }
 0x105   : > { %v1254_v21 = vpop.permute.xlu0 %1253 }
 0x109   : > { %v651_v26 = vpop.f32.mrf.mxu2 }
 0x10a   : > { %2918 = vrot.lane.b32.xlu1 %v5629_v60, %s5219_s27 }
 0x10b   : > { %v944_v22 = vpop.f32.mrf.mxu3  ;;  %3251 = vrot.lane.b32.xlu2 %v5579_v54, %s5220_s23 }
 0x10c   : > { %v1256_v23 = vpop.permute.xlu1 %1255  ;;  %v5775_v24 = vpop.permute.xlu2 %1520  ;;  %975 = vrot.lane.b32.xlu0 %v944_v22, %s5218_s20  ;;  %4245 = vmatmul.msk.f32.gmra.mxu2 %vm899_vm0, %v1252_v14 }
 0x10e   : > { %v1260_v25 = vpop.permute.xlu0 %1259 }
 0x112   : > { %v654_v31 = vpop.f32.mrf.mxu2 }
 0x113   : > { %3253 = vrot.lane.b32.xlu2 %v5607_v58, %s5220_s23 }
 0x114   : > { %v5781_v27 = vpop.permute.xlu1 %1512  ;;  %v1585_v28 = vpop.permute.xlu2 %1584  ;;  %2583 = vrot.lane.b32.xlu0 %v5650_v62, %s5218_s20  ;;  %4246 = vmatmul.msk.f32.gmra.mxu2 %vm899_vm0, %v1254_v21 }
 0x115   : > { %v947_v29 = vpop.f32.mrf.mxu3 }
 0x116   : > { %977 = vrot.lane.b32.xlu1 %v947_v29, %s5218_s20  ;;  %v5787_v30 = vpop.permute.xlu0 %1510 }
 0x118   : > { %v544_v32 = vpop.f32.mrf.mxu0  ;;  %v585_v33 = vpop.f32.mrf.mxu1 }
 0x119   : > { %v586_v34 = vadd.f32 %v585_v33, %v544_v32 }
 0x11a   : > { %v657_v42 = vpop.f32.mrf.mxu2 }
 0x11b   : > { %v652_v36 = vadd.f32 %v651_v26, %v586_v34 }
 0x11c   : > { %v5794_v37 = vpop.permute.xlu1 %1518  ;;  %v5796_v38 = vpop.permute.xlu2 %1590  ;;  %2585 = vrot.lane.b32.xlu0 %v5666_v3, %s5218_s20  ;;  %4247 = vmatmul.msk.f32.gmra.mxu2 %vm899_vm0, %v1256_v23 }
 0x11d   : > { %v5802_v39 = vadd.f32 %v5792_v35, %v652_v36  ;;  %v950_v40 = vpop.f32.mrf.mxu3 }
 0x11e   : > { %979 = vrot.lane.b32.xlu2 %v950_v40, %s5218_s20  ;;  %2920 = vrot.lane.b32.xlu1 %v5650_v62, %s5219_s27  ;;  %v5807_v41 = vpop.permute.xlu0 %1516 }
 0x11f   : > { %8246 = vst [vmem:[#allocation14_spill] sm:$0xff] %v5802_v39  ;;  %4585 = vtanh.f32 %v5802_v39 }
 0x120   : > { %v547_v43 = vpop.f32.mrf.mxu0  ;;  %v588_v44 = vpop.f32.mrf.mxu1 }
 0x121   : > { %v589_v45 = vadd.f32 %v588_v44, %v547_v43 }
 0x123   : > { %v655_v51 = vadd.f32 %v654_v31, %v589_v45  ;;  %v660_v52 = vpop.f32.mrf.mxu2 }
 0x124   : > { %v5810_v46 = vpop.permute.xlu1 %1524  ;;  %v5812_v47 = vpop.permute.xlu2 %1596  ;;  %4248 = vmatmul.msk.f32.gmra.mxu2 %vm899_vm0, %v1258_v17 }
 0x125   : > { %v4586_v48 = vpop.eup %4585  ;;  %v953_v49 = vpop.f32.mrf.mxu3  ;;  %v5823_v57 = vadd.f32 %v5792_v35, %v655_v51 }
 0x126   : > { %3255 = vrot.lane.b32.xlu2 %v5629_v60, %s5220_s23  ;;  %2922 = vrot.lane.b32.xlu1 %v5666_v3, %s5219_s27  ;;  %v5819_v50 = vpop.permute.xlu0 %1522 }
 0x127   : > { %8247 = vst [vmem:[#allocation15_spill] sm:$0xff] %v5819_v50  ;;  %859 = vrot.lane.b32.xlu0 %v4586_v48, %s5219_s27  ;;  %4587 = vtanh.f32 %v5823_v57 }
 0x128   : > { %v550_v53 = vpop.f32.mrf.mxu0  ;;  %v591_v55 = vpop.f32.mrf.mxu1  ;;  %8248 = vst [vmem:[#allocation16_spill] sm:$0xff] %v5823_v57 }
 0x129   : > { %v592_v56 = vadd.f32 %v591_v55, %v550_v53 }
 0x12b   : > { %v658_v4 = vadd.f32 %v657_v42, %v592_v56  ;;  %v663_v18 = vpop.f32.mrf.mxu2 }
 0x12c   : > { %v1583_v59 = vpop.permute.xlu1 %1582  ;;  %v5825_v61 = vpop.permute.xlu2 %1847  ;;  %4249 = vmatmul.msk.f32.gmra.mxu2 %vm899_vm0, %v1260_v25 }
 0x12d   : > { %v956_v63 = vpop.f32.mrf.mxu3  ;;  %4258 = vmatmul.msk.f32.vlgmr.msrb.gmra.mxu3 %vm899_vm0, %v1583_v59  ;;  %v5835_v16 = vadd.f32 %v5792_v35, %v658_v4  ;;  %v4588_v19 = vpop.eup %4587 }
 0x12e   : > { %3257 = vrot.lane.b32.xlu2 %v5650_v62, %s5220_s23  ;;  %983 = vrot.lane.b32.xlu1 %v956_v63, %s5218_s20  ;;  %v1587_v6 = vpop.permute.xlu0 %1586 }
 0x12f   : > { %981 = vrot.lane.b32.xlu0 %v953_v49, %s5218_s20  ;;  %8249 = vst [vmem:[#allocation17_spill] sm:$0xff] %v5835_v16  ;;  %4589 = vtanh.f32 %v5835_v16 }
 0x130   : > { %v553_v11 = vpop.f32.mrf.mxu0  ;;  %v594_v14 = vpop.f32.mrf.mxu1 }
 0x131   : > { %v595_v17 = vadd.f32 %v594_v14, %v553_v11 }
 0x133   : > { %v661_v25 = vadd.f32 %v660_v52, %v595_v17  ;;  %v666_v36 = vpop.f32.mrf.mxu2 }
 0x134   : > { %v1589_v21 = vpop.permute.xlu1 %1588  ;;  %v5837_v22 = vpop.permute.xlu2 %1853 }
 0x135   : > { %v959_v23 = vpop.f32.mrf.mxu3  ;;  %4259 = vmatmul.msk.f32.gmra.mxu3 %vm899_vm0, %v1585_v28  ;;  %v5846_v32 = vadd.f32 %v5792_v35, %v661_v25  ;;  %v4590_v34 = vpop.eup %4589 }
 0x136   : > { %985 = vrot.lane.b32.xlu2 %v959_v23, %s5218_s20  ;;  %2924 = vrot.lane.b32.xlu1 %v5681_v5, %s5219_s27  ;;  %v1593_v26 = vpop.permute.xlu0 %1592 }
 0x137   : > { %861 = vrot.lane.b32.xlu0 %v4588_v19, %s5219_s27  ;;  %8250 = vst [vmem:[#allocation18_spill] sm:$0xff] %v5846_v32  ;;  %4591 = vtanh.f32 %v5846_v32 }
 0x138   : > { %v556_v29 = vpop.f32.mrf.mxu0  ;;  %v597_v31 = vpop.f32.mrf.mxu1 }
 0x139   : > { %v598_v33 = vadd.f32 %v597_v31, %v556_v29 }
 0x13b   : > { %v664_v42 = vadd.f32 %v663_v18, %v598_v33  ;;  %v669_v56 = vpop.f32.mrf.mxu2 }
 0x13c   : > { %v5848_v28 = vpop.permute.xlu1 %1594  ;;  %v5850_v40 = vpop.permute.xlu2 %1859 }
 0x13d   : > { %8251 = vst [vmem:[#allocation19_spill] sm:$0xff] %v5850_v40  ;;  %4260 = vmatmul.msk.f32.gmra.mxu3 %vm899_vm0, %v1587_v6  ;;  %v5862_v48 = vadd.f32 %v5792_v35, %v664_v42  ;;  %v4592_v51 = vpop.eup %4591  ;;  %v962_v52 = vpop.f32.mrf.mxu3 }
 0x13e   : > { %863 = vrot.lane.b32.xlu1 %v4590_v34, %s5219_s27  ;;  %v5855_v43 = vpop.permute.xlu0 %1849  ;;  %3259 = vrot.lane.b32.xlu2 %v5666_v3, %s5220_s23 }
 0x13f   : > { %2587 = vrot.lane.b32.xlu0 %v5681_v5, %s5218_s20  ;;  %4593 = vtanh.f32 %v5862_v48 }
 0x140   : > { %v559_v44 = vpop.f32.mrf.mxu0  ;;  %v600_v45 = vpop.f32.mrf.mxu1 }
 0x141   : > { %v601_v49 = vadd.f32 %v600_v45, %v559_v44 }
 0x143   : > { %v667_v63 = vadd.f32 %v666_v36, %v601_v49  ;;  %v672_v25 = vpop.f32.mrf.mxu2 }
 0x144   : > { %v5864_v53 = vpop.permute.xlu1 %1851  ;;  %v1920_v55 = vpop.permute.xlu2 %1919 }
 0x145   : > { %4261 = vmatmul.msk.f32.gmra.mxu3 %vm899_vm0, %v1589_v21  ;;  %4274 = vmatmul.msk.f32.vlgmr.msrb.gmra.mxu0 %vm899_vm0, %v1920_v55  ;;  %v5876_v11 = vadd.f32 %v5792_v35, %v667_v63  ;;  %v4594_v17 = vpop.eup %4593 }
 0x146   : > { %865 = vrot.lane.b32.xlu1 %v4592_v51, %s5219_s27  ;;  %v5870_v59 = vpop.permute.xlu0 %1855  ;;  %3261 = vrot.lane.b32.xlu2 %v5681_v5, %s5220_s23 }
 0x147   : > { %8252 = vst [vmem:[#allocation20_spill] sm:$0xff] %v5870_v59  ;;  %987 = vrot.lane.b32.xlu0 %v962_v52, %s5218_s20  ;;  %4595 = vtanh.f32 %v5876_v11 }
 0x148   : > { %v562_v4 = vpop.f32.mrf.mxu0  ;;  %v603_v6 = vpop.f32.mrf.mxu1  ;;  %8253 = vst [vmem:[#allocation21_spill] sm:$0xff] %v5876_v11 }
 0x149   : > { %v604_v14 = vadd.f32 %v603_v6, %v562_v4 }
 0x14b   : > { %v670_v23 = vadd.f32 %v669_v56, %v604_v14 }
 0x14c   : > { %v5878_v18 = vpop.permute.xlu1 %1857  ;;  %v1930_v19 = vpop.permute.xlu2 %1929 }
 0x14d   : > { %4262 = vmatmul.msk.f32.gmra.mxu3 %vm899_vm0, %v5796_v38  ;;  %4279 = vmatmul.msk.f32.vlgmr.msrb.gmra.mxu1 %vm899_vm0, %v1930_v19  ;;  %v5892_v38 = vadd.f32 %v5792_v35, %v670_v23  ;;  %v4596_v36 = vpop.eup %4595 }
 0x14e   : > { %v5883_v21 = vpop.permute.xlu0 %1861  ;;  %2926 = vrot.lane.b32.xlu1 %v5694_v7, %s5219_s27  ;;  %867 = vrot.lane.b32.xlu2 %v4594_v17, %s5219_s27 }
 0x14f   : > { %2589 = vrot.lane.b32.xlu0 %v5694_v7, %s5218_s20  ;;  %4597 = vtanh.f32 %v5892_v38 }
 0x150   : > { %v565_v29 = vpop.f32.mrf.mxu0  ;;  %v606_v31 = vpop.f32.mrf.mxu1 }
 0x151   : > { %v607_v33 = vadd.f32 %v606_v31, %v565_v29 }
 0x153   : > { %v673_v34 = vadd.f32 %v672_v25, %v607_v33 }
 0x154   : > { %v1922_v42 = vpop.permute.xlu1 %1921  ;;  %v1932_v44 = vpop.permute.xlu2 %1931 }
 0x155   : > { %4263 = vmatmul.msk.f32.gmra.mxu3 %vm899_vm0, %v1593_v26  ;;  %4275 = vmatmul.msk.f32.gmra.mxu0 %vm899_vm0, %v1922_v42  ;;  %v5897_v45 = vadd.f32 %v5792_v35, %v673_v34  ;;  %v4598_v26 = vpop.eup %4597 }
 0x156   : > { %v1924_v49 = vpop.permute.xlu0 %1923  ;;  %4280 = vmatmul.msk.f32.gmra.mxu1 %vm899_vm0, %v1932_v44  ;;  %2928 = vrot.lane.b32.xlu1 %v5707_v9, %s5219_s27 }
 0x157   : > { %2591 = vrot.lane.b32.xlu0 %v5707_v9, %s5218_s20  ;;  %4599 = vtanh.f32 %v5897_v45  ;;  %869 = vrot.lane.b32.xlu2 %v4596_v36, %s5219_s27 }
 0x15c   : > { %v1926_v51 = vpop.permute.xlu1 %1925 }
 0x15d   : > { %v4600_v52 = vpop.eup %4599  ;;  %4264 = vmatmul.msk.f32.gmra.mxu3 %vm899_vm0, %v5848_v28  ;;  %4276 = vmatmul.msk.f32.gmra.mxu0 %vm899_vm0, %v1924_v49  ;;  %v5910_v35 = vpop.permute.xlu2 %973 }
 0x15e   : > { %v1928_v55 = vpop.permute.xlu0 %1927  ;;  %873 = vrot.lane.b32.xlu1 %v4600_v52, %s5219_s27 }
 0x15f   : > { %871 = vrot.lane.b32.xlu0 %v4598_v26, %s5219_s27  ;;  %3263 = vrot.lane.b32.xlu2 %v5694_v7, %s5220_s23 }
 0x164   : > { %v1934_v56 = vpop.permute.xlu1 %1933 }
 0x165   : > { %4265 = vmatmul.msk.f32.gmra.mxu3 %vm899_vm0, %v5812_v47  ;;  %4277 = vmatmul.msk.f32.gmra.mxu0 %vm899_vm0, %v1926_v51  ;;  %v3252_v63 = vpop.permute.xlu2 %3251 }
 0x166   : > { %4281 = vmatmul.msk.f32.gmra.mxu1 %vm899_vm0, %v1934_v56  ;;  %v2578_v28 = vpop.permute.xlu0 %2577 }
 0x167   : > { %4306 = vmatmul.msk.f32.vlgmr.msra.gmra.mxu2 %vm899_vm0, %v2578_v28  ;;  %3265 = vrot.lane.b32.xlu0 %v5707_v9, %s5220_s23 }
 0x16c   : > { %v2915_v4 = vpop.permute.xlu1 %2914 }
 0x16d   : > { %4278 = vmatmul.msk.f32.gmra.mxu0 %vm899_vm0, %v1928_v55  ;;  %4322 = vmatmul.msk.f32.vlgmr.msra.gmra.mxu3 %vm899_vm0, %v2915_v4  ;;  %v3254_v6 = vpop.permute.xlu2 %3253 }
 0x16e   : > { %v2580_v14 = vpop.permute.xlu0 %2579  ;;  %4290 = vmatmul.msk.f32.vlgmr.msra.gmra.mxu1 %vm899_vm0, %v5579_v54 }
 0x16f   : > { %4307 = vmatmul.msk.f32.gmra.mxu2 %vm899_vm0, %v2580_v14 }
 0x174   : > { %v2917_v47 = vpop.permute.xlu1 %2916 }
 0x175   : > { %4323 = vmatmul.msk.f32.gmra.mxu3 %vm899_vm0, %v2917_v47  ;;  %4338 = vmatmul.msk.f32.vlgmr.msra.gmra.mxu0 %vm899_vm0, %v3252_v63 }
 0x176   : > { %v2582_v17 = vpop.permute.xlu0 %2581  ;;  %4291 = vmatmul.msk.f32.gmra.mxu1 %vm899_vm0, %v5607_v58 }
 0x177   : > { %4308 = vmatmul.msk.f32.gmra.mxu2 %vm899_vm0, %v2582_v17 }
 0x178   : > { %v5933_v19 = vpop.permute.xlu2 %979 }
 0x17c   : > { %v2919_v23 = vpop.permute.xlu1 %2918 }
 0x17d   : > { %4324 = vmatmul.msk.f32.gmra.mxu3 %vm899_vm0, %v2919_v23  ;;  %4339 = vmatmul.msk.f32.gmra.mxu0 %vm899_vm0, %v3254_v6  ;;  %v1294_v6 = vpop.f32.mrf.mxu2 }
 0x17e   : > { %v976_v54 = vpop.permute.xlu0 %975  ;;  %4292 = vmatmul.msk.f32.gmra.mxu1 %vm899_vm0, %v5629_v60 }
 0x17f   : > { %v998_v4 = vadd.f32 %v976_v54, %v5823_v57 }
 0x180   : > { %v3256_v25 = vpop.permute.xlu2 %3255 }
 0x181   : > { %v4235_v47 = vmul.f32 -1.442695, %v998_v4 }
 0x183   : > { %4601 = vpow2.f32 %v4235_v47 }
 0x185   : > { %4340 = vmatmul.msk.f32.gmra.mxu0 %vm899_vm0, %v3256_v25  ;;  %v997_v25 = vadd.f32 %v5910_v35, %v5802_v39 }
 0x186   : > { %v2584_v29 = vpop.permute.xlu0 %2583  ;;  %4293 = vmatmul.msk.f32.gmra.mxu1 %vm899_vm0, %v5650_v62 }
 0x187   : > { %4309 = vmatmul.msk.f32.gmra.mxu2 %vm899_vm0, %v2584_v29  ;;  %v1297_v29 = vpop.f32.mrf.mxu2 }
 0x188   : > { %v3258_v58 = vpop.permute.xlu2 %3257  ;;  %v978_v31 = vpop.permute.xlu1 %977 }
 0x18d   : > { %4341 = vmatmul.msk.f32.gmra.mxu0 %vm899_vm0, %v3258_v58  ;;  %v4234_v58 = vmul.f32 -1.442695, %v997_v25 }
 0x18e   : > { %v2586_v33 = vpop.permute.xlu0 %2585  ;;  %4294 = vmatmul.msk.f32.gmra.mxu1 %vm899_vm0, %v5666_v3 }
 0x18f   : > { %4310 = vmatmul.msk.f32.gmra.mxu2 %vm899_vm0, %v2586_v33  ;;  %4603 = vpow2.f32 %v4234_v58 }
 0x190   : > { %v5947_v60 = vpop.permute.xlu2 %985  ;;  %v2921_v34 = vpop.permute.xlu1 %2920 }
 0x191   : > { %4325 = vmatmul.msk.f32.gmra.mxu3 %vm899_vm0, %v2921_v34  ;;  %v4602_v34 = vpop.eup %4601 }
 0x195   : > { %v4604_v35 = vpop.eup %4603 }
 0x196   : > { %4295 = vmatmul.msk.f32.gmra.mxu1 %vm899_vm0, %v5681_v5 }
 0x198   : > { %v2923_v62 = vpop.permute.xlu1 %2922  ;;  %v3260_v36 = vpop.permute.xlu2 %3259 }
 0x199   : > { %v5952_v42 = vpop.permute.xlu0 %859  ;;  %4326 = vmatmul.msk.f32.gmra.mxu3 %vm899_vm0, %v2923_v62  ;;  %4342 = vmatmul.msk.f32.gmra.mxu0 %vm899_vm0, %v3260_v36  ;;  %v999_v62 = vadd.f32 %v978_v31, %v5835_v16  ;;  %v1030_v36 = vadd.f32 1.0, %v4602_v34 }
 0x19b   : > { %4605 = vrcp.f32 %v1030_v36  ;;  %vm1057_vm2 = vweird.f32 %v1030_v36 }
 0x19e   : > { %4296 = vmatmul.msk.f32.gmra.mxu1 %vm899_vm0, %v5694_v7 }
 0x1a0   : > { %v5958_v3 = vpop.permute.xlu1 %983  ;;  %v3262_v44 = vpop.permute.xlu2 %3261 }
 0x1a1   : > { %v5960_v49 = vpop.permute.xlu0 %981  ;;  %4343 = vmatmul.msk.f32.gmra.mxu0 %vm899_vm0, %v3262_v44 }
 0x1a6   : > { %4297 = vmatmul.msk.f32.gmra.mxu1 %vm899_vm0, %v5707_v9 }
 0x1a8   : > { %v2925_v5 = vpop.permute.xlu1 %2924 }
 0x1a9   : > { %v5965_v26 = vpop.permute.xlu0 %861  ;;  %4327 = vmatmul.msk.f32.gmra.mxu3 %vm899_vm0, %v2925_v5  ;;  %v4236_v5 = vmul.f32 -1.442695, %v999_v62  ;;  %v1001_v62 = vadd.f32 %v5960_v49, %v5862_v48 }
 0x1aa   : > { %8254 = vst [vmem:[#allocation22_spill] sm:$0xff] %v5965_v26 }
 0x1ab   : > { %4607 = vpow2.f32 %v4236_v5 }
 0x1b0   : > { %v1631_v51 = vpop.f32.mrf.mxu3  ;;  %v5968_v52 = vpop.permute.xlu1 %863 }
 0x1b1   : > { %8255 = vst [vmem:[#allocation23_spill] sm:$0xff] %v5968_v52  ;;  %v2588_v55 = vpop.permute.xlu0 %2587  ;;  %1663 = vrot.lane.b32.xlu0 %v1631_v51, %s5218_s20  ;;  %v1300_v51 = vpop.f32.mrf.mxu2 }
 0x1b2   : > { %4311 = vmatmul.msk.f32.gmra.mxu2 %vm899_vm0, %v2588_v55 }
 0x1b8   : > { %v5972_v7 = vpop.permute.xlu1 %865  ;;  %v1634_v54 = vpop.f32.mrf.mxu3 }
 0x1b9   : > { %8256 = vst [vmem:[#allocation24_spill] sm:$0xff] %v5972_v7  ;;  %v5974_v56 = vpop.permute.xlu0 %987  ;;  %v1303_v47 = vpop.f32.mrf.mxu2 }
 0x1c0   : > { %v2927_v63 = vpop.permute.xlu1 %2926  ;;  %v1637_v55 = vpop.f32.mrf.mxu3 }
 0x1c1   : > { %v2590_v28 = vpop.permute.xlu0 %2589  ;;  %4328 = vmatmul.msk.f32.gmra.mxu3 %vm899_vm0, %v2927_v63  ;;  %v5990_v63 = vadd.f32 1.0, %v4604_v35  ;;  %v1306_v5 = vpop.f32.mrf.mxu2  ;;  %v1063_v35 = vand.u32 2147483648, %v1030_v36 }
 0x1c2   : > { %v1968_v9 = vpop.f32.mrf.mxu0  ;;  %4312 = vmatmul.msk.f32.gmra.mxu2 %vm899_vm0, %v2590_v28  ;;  %v4606_v28 = vpop.eup %4605 }
 0x1c3   : > { %2000 = vrot.lane.b32.xlu2 %v1968_v9, %s5218_s20  ;;  %v5992_v9 = vpop.permute.xlu2 %867  ;;  %v4608_v31 = vpop.eup %4607  ;;  %4609 = vrcp.f32 %v5990_v63  ;;  %vm1058_vm3 = vweird.f32 %v4606_v28  ;;  %vm1042_vm6 = vweird.f32 %v5990_v63 }
 0x1c4   : > { %8257 = vst [vmem:[#allocation25_spill] sm:$0xff] %v5992_v9  ;;  %vm6018_vm4 = vmor %vm1057_vm2, %vm1058_vm3 }
 0x1c8   : > { %v2929_v14 = vpop.permute.xlu1 %2928  ;;  %v1640_v25 = vpop.f32.mrf.mxu3 }
 0x1c9   : > { %v2592_v17 = vpop.permute.xlu0 %2591  ;;  %4329 = vmatmul.msk.f32.gmra.mxu3 %vm899_vm0, %v2929_v14  ;;  %v1053_v14 = vmul.f32 %v4606_v28, %v1030_v36  ;;  %v6000_v58 = vpop.eup %4609 }
 0x1ca   : > { %v1983_v23 = vpop.f32.mrf.mxu1  ;;  %4313 = vmatmul.msk.f32.gmra.mxu2 %vm899_vm0, %v2592_v17  ;;  %v5998_v17 = vadd.f32 1.0, %v4608_v31  ;;  %vm1043_vm7 = vweird.f32 %v6000_v58 }
 0x1cb   : > { %2010 = vrot.lane.b32.xlu1 %v1983_v23, %s5218_s20  ;;  %v1054_v23 = vsub.f32 1.0, %v1053_v14  ;;  %v6007_v34 = vpop.permute.xlu2 %869  ;;  %v4238_v14 = vmul.f32 -1.442695, %v1001_v62  ;;  %vm6043_vm8 = vmor %vm1042_vm6, %vm1043_vm7 }
 0x1cc   : > { %4611 = vrcp.f32 %v5998_v17  ;;  %8258 = vst [vmem:[#allocation26_spill] sm:$0xff] %v6007_v34  ;;  %v1064_v34 = vor.u32 1.1754944e-38, %v1063_v35  ;;  %vm1072_vm10 = vweird.f32 %v5998_v17 }
 0x1cd   : > { %4613 = vpow2.f32 %v4238_v14  ;;  %v1003_v14 = vadd.f32 %v5947_v60, %v5892_v38 }
 0x1d0   : > { %v1643_v49 = vpop.f32.mrf.mxu3 }
 0x1d1   : > { %v6030_v9 = vpop.permute.xlu0 %871 }
 0x1d2   : > { %v1971_v33 = vpop.f32.mrf.mxu0  ;;  %v6016_v31 = vpop.eup %4611  ;;  %8261 = vst [vmem:[#allocation27_spill] sm:$0xff] %v6030_v9 }
 0x1d3   : > { %2002 = vrot.lane.b32.xlu2 %v1971_v33, %s5218_s20  ;;  %1326 = vrot.lane.b32.xlu1 %v1294_v6, %s5218_s20  ;;  %v1986_v44 = vpop.f32.mrf.mxu1  ;;  %v3264_v62 = vpop.permute.xlu2 %3263  ;;  %vm1073_vm11 = vweird.f32 %v6016_v31 }
 0x1d4   : > { %4344 = vmatmul.msk.f32.gmra.mxu0 %vm899_vm0, %v3264_v62  ;;  %v1078_v62 = vand.u32 2147483648, %v5998_v17  ;;  %vm6066_vm12 = vmor %vm1072_vm10, %vm1073_vm11 }
 0x1da   : > { %v1974_v4 = vpop.f32.mrf.mxu0 }
 0x1db   : > { %2012 = vrot.lane.b32.xlu2 %v1986_v44, %s5218_s20  ;;  %1665 = vrot.lane.b32.xlu1 %v1634_v54, %s5218_s20  ;;  %v1038_v54 = vmul.f32 %v6000_v58, %v5990_v63  ;;  %v1000_v44 = vadd.f32 %v5933_v19, %v5846_v32 }
 0x1e3   : > { %v1989_v6 = vpop.f32.mrf.mxu1  ;;  %1328 = vrot.lane.b32.xlu2 %v1297_v29, %s5218_s20  ;;  %2004 = vrot.lane.b32.xlu1 %v1974_v4, %s5218_s20  ;;  %v1055_v29 = vmul.f32 %v4606_v28, %v1054_v23  ;;  %v1061_v4 = vand.u32 2147483647, %v1030_v36  ;;  %v4237_v23 = vmul.f32 -1.442695, %v1000_v44  ;;  %v1002_v44 = vadd.f32 %v5958_v3, %v5876_v11 }
 0x1e4   : > { %2014 = vrot.lane.b32.xlu0 %v1989_v6, %s5218_s20  ;;  %v1046_v6 = vand.u32 2147483647, %v5990_v63 }
 0x1e5   : > { %vm1062_vm5 = vcmp.eq.f32.partialorder %v1061_v4, 8.507059e+37  ;;  %4615 = vpow2.f32 %v4237_v23  ;;  %v1309_v4 = vpop.f32.mrf.mxu2 }
 0x1e6   : > { %vm1047_vm9 = vcmp.eq.f32.partialorder %v1046_v6, 8.507059e+37 }
 0x1eb   : > { %1667 = vrot.lane.b32.xlu2 %v1637_v55, %s5218_s20  ;;  %1332 = vrot.lane.b32.xlu1 %v1303_v47, %s5218_s20  ;;  %v6005_v33 = vpop.f32.mrf.mxu1  ;;  %v1056_v55 = vadd.f32 %v4606_v28, %v1055_v29  ;;  %v1977_v47 = vpop.f32.mrf.mxu0  ;;  %v1068_v29 = vmul.f32 %v6016_v31, %v5998_v17 }
 0x1ec   : > { %1330 = vrot.lane.b32.xlu0 %v1300_v51, %s5218_s20  ;;  %v1039_v51 = vsub.f32 1.0, %v1038_v54 }
 0x1ed   : > { %v1060_v36 = vsel %vm6018_vm4, %v4606_v28, %v1056_v55  ;;  %v1048_v28 = vand.u32 2147483648, %v5990_v63  ;;  %v1069_v55 = vsub.f32 1.0, %v1068_v29  ;;  %v3266_v63 = vpop.permute.xlu0 %3265 }
 0x1ee   : > { %v1040_v54 = vmul.f32 %v6000_v58, %v1039_v51  ;;  %v1065_v35 = vsel %vm1062_vm5, %v1064_v34, %v1060_v36  ;;  %v4239_v51 = vmul.f32 -1.442695, %v1002_v44  ;;  %v4614_v34 = vpop.eup %4613  ;;  %4345 = vmatmul.msk.f32.gmra.mxu0 %vm899_vm0, %v3266_v63 }
 0x1ef   : > { %v1198_v3 = vmul.f32 %v5704_v8, %v1065_v35  ;;  %v1070_v36 = vmul.f32 %v6016_v31, %v1069_v55  ;;  %v4616_v29 = vpop.eup %4615 }
 0x1f0   : > { %4617 = vpow2.f32 %v4239_v51  ;;  %v6062_v44 = vadd.f32 1.0, %v4616_v29  ;;  %v1079_v51 = vor.u32 1.1754944e-38, %v1078_v62 }
 0x1f2   : > { %vm1087_vm14 = vweird.f32 %v6062_v44 }
 0x1f3   : > { %2006 = vrot.lane.b32.xlu2 %v1977_v47, %s5218_s20  ;;  %1671 = vrot.lane.b32.xlu1 %v1643_v49, %s5218_s20  ;;  %v6024_v19 = vpop.f32.mrf.mxu1  ;;  %v1980_v47 = vpop.f32.mrf.mxu0  ;;  %v1049_v49 = vor.u32 1.1754944e-38, %v1048_v28  ;;  %v1071_v28 = vadd.f32 %v6016_v31, %v1070_v36 }
 0x1f4   : > { %1669 = vrot.lane.b32.xlu0 %v1640_v25, %s5218_s20  ;;  %v1041_v25 = vadd.f32 %v6000_v58, %v1040_v54  ;;  %v1646_v54 = vpop.f32.mrf.mxu3 }
 0x1f6   : > { %v1045_v8 = vsel %vm6043_vm8, %v6000_v58, %v1041_v25  ;;  %v1076_v58 = vand.u32 2147483647, %v5998_v17  ;;  %v1312_v25 = vpop.f32.mrf.mxu2  ;;  %v1075_v17 = vsel %vm6066_vm12, %v6016_v31, %v1071_v28  ;;  %v4240_v31 = vmul.f32 -1.442695, %v1003_v14 }
 0x1f7   : > { %v1050_v35 = vsel %vm1047_vm9, %v1049_v49, %v1045_v8 }
 0x1f8   : > { %v1197_v6 = vmul.f32 %v5735_v10, %v1050_v35  ;;  %vm1077_vm13 = vcmp.eq.f32.partialorder %v1076_v58, 8.507059e+37  ;;  %v1004_v10 = vadd.f32 %v5974_v56, %v5897_v45 }
 0x1f9   : > { %v1080_v49 = vsel %vm1077_vm13, %v1079_v51, %v1075_v17 }
 0x1fa   : > { %v4241_v63 = vmul.f32 -1.442695, %v1004_v10  ;;  %v1093_v10 = vand.u32 2147483648, %v6062_v44 }
 0x1fb   : > { %1334 = vrot.lane.b32.xlu2 %v1306_v5, %s5218_s20  ;;  %1215 = vrot.lane.b32.xlu1 %v1198_v3, %s5220_s23  ;;  %v6049_v23 = vpop.f32.mrf.mxu1  ;;  %v6059_v5 = vadd.f32 1.0, %v4614_v34 }
 0x1fc   : > { %2008 = vrot.lane.b32.xlu0 %v1980_v47, %s5218_s20  ;;  %v4618_v47 = vpop.eup %4617  ;;  %v1649_v29 = vpop.f32.mrf.mxu3 }
 0x1fd   : > { %4619 = vrcp.f32 %v6059_v5  ;;  %v6085_v34 = vadd.f32 1.0, %v4618_v47  ;;  %vm1102_vm15 = vweird.f32 %v6059_v5  ;;  %v1108_v14 = vand.u32 2147483648, %v6059_v5 }
 0x1fe   : > { %4621 = vrcp.f32 %v6062_v44  ;;  %v1315_v58 = vpop.f32.mrf.mxu2 }
 0x1ff   : > { %4623 = vrcp.f32 %v6085_v34  ;;  %vm1117_vm7 = vweird.f32 %v6085_v34 }
 0x200   : > { %4625 = vpow2.f32 %v4241_v63 }
 0x201   : > { %4627 = vpow2.f32 %v4240_v31 }
 0x203   : > { %1673 = vrot.lane.b32.xlu2 %v1646_v54, %s5218_s20  ;;  %1338 = vrot.lane.b32.xlu1 %v1312_v25, %s5218_s20  ;;  %v6075_v3 = vpop.f32.mrf.mxu1  ;;  %v4620_v36 = vpop.eup %4619  ;;  %v1199_v54 = vmul.f32 %v5733_v2, %v1080_v49 }
 0x204   : > { %1213 = vrot.lane.b32.xlu0 %v1197_v6, %s5220_s23  ;;  %v6087_v8 = vpop.eup %4621  ;;  %v1098_v60 = vmul.f32 %v4620_v36, %v6059_v5  ;;  %v1652_v55 = vpop.f32.mrf.mxu3  ;;  %vm1103_vm1 = vweird.f32 %v4620_v36 }
 0x205   : > { %v1083_v62 = vmul.f32 %v6087_v8, %v6062_v44  ;;  %v6098_v2 = vpop.eup %4623  ;;  %vm1088_vm2 = vweird.f32 %v6087_v8  ;;  %vm6118_vm3 = vmor %vm1102_vm15, %vm1103_vm1 }
 0x206   : > { %v1099_v35 = vsub.f32 1.0, %v1098_v60  ;;  %v4626_v25 = vpop.eup %4625  ;;  %v1091_v60 = vand.u32 2147483647, %v6062_v44  ;;  %vm6122_vm4 = vmor %vm1087_vm14, %vm1088_vm2  ;;  %vm1118_vm8 = vweird.f32 %v6098_v2 }
 0x207   : > { %v1084_v28 = vsub.f32 1.0, %v1083_v62  ;;  %v4628_v6 = vpop.eup %4627  ;;  %v6108_v17 = vadd.f32 1.0, %v4626_v25  ;;  %vm6151_vm9 = vmor %vm1117_vm7, %vm1118_vm8 }
 0x208   : > { %v6113_v49 = vadd.f32 1.0, %v4628_v6  ;;  %vm1092_vm6 = vcmp.eq.f32.partialorder %v1091_v60, 8.507059e+37 }
 0x209   : > { %v1085_v47 = vmul.f32 %v6087_v8, %v1084_v28  ;;  %4629 = vrcp.f32 %v6108_v17  ;;  %v1094_v28 = vor.u32 1.1754944e-38, %v1093_v10  ;;  %vm1147_vm11 = vweird.f32 %v6108_v17 }
 0x20a   : > { %4631 = vrcp.f32 %v6113_v49  ;;  %vm1132_vm13 = vweird.f32 %v6113_v49 }
 0x20b   : > { %1217 = vrot.lane.b32.xlu2 %v1199_v54, %s5220_s23  ;;  %2307 = vrot.lane.b32.xlu1 %v6024_v19, %s5218_s20  ;;  %v2285_v56 = vpop.f32.mrf.mxu1  ;;  %v1100_v19 = vmul.f32 %v4620_v36, %v1099_v35  ;;  %v1086_v31 = vadd.f32 %v6087_v8, %v1085_v47 }
 0x20c   : > { %1336 = vrot.lane.b32.xlu0 %v1309_v4, %s5218_s20  ;;  %v1113_v4 = vmul.f32 %v6098_v2, %v6085_v34 }
 0x20d   : > { %v1101_v63 = vadd.f32 %v4620_v36, %v1100_v19  ;;  %v1123_v19 = vand.u32 2147483648, %v6085_v34 }
 0x20e   : > { %v1114_v54 = vsub.f32 1.0, %v1113_v4 }
 0x20f   : > { %v6149_v47 = vpop.eup %4629 }
 0x210   : > { %v1115_v44 = vmul.f32 %v6098_v2, %v1114_v54  ;;  %v1124_v54 = vor.u32 1.1754944e-38, %v1123_v19  ;;  %v1143_v62 = vmul.f32 %v6149_v47, %v6108_v17  ;;  %vm1148_vm12 = vweird.f32 %v6149_v47 }
 0x211   : > { %vm6198_vm15 = vmor %vm1147_vm11, %vm1148_vm12 }
 0x212   : > { %v1116_v6 = vadd.f32 %v6098_v2, %v1115_v44 }
 0x213   : > { %1340 = vrot.lane.b32.xlu2 %v1315_v58, %s5218_s20  ;;  %1677 = vrot.lane.b32.xlu1 %v1652_v55, %s5218_s20  ;;  %v2288_v51 = vpop.f32.mrf.mxu1  ;;  %v1109_v58 = vor.u32 1.1754944e-38, %v1108_v14  ;;  %v1090_v55 = vsel %vm6122_vm4, %v6087_v8, %v1086_v31  ;;  %v1121_v8 = vand.u32 2147483647, %v6085_v34  ;;  %v6155_v14 = vpop.eup %4631 }
 0x214   : > { %1675 = vrot.lane.b32.xlu0 %v1649_v29, %s5218_s20  ;;  %v1106_v29 = vand.u32 2147483647, %v6059_v5  ;;  %v1105_v5 = vsel %vm6118_vm3, %v4620_v36, %v1101_v63  ;;  %v6143_v36 = vpop.f32.mrf.mxu2  ;;  %v1120_v34 = vsel %vm6151_vm9, %v6098_v2, %v1116_v6  ;;  %vm1133_vm14 = vweird.f32 %v6155_v14 }
 0x215   : > { %vm1122_vm10 = vcmp.eq.f32.partialorder %v1121_v8, 8.507059e+37  ;;  %v1151_v8 = vand.u32 2147483647, %v6108_v17  ;;  %vm6202_vm1 = vmor %vm1132_vm13, %vm1133_vm14 }
 0x216   : > { %vm1107_vm5 = vcmp.eq.f32.partialorder %v1106_v29, 8.507059e+37 }
 0x217   : > { %vm1152_vm2 = vcmp.eq.f32.partialorder %v1151_v8, 8.507059e+37 }
 0x21b   : > { %2309 = vrot.lane.b32.xlu2 %v6049_v23, %s5218_s20  ;;  %2313 = vrot.lane.b32.xlu1 %v2285_v56, %s5218_s20  ;;  %v6141_v23 = vpop.f32.mrf.mxu1  ;;  %v1110_v56 = vsel %vm1107_vm5, %v1109_v58, %v1105_v5 }
 0x21c   : > { %2305 = vrot.lane.b32.xlu0 %v6005_v33, %s5218_s20  ;;  %v1095_v33 = vsel %vm1092_vm6, %v1094_v28, %v1090_v55  ;;  %v1201_v63 = vmul.f32 %v5721_v1, %v1110_v56  ;;  %v1144_v28 = vsub.f32 1.0, %v1143_v62  ;;  %v6170_v5 = vpop.f32.mrf.mxu2 }
 0x21d   : > { %v2001_v25 = vpop.permute.xlu2 %2000  ;;  %v1200_v29 = vmul.f32 %v5750_v13, %v1095_v33  ;;  %v1128_v13 = vmul.f32 %v6155_v14, %v6113_v49  ;;  %v1138_v33 = vand.u32 2147483648, %v6113_v49 }
 0x21e   : > { %v2024_v4 = vadd.f32 %v2001_v25, %v5802_v39  ;;  %v1145_v55 = vmul.f32 %v6149_v47, %v1144_v28  ;;  %v4218_v28 = vmul.f32 -1.442695, %v5802_v39 }
 0x21f   : > { %v1129_v44 = vsub.f32 1.0, %v1128_v13 }
 0x220   : > { %v4282_v31 = vmul.f32 -1.442695, %v2024_v4  ;;  %v1153_v4 = vand.u32 2147483648, %v6108_v17  ;;  %v1146_v6 = vadd.f32 %v6149_v47, %v1145_v55 }
 0x221   : > { %v1130_v25 = vmul.f32 %v6155_v14, %v1129_v44 }
 0x222   : > { %4633 = vpow2.f32 %v4282_v31  ;;  %v2491_v31 = vld [vmem:[%s5439_s13 + $0x28] sm:$0xff]  ;;  %v1150_v17 = vsel %vm6198_vm15, %v6149_v47, %v1146_v6 }
 0x223   : > { %2315 = vrot.lane.b32.xlu2 %v2288_v51, %s5218_s20  ;;  %1221 = vrot.lane.b32.xlu1 %v1201_v63, %s5220_s23  ;;  %v1664_v60 = vpop.permute.xlu0 %1663  ;;  %v1125_v51 = vsel %vm1122_vm10, %v1124_v54, %v1120_v34  ;;  %v2294_v58 = vpop.f32.mrf.mxu1  ;;  %v2489_v54 = vld [vmem:[%s5439_s13 + $0x8] sm:$0xff] }
 0x224   : > { %1219 = vrot.lane.b32.xlu0 %v1200_v29, %s5220_s23  ;;  %v1687_v1 = vadd.f32 %v1664_v60, %v5802_v39  ;;  %v1202_v2 = vmul.f32 %v5744_v12, %v1125_v51  ;;  %v1131_v60 = vadd.f32 %v6155_v14, %v1130_v25  ;;  %v6206_v62 = vpop.f32.mrf.mxu2  ;;  %v2495_v34 = vld [vmem:[%s5439_s13 + $0x68] sm:$0xff] }
 0x226   : > { %v4266_v35 = vmul.f32 -1.442695, %v1687_v1  ;;  %v1154_v1 = vor.u32 1.1754944e-38, %v1153_v4  ;;  %v1135_v51 = vsel %vm6202_vm1, %v6155_v14, %v1131_v60 }
 0x228   : > { %4635 = vpow2.f32 %v4266_v35  ;;  %v4634_v56 = vpop.eup %4633  ;;  %v1139_v35 = vor.u32 1.1754944e-38, %v1138_v33  ;;  %v1155_v55 = vsel %vm1152_vm2, %v1154_v1, %v1150_v17 }
 0x229   : > { %v6189_v63 = vadd.f32 1.0, %v4634_v56  ;;  %v1204_v14 = vmul.f32 %v5729_v0, %v1155_v55 }
 0x22b   : > { %1223 = vrot.lane.b32.xlu2 %v1202_v2, %s5220_s23  ;;  %2319 = vrot.lane.b32.xlu1 %v2294_v58, %s5218_s20  ;;  %v6222_v58 = vpop.permute.xlu1 %873  ;;  %vm2069_vm5 = vweird.f32 %v6189_v63 }
 0x22c   : > { %2311 = vrot.lane.b32.xlu0 %v6075_v3, %s5218_s20  ;;  %v1136_v3 = vand.u32 2147483647, %v6113_v49  ;;  %8276 = vst [vmem:[#allocation28_spill] sm:$0xff] %v6222_v58  ;;  %v2494_v49 = vld [vmem:[%s5439_s13 + $0x58] sm:$0xff] }
 0x22d   : > { %v2003_v19 = vpop.permute.xlu2 %2002 }
 0x22e   : > { %v2025_v12 = vadd.f32 %v2003_v19, %v5823_v57  ;;  %v4636_v10 = vpop.eup %4635  ;;  %vm1137_vm3 = vcmp.eq.f32.partialorder %v1136_v3, 8.507059e+37  ;;  %v2492_v19 = vld [vmem:[%s5439_s13 + $0x38] sm:$0xff]  ;;  %v6236_v3 = vpop.f32.mrf.mxu2 }
 0x22f   : > { %v6208_v13 = vadd.f32 1.0, %v4636_v10  ;;  %v1140_v47 = vsel %vm1137_vm3, %v1139_v35, %v1135_v51  ;;  %v2490_v35 = vld [vmem:[%s5439_s13 + $0x18] sm:$0xff] }
 0x230   : > { %v4283_v29 = vmul.f32 -1.442695, %v2025_v12  ;;  %v1203_v4 = vmul.f32 %v5758_v15, %v1140_v47 }
 0x231   : > { %vm1732_vm7 = vweird.f32 %v6208_v13 }
 0x232   : > { %4637 = vpow2.f32 %v4283_v29 }
 0x233   : > { %2505 = vrot.lane.b32.xlu2 %v2489_v54, %s5218_s20  ;;  %2509 = vrot.lane.b32.xlu1 %v2491_v31, %s5218_s20  ;;  %4639 = vrcp.f32 %v6189_v63 }
 0x234   : > { %2317 = vrot.lane.b32.xlu0 %v6141_v23, %s5218_s20  ;;  %4641 = vrcp.f32 %v6208_v13 }
 0x235   : > { %v2013_v44 = vpop.permute.xlu2 %2012  ;;  %4643 = vpow2.f32 %v4218_v28 }
 0x236   : > { %v2030_v2 = vadd.f32 %v2013_v44, %v5892_v38 }
 0x238   : > { %v4638_v25 = vpop.eup %4637  ;;  %v4288_v56 = vmul.f32 -1.442695, %v2030_v2 }
 0x239   : > { %v6227_v23 = vadd.f32 1.0, %v4638_v25  ;;  %v6230_v12 = vpop.eup %4639 }
 0x23a   : > { %4645 = vpow2.f32 %v4288_v56  ;;  %v6238_v33 = vpop.eup %4641  ;;  %v2065_v15 = vmul.f32 %v6230_v12, %v6189_v63  ;;  %vm2070_vm4 = vweird.f32 %v6230_v12 }
 0x23b   : > { %2511 = vrot.lane.b32.xlu2 %v2492_v19, %s5218_s20  ;;  %1227 = vrot.lane.b32.xlu1 %v1204_v14, %s5220_s23  ;;  %4647 = vrcp.f32 %v6227_v23  ;;  %v4644_v29 = vpop.eup %4643  ;;  %v1728_v1 = vmul.f32 %v6238_v33, %v6208_v13  ;;  %v2638_v14 = vpop.f32.mrf.mxu2  ;;  %vm6288_vm6 = vmor %vm2069_vm5, %vm2070_vm4  ;;  %vm1733_vm8 = vweird.f32 %v6238_v33  ;;  %vm2084_vm13 = vweird.f32 %v6227_v23 }
 0x23c   : > { %1225 = vrot.lane.b32.xlu0 %v1203_v4, %s5220_s23  ;;  %v2066_v17 = vsub.f32 1.0, %v2065_v15  ;;  %v6250_v51 = vadd.f32 1.0, %v4644_v29  ;;  %v2493_v29 = vld [vmem:[%s5439_s13 + $0x48] sm:$0xff]  ;;  %vm6317_vm10 = vmor %vm1732_vm7, %vm1733_vm8 }
 0x23d   : > { %v1329_v0 = vpop.permute.xlu2 %1328  ;;  %v2011_v6 = vpop.permute.xlu1 %2010  ;;  %v1729_v2 = vsub.f32 1.0, %v1728_v1 }
 0x23e   : > { %v1351_v8 = vadd.f32 %v1329_v0, %v5823_v57  ;;  %v2029_v10 = vadd.f32 %v2011_v6, %v5876_v11  ;;  %v2067_v25 = vmul.f32 %v6230_v12, %v2066_v17  ;;  %v2075_v0 = vand.u32 2147483648, %v6189_v63 }
 0x240   : > { %v4646_v54 = vpop.eup %4645  ;;  %v4251_v31 = vmul.f32 -1.442695, %v1351_v8  ;;  %v4287_v60 = vmul.f32 -1.442695, %v2029_v10  ;;  %v1730_v8 = vmul.f32 %v6238_v33, %v1729_v2  ;;  %v2076_v17 = vor.u32 1.1754944e-38, %v2075_v0 }
 0x241   : > { %v6252_v28 = vpop.eup %4647  ;;  %v6254_v44 = vadd.f32 1.0, %v4646_v54  ;;  %v2068_v54 = vadd.f32 %v6230_v12, %v2067_v25 }
 0x242   : > { %4649 = vpow2.f32 %v4251_v31  ;;  %v2080_v4 = vmul.f32 %v6252_v28, %v6227_v23  ;;  %vm2085_vm12 = vweird.f32 %v6252_v28 }
 0x243   : > { %2517 = vrot.lane.b32.xlu2 %v2495_v34, %s5218_s20  ;;  %2515 = vrot.lane.b32.xlu1 %v2494_v49, %s5218_s20  ;;  %4651 = vpow2.f32 %v4287_v60  ;;  %v4219_v60 = vmul.f32 -1.442695, %v5823_v57  ;;  %v2072_v25 = vsel %vm6288_vm6, %v6230_v12, %v2068_v54  ;;  %vm6350_vm14 = vmor %vm2084_vm13, %vm2085_vm12  ;;  %vm2159_vm1 = vweird.f32 %v6254_v44 }
 0x244   : > { %2507 = vrot.lane.b32.xlu0 %v2490_v35, %s5218_s20  ;;  %4653 = vrcp.f32 %v6250_v51  ;;  %v2081_v49 = vsub.f32 1.0, %v2080_v4  ;;  %v2073_v35 = vand.u32 2147483647, %v6189_v63 }
 0x245   : > { %v1668_v55 = vpop.permute.xlu2 %1667  ;;  %v1327_v47 = vpop.permute.xlu1 %1326  ;;  %4655 = vrcp.f32 %v6254_v44 }
 0x246   : > { %v1689_v56 = vadd.f32 %v1668_v55, %v5835_v16  ;;  %v1350_v19 = vadd.f32 %v1327_v47, %v5802_v39  ;;  %v1731_v47 = vadd.f32 %v6238_v33, %v1730_v8  ;;  %v6311_v8 = vmul.f32 -1.442695, %v5846_v32  ;;  %v2496_v55 = vld [vmem:[%s5439_s13 + $0x78] sm:$0xff] }
 0x247   : > { %vm2074_vm9 = vcmp.eq.f32.partialorder %v2073_v35, 8.507059e+37 }
 0x248   : > { %v4650_v6 = vpop.eup %4649  ;;  %v4250_v15 = vmul.f32 -1.442695, %v1350_v19  ;;  %v4268_v34 = vmul.f32 -1.442695, %v1689_v56  ;;  %v1736_v56 = vand.u32 2147483647, %v6208_v13 }
 0x249   : > { %v6268_v10 = vadd.f32 1.0, %v4650_v6  ;;  %v4652_v31 = vpop.eup %4651  ;;  %v1738_v19 = vand.u32 2147483648, %v6208_v13  ;;  %v2082_v6 = vmul.f32 %v6252_v28, %v2081_v49  ;;  %v1735_v49 = vsel %vm6317_vm10, %v6238_v33, %v1731_v47 }
 0x24a   : > { %v6276_v1 = vadd.f32 1.0, %v4652_v31  ;;  %v6283_v2 = vpop.eup %4653  ;;  %v2641_v31 = vpop.f32.mrf.mxu2  ;;  %vm1737_vm11 = vcmp.eq.f32.partialorder %v1736_v56, 8.507059e+37 }
 0x24b   : > { %4657 = vrcp.f32 %v6268_v10  ;;  %2662 = vrot.lane.b32.xlu2 %v6206_v62, %s5218_s20  ;;  %2660 = vrot.lane.b32.xlu1 %v6170_v5, %s5218_s20  ;;  %v6295_v5 = vpop.eup %4655  ;;  %v1739_v13 = vor.u32 1.1754944e-38, %v1738_v19  ;;  %vm1410_vm4 = vweird.f32 %v6268_v10 }
 0x24c   : > { %4659 = vpow2.f32 %v4250_v15  ;;  %2513 = vrot.lane.b32.xlu0 %v2493_v29, %s5218_s20  ;;  %v6308_v15 = vmul.f32 %v6283_v2, %v6250_v51  ;;  %v2155_v29 = vmul.f32 %v6295_v5, %v6254_v44  ;;  %vm2160_vm2 = vweird.f32 %v6295_v5 }
 0x24d   : > { %4661 = vrcp.f32 %v6276_v1  ;;  %v2007_v63 = vpop.permute.xlu2 %2006  ;;  %v1666_v62 = vpop.permute.xlu1 %1665  ;;  %vm2144_vm3 = vweird.f32 %v6276_v1  ;;  %vm6429_vm10 = vmor %vm2159_vm1, %vm2160_vm2 }
 0x24e   : > { %4663 = vpow2.f32 %v4268_v34  ;;  %v2027_v4 = vadd.f32 %v2007_v63, %v5846_v32  ;;  %v1688_v0 = vadd.f32 %v1666_v62, %v5823_v57  ;;  %v2077_v34 = vsel %vm2074_vm9, %v2076_v17, %v2072_v25 }
 0x24f   : > { %4665 = vpow2.f32 %v4219_v60  ;;  %v2088_v63 = vand.u32 2147483647, %v6227_v23  ;;  %v2090_v62 = vand.u32 2147483648, %v6227_v23  ;;  %v4905_v60 = vld [vmem:[%s5439_s13] sm:$0xff]  ;;  %v1740_v25 = vsel %vm1737_vm11, %v1739_v13, %v1735_v49 }
 0x250   : > { %v4267_v54 = vmul.f32 -1.442695, %v1688_v0  ;;  %v4285_v9 = vmul.f32 -1.442695, %v2027_v4  ;;  %v2083_v0 = vadd.f32 %v6252_v28, %v2082_v6  ;;  %v2184_v47 = vmul.f32 %v4905_v60, %v2077_v34 }
 0x251   : > { %v6326_v35 = vpop.eup %4657  ;;  %v2156_v4 = vsub.f32 1.0, %v2155_v29  ;;  %vm6354_vm15 = vcmp.eq.f32.partialorder %v2088_v63, 8.507059e+37  ;;  %v6360_v49 = vmul.f32 %v5825_v61, %v1740_v25  ;;  %v2163_v61 = vand.u32 2147483647, %v6254_v44 }
 0x252   : > { %v4660_v58 = vpop.eup %4659  ;;  %4667 = vpow2.f32 %v4267_v54  ;;  %v1406_v6 = vmul.f32 %v6326_v35, %v6268_v10  ;;  %v2091_v54 = vor.u32 1.1754944e-38, %v2090_v62  ;;  %v2150_v62 = vand.u32 2147483648, %v6276_v1 }
 0x253   : > { %v6333_v17 = vpop.eup %4661  ;;  %v6335_v33 = vadd.f32 1.0, %v4660_v58  ;;  %2668 = vrot.lane.b32.xlu2 %v2641_v31, %s5218_s20  ;;  %2666 = vrot.lane.b32.xlu1 %v2638_v14, %s5218_s20  ;;  %v2165_v58 = vand.u32 2147483648, %v6254_v44  ;;  %vm6403_vm6 = vcmp.eq.f32.partialorder %v2163_v61, 8.507059e+37  ;;  %vm1411_vm11 = vweird.f32 %v6326_v35 }
 0x254   : > { %v4664_v19 = vpop.eup %4663  ;;  %2519 = vrot.lane.b32.xlu0 %v2496_v55, %s5218_s20  ;;  %v2140_v56 = vmul.f32 %v6333_v17, %v6276_v1  ;;  %v2087_v55 = vsel %vm6350_vm14, %v6252_v28, %v2083_v0  ;;  %v1407_v23 = vsub.f32 1.0, %v1406_v6  ;;  %vm2145_vm5 = vweird.f32 %v6333_v17  ;;  %vm6476_vm1 = vmor %vm1410_vm4, %vm1411_vm11 }
 0x255   : > { %4669 = vrcp.f32 %v6335_v33  ;;  %v1335_v14 = vpop.permute.xlu2 %1334  ;;  %v2005_v12 = vpop.permute.xlu1 %2004  ;;  %v6367_v60 = vadd.f32 1.0, %v4664_v19  ;;  %v6374_v25 = vor.u32 1.1754944e-38, %v2165_v58  ;;  %v6380_v0 = vsel %vm6354_vm15, %v2091_v54, %v2087_v55  ;;  %vm6450_vm14 = vmor %vm2144_vm3, %vm2145_vm5 }
 0x256   : > { %4671 = vpow2.f32 %v4285_v9  ;;  %v2026_v31 = vadd.f32 %v2005_v12, %v5835_v16  ;;  %v2015_v34 = vpop.permute.xlu0 %2014  ;;  %v6365_v13 = vpop.eup %4665  ;;  %v2141_v52 = vsub.f32 1.0, %v2140_v56  ;;  %v2157_v12 = vmul.f32 %v6295_v5, %v2156_v4 }
 0x257   : > { %v2031_v63 = vadd.f32 %v2015_v34, %v5897_v45  ;;  %v1354_v28 = vadd.f32 %v1335_v14, %v5862_v48  ;;  %v1414_v4 = vand.u32 2147483647, %v6268_v10  ;;  %4673 = vrcp.f32 %v6367_v60 }
 0x258   : > { %v4284_v9 = vmul.f32 -1.442695, %v2026_v31  ;;  %v4668_v19 = vpop.eup %4667  ;;  %v2148_v31 = vand.u32 2147483647, %v6276_v1  ;;  %v2142_v6 = vmul.f32 %v6333_v17, %v2141_v52  ;;  %v6392_v14 = vor.u32 1.1754944e-38, %v2150_v62 }
 0x259   : > { %v4289_v56 = vmul.f32 -1.442695, %v2031_v63  ;;  %v6388_v58 = vadd.f32 1.0, %v4668_v19  ;;  %v2158_v55 = vadd.f32 %v6295_v5, %v2157_v12  ;;  %v1416_v63 = vand.u32 2147483648, %v6268_v10 }
 0x25a   : > { %4675 = vpow2.f32 %v4284_v9  ;;  %v1399_v7 = vand.u32 2147483647, %v6335_v33  ;;  %vm6410_vm7 = vcmp.eq.f32.partialorder %v2148_v31, 8.507059e+37  ;;  %v1401_v50 = vand.u32 2147483648, %v6335_v33 }
 0x25b   : > { %v6385_v34 = vpop.eup %4669  ;;  %2200 = vrot.lane.b32.xlu1 %v2184_v47, %s5220_s23  ;;  %4677 = vrcp.f32 %v6388_v58  ;;  %v4254_v47 = vmul.f32 -1.442695, %v1354_v28  ;;  %v2143_v59 = vadd.f32 %v6333_v17, %v2142_v6  ;;  %vm6419_vm8 = vcmp.eq.f32.partialorder %v1414_v4, 8.507059e+37 }
 0x25c   : > { %v4672_v29 = vpop.eup %4671  ;;  %2658 = vrot.lane.b32.xlu0 %v6143_v36, %s5218_s20  ;;  %v1391_v54 = vmul.f32 %v6385_v34, %v6335_v33  ;;  %v1408_v36 = vmul.f32 %v6326_v35, %v1407_v23  ;;  %4679 = vpow2.f32 %v4289_v56  ;;  %vm1396_vm9 = vweird.f32 %v6385_v34  ;;  %v4908_v23 = vld [vmem:[%s5439_s13 + $0x50] sm:$0xff] }
 0x25d   : > { %v1674_v52 = vpop.permute.xlu2 %1673  ;;  %v1333_v62 = vpop.permute.xlu1 %1332  ;;  %v6414_v28 = vadd.f32 1.0, %v4672_v29  ;;  %4681 = vpow2.f32 %v4254_v47  ;;  %v2162_v4 = vsel %vm6429_vm10, %v6295_v5, %v2158_v55  ;;  %vm1395_vm12 = vweird.f32 %v6335_v33 }
 0x25e   : > { %v1353_v9 = vadd.f32 %v1333_v62, %v5846_v32  ;;  %v1331_v26 = vpop.permute.xlu0 %1330  ;;  %v1392_v12 = vsub.f32 1.0, %v1391_v54  ;;  %v6433_v29 = vpop.eup %4673  ;;  %v1409_v6 = vadd.f32 %v6326_v35, %v1408_v36  ;;  %vm6442_vm13 = vcmp.eq.f32.partialorder %v1399_v7, 8.507059e+37  ;;  %vm1397_vm15 = vmor %vm1395_vm12, %vm1396_vm9 }
 0x25f   : > { %v1352_v61 = vadd.f32 %v1331_v26, %v5835_v16  ;;  %v1417_v26 = vor.u32 1.1754944e-38, %v1416_v63  ;;  %4683 = vrcp.f32 %v6414_v28  ;;  %v1402_v7 = vor.u32 1.1754944e-38, %v1401_v50 }
 0x260   : > { %v4253_v56 = vmul.f32 -1.442695, %v1353_v9  ;;  %v1393_v54 = vmul.f32 %v6385_v34, %v1392_v12  ;;  %v4676_v62 = vpop.eup %4675  ;;  %v2147_v1 = vsel %vm6450_vm14, %v6333_v17, %v2143_v59  ;;  %v1692_v36 = vadd.f32 %v1674_v52, %v5876_v11 }
 0x261   : > { %v4252_v9 = vmul.f32 -1.442695, %v1352_v61  ;;  %v6454_v55 = vpop.eup %4677  ;;  %v6457_v63 = vadd.f32 1.0, %v4676_v62  ;;  %v1758_v10 = vmul.f32 %v6433_v29, %v6367_v60  ;;  %v1766_v5 = vand.u32 2147483647, %v6367_v60 }
 0x262   : > { %v1394_v44 = vadd.f32 %v6385_v34, %v1393_v54  ;;  %v4680_v33 = vpop.eup %4679  ;;  %v1743_v47 = vmul.f32 %v6454_v55, %v6388_v58  ;;  %4685 = vpow2.f32 %v4253_v56  ;;  %v2167_v54 = vsel %vm6403_vm6, %v6374_v25, %v2162_v4 }
 0x263   : > { %1887 = vrot.lane.b32.xlu1 %v6360_v49, %s5220_s23  ;;  %4687 = vrcp.f32 %v6457_v63  ;;  %v6481_v59 = vadd.f32 1.0, %v4680_v33  ;;  %v4682_v31 = vpop.eup %4681  ;;  %vm1747_vm2 = vweird.f32 %v6388_v58  ;;  %vm1748_vm4 = vweird.f32 %v6454_v55 }
 0x264   : > { %2664 = vrot.lane.b32.xlu0 %v6236_v3, %s5218_s20  ;;  %v1398_v49 = vsel %vm1397_vm15, %v6385_v34, %v1394_v44  ;;  %v1413_v34 = vsel %vm6476_vm1, %v6326_v35, %v1409_v6  ;;  %v1744_v61 = vsub.f32 1.0, %v1743_v47  ;;  %4689 = vpow2.f32 %v4252_v9  ;;  %vm6562_vm5 = vmor %vm1747_vm2, %vm1748_vm4 }
 0x265   : > { %v6483_v17 = vpop.permute.xlu2 %1217  ;;  %v1672_v52 = vpop.permute.xlu1 %1671  ;;  %v1403_v3 = vsel %vm6442_vm13, %v1402_v7, %v1398_v49  ;;  %4691 = vrcp.f32 %v6481_v59  ;;  %v2152_v35 = vsel %vm6410_vm7, %v6392_v14, %v2147_v1  ;;  %v1751_v6 = vand.u32 2147483647, %v6388_v58  ;;  %v4907_v14 = vld [vmem:[%s5439_s13 + $0x10] sm:$0xff] }
 0x266   : > { %v6492_v56 = vpop.permute.xlu0 %1669  ;;  %v1534_v62 = vmul.f32 %v5787_v30, %v1403_v3  ;;  %v4271_v44 = vmul.f32 -1.442695, %v1692_v36  ;;  %v1418_v19 = vsel %vm6419_vm8, %v1417_v26, %v1413_v34  ;;  %v1745_v25 = vmul.f32 %v6454_v55, %v1744_v61  ;;  %v6507_v4 = vpop.eup %4683  ;;  %v4906_v30 = vld [vmem:[%s5439_s13 + $0x60] sm:$0xff] }
 0x267   : > { %4693 = vpow2.f32 %v6311_v8  ;;  %v2190_v40 = vmul.f32 %v4906_v30, %v2167_v54  ;;  %v2185_v12 = vmul.f32 %v4907_v14, %v6380_v0  ;;  %v1759_v1 = vsub.f32 1.0, %v1758_v10 }
 0x268   : > { %1550 = vrot.lane.b32.xlu2 %v1534_v62, %s5220_s23  ;;  %v4686_v7 = vpop.eup %4685  ;;  %v6515_v33 = vadd.f32 1.0, %v4682_v31  ;;  %v2189_v26 = vmul.f32 %v4908_v23, %v2152_v35  ;;  %v1768_v47 = vand.u32 2147483648, %v6367_v60  ;;  %v1535_v49 = vmul.f32 %v5781_v27, %v1418_v19 }
 0x269   : > { %v6519_v36 = vpop.eup %4687  ;;  %v6521_v8 = vadd.f32 1.0, %v4686_v7  ;;  %vm6526_vm3 = vcmp.eq.f32.partialorder %v1751_v6, 8.507059e+37  ;;  %4695 = vpow2.f32 %v4271_v44  ;;  %v1746_v34 = vadd.f32 %v6454_v55, %v1745_v25 }
 0x26a   : > { %v4690_v50 = vpop.eup %4689  ;;  %v2095_v3 = vmul.f32 %v6519_v36, %v6457_v63  ;;  %v6539_v27 = vmul.f32 %v6507_v4, %v6414_v28  ;;  %v1753_v62 = vand.u32 2147483648, %v6388_v58  ;;  %v1760_v19 = vmul.f32 %v6433_v29, %v1759_v1 }
 0x26b   : > { %2212 = vrot.lane.b32.xlu1 %v2190_v40, %s5220_s23  ;;  %v6535_v10 = vpop.eup %4691  ;;  %4697 = vrcp.f32 %v6521_v8  ;;  %v6542_v61 = vadd.f32 1.0, %v4690_v50  ;;  %v1691_v30 = vadd.f32 %v1672_v52, %v5862_v48  ;;  %v2105_v7 = vand.u32 2147483648, %v6457_v63 }
 0x26c   : > { %2210 = vrot.lane.b32.xlu0 %v2189_v26, %s5220_s23  ;;  %4699 = vrcp.f32 %v6515_v33  ;;  %v2096_v35 = vsub.f32 1.0, %v2095_v3  ;;  %v2170_v6 = vmul.f32 %v6535_v10, %v6481_v59  ;;  %v1750_v1 = vsel %vm6562_vm5, %v6454_v55, %v1746_v34 }
 0x26d   : > { %v6544_v54 = vpop.permute.xlu2 %1340  ;;  %v6546_v31 = vpop.permute.xlu1 %1215  ;;  %4701 = vrcp.f32 %v6542_v61  ;;  %vm2100_vm6 = vweird.f32 %v6519_v36  ;;  %vm1763_vm7 = vweird.f32 %v6433_v29  ;;  %v1754_v58 = vor.u32 1.1754944e-38, %v1753_v62 }
 0x26e   : > { %v2009_v44 = vpop.permute.xlu0 %2008  ;;  %v6553_v25 = vpop.eup %4693  ;;  %v2171_v23 = vsub.f32 1.0, %v2170_v6  ;;  %v2097_v26 = vmul.f32 %v6519_v36, %v2096_v35  ;;  %v2103_v50 = vand.u32 2147483647, %v6457_v63  ;;  %v6575_v3 = vor.u32 1.1754944e-38, %v1768_v47 }
 0x26f   : > { %v2028_v40 = vadd.f32 %v2009_v44, %v5862_v48  ;;  %v4696_v44 = vpop.eup %4695  ;;  %vm2099_vm8 = vweird.f32 %v6457_v63  ;;  %vm1762_vm9 = vweird.f32 %v6367_v60  ;;  %v4270_v35 = vmul.f32 -1.442695, %v1691_v30 }
 0x270   : > { %2202 = vrot.lane.b32.xlu2 %v2185_v12, %s5220_s23  ;;  %v2098_v14 = vadd.f32 %v6519_v36, %v2097_v26  ;;  %v2172_v55 = vmul.f32 %v6535_v10, %v2171_v23  ;;  %v1690_v12 = vadd.f32 %v6492_v56, %v5846_v32  ;;  %v1755_v47 = vsel %vm6526_vm3, %v1754_v58, %v1750_v1  ;;  %vm6590_vm10 = vmor %vm2099_vm8, %vm2100_vm6 }
 0x271   : > { %v4286_v52 = vmul.f32 -1.442695, %v2028_v40  ;;  %v6582_v34 = vpop.eup %4697  ;;  %v2106_v63 = vor.u32 1.1754944e-38, %v2105_v7  ;;  %v2180_v0 = vand.u32 2147483648, %v6481_v59  ;;  %v6603_v1 = vadd.f32 1.0, %v4696_v44  ;;  %vm6644_vm3 = vmor %vm1762_vm9, %vm1763_vm7 }
 0x272   : > { %v6594_v40 = vpop.eup %4699  ;;  %v1436_v23 = vmul.f32 %v6582_v34, %v6521_v8  ;;  %v2102_v56 = vsel %vm6590_vm10, %v6519_v36, %v2098_v14  ;;  %vm2104_vm11 = vcmp.eq.f32.partialorder %v2103_v50, 8.507059e+37  ;;  %v2173_v7 = vadd.f32 %v6535_v10, %v2172_v55 }
 0x273   : > { %4703 = vpow2.f32 %v4286_v52  ;;  %v4702_v30 = vpop.eup %4701  ;;  %vm2175_vm12 = vweird.f32 %v6535_v10  ;;  %v2107_v14 = vsel %vm2104_vm11, %v2106_v63, %v2102_v56  ;;  %vm6615_vm13 = vcmp.eq.f32.partialorder %v1766_v5, 8.507059e+37  ;;  %v4909_v5 = vld [vmem:[%s5439_s13 + $0x20] sm:$0xff] }
 0x274   : > { %1552 = vrot.lane.b32.xlu0 %v1535_v49, %s5220_s23  ;;  %v1437_v52 = vsub.f32 1.0, %v1436_v23  ;;  %v1421_v49 = vmul.f32 %v4702_v30, %v6542_v61  ;;  %v4269_v50 = vmul.f32 -1.442695, %v1690_v12  ;;  %v1872_v55 = vmul.f32 %v5855_v43, %v1755_v47 }
 0x275   : > { %v2310_v26 = vpop.permute.xlu2 %2309  ;;  %v6605_v58 = vpop.permute.xlu1 %1338  ;;  %vm2174_vm14 = vweird.f32 %v6481_v59  ;;  %v2178_v23 = vand.u32 2147483647, %v6481_v59  ;;  %4705 = vpow2.f32 %v4270_v35  ;;  %v2181_v63 = vor.u32 1.1754944e-38, %v2180_v0 }
 0x276   : > { %v2331_v62 = vadd.f32 %v2310_v26, %v5835_v16  ;;  %v6611_v36 = vpop.permute.xlu0 %1213  ;;  %v1422_v9 = vsub.f32 1.0, %v1421_v49  ;;  %vm6622_vm15 = vmor %vm2174_vm14, %vm2175_vm12  ;;  %v1429_v56 = vand.u32 2147483647, %v6542_v61  ;;  %v2186_v6 = vmul.f32 %v4909_v5, %v2107_v14 }
 0x277   : > { %v2177_v43 = vsel %vm6622_vm15, %v6535_v10, %v2173_v7  ;;  %v1431_v12 = vand.u32 2147483648, %v6542_v61  ;;  %v1761_v59 = vadd.f32 %v6433_v29, %v1760_v19  ;;  %vm1426_vm1 = vweird.f32 %v4702_v30 }
 0x278   : > { %1889 = vrot.lane.b32.xlu2 %v1872_v55, %s5220_s23  ;;  %v4300_v47 = vmul.f32 -1.442695, %v2331_v62  ;;  %v1423_v49 = vmul.f32 %v4702_v30, %v1422_v9  ;;  %v1438_v0 = vmul.f32 %v6582_v34, %v1437_v52  ;;  %4707 = vrcp.f32 %v6603_v1 }
 0x279   : > { %v4704_v35 = vpop.eup %4703  ;;  %v1357_v55 = vadd.f32 %v6544_v54, %v5897_v45  ;;  %vm2179_vm2 = vcmp.eq.f32.partialorder %v2178_v23, 8.507059e+37  ;;  %vm1425_vm4 = vweird.f32 %v6542_v61  ;;  %v1765_v54 = vsel %vm6644_vm3, %v6433_v29, %v1761_v59 }
 0x27a   : > { %v6638_v14 = vadd.f32 1.0, %v4704_v35  ;;  %v2182_v9 = vsel %vm2179_vm2, %v2181_v63, %v2177_v43  ;;  %v1424_v19 = vadd.f32 %v4702_v30, %v1423_v49  ;;  %v6655_v7 = vmul.f32 %v6594_v40, %v6515_v33  ;;  %vm1427_vm5 = vmor %vm1425_vm4, %vm1426_vm1  ;;  %v4910_v63 = vld [vmem:[%s5439_s13 + $0x70] sm:$0xff] }
 0x27b   : > { %vm1430_vm6 = vcmp.eq.f32.partialorder %v1429_v56, 8.507059e+37  ;;  %v4706_v52 = vpop.eup %4705  ;;  %v1439_v23 = vadd.f32 %v6582_v34, %v1438_v0  ;;  %vm1441_vm7 = vweird.f32 %v6582_v34  ;;  %v4257_v29 = vmul.f32 -1.442695, %v1357_v55 }
 0x27c   : > { %2204 = vrot.lane.b32.xlu0 %v2186_v6, %s5220_s23  ;;  %4709 = vrcp.f32 %v6638_v14  ;;  %v1432_v6 = vor.u32 1.1754944e-38, %v1431_v12  ;;  %v1428_v61 = vsel %vm1427_vm5, %v4702_v30, %v1424_v19  ;;  %v2191_v5 = vmul.f32 %v4910_v63, %v2182_v9 }
 0x27d   : > { %v2308_v60 = vpop.permute.xlu1 %2307  ;;  %4711 = vpow2.f32 %v4300_v47  ;;  %v2316_v26 = vpop.permute.xlu2 %2315  ;;  %v1770_v59 = vsel %vm6615_vm13, %v6575_v3, %v1765_v54  ;;  %vm1440_vm8 = vweird.f32 %v6521_v8  ;;  %v1444_v30 = vand.u32 2147483647, %v6521_v8 }
 0x27e   : > { %v1337_v62 = vpop.permute.xlu0 %1336  ;;  %v1433_v43 = vsel %vm1430_vm6, %v1432_v6, %v1428_v61  ;;  %v6669_v35 = vpop.eup %4707  ;;  %v1452_v47 = vsub.f32 1.0, %v6655_v7  ;;  %4713 = vpow2.f32 %v4269_v50  ;;  %vm6675_vm9 = vmor %vm1440_vm8, %vm1441_vm7  ;;  %v1446_v3 = vand.u32 2147483648, %v6521_v8 }
 0x27f   : > { %v1355_v56 = vadd.f32 %v1337_v62, %v5876_v11  ;;  %v1536_v12 = vmul.f32 %v5766_v20, %v1433_v43  ;;  %v8313_v20 = vsub.f32 1.0, %v6539_v27  ;;  %v6683_v0 = vadd.f32 1.0, %v4706_v52 }
 0x280   : > { %2214 = vrot.lane.b32.xlu2 %v2191_v5, %s5220_s23  ;;  %v2334_v55 = vadd.f32 %v2316_v26, %v5876_v11  ;;  %v1873_v50 = vmul.f32 %v5864_v53, %v1770_v59  ;;  %v1443_v10 = vsel %vm6675_vm9, %v6582_v34, %v1439_v23  ;;  %4715 = vpow2.f32 %v4257_v29 }
 0x281   : > { %v2112_v49 = vmul.f32 %v6507_v4, %v8313_v20  ;;  %1554 = vrot.lane.b32.xlu1 %v1536_v12, %s5220_s23  ;;  %v2330_v8 = vadd.f32 %v2308_v60, %v5823_v57  ;;  %v1447_v27 = vor.u32 1.1754944e-38, %v1446_v3  ;;  %v4255_v6 = vmul.f32 -1.442695, %v1355_v56 }
 0x282   : > { %v6691_v9 = vpop.eup %4709  ;;  %vm1445_vm10 = vcmp.eq.f32.partialorder %v1444_v30, 8.507059e+37  ;;  %vm2115_vm11 = vweird.f32 %v6507_v4  ;;  %vm2114_vm12 = vweird.f32 %v6414_v28  ;;  %v2118_v52 = vand.u32 2147483647, %v6414_v28 }
 0x283   : > { %v2113_v19 = vadd.f32 %v6507_v4, %v2112_v49  ;;  %v4712_v54 = vpop.eup %4711  ;;  %v2125_v7 = vmul.f32 %v6691_v9, %v6638_v14  ;;  %v1448_v34 = vsel %vm1445_vm10, %v1447_v27, %v1443_v10  ;;  %v2120_v60 = vand.u32 2147483648, %v6414_v28  ;;  %vm6710_vm13 = vmor %vm2114_vm12, %vm2115_vm11 }
 0x284   : > { %1891 = vrot.lane.b32.xlu0 %v1873_v50, %s5220_s23  ;;  %v8314_v62 = vsub.f32 1.0, %v6308_v15  ;;  %4717 = vrcp.f32 %v6683_v0  ;;  %v1356_v23 = vadd.f32 %v6605_v58, %v5892_v38  ;;  %v4303_v29 = vmul.f32 -1.442695, %v2334_v55  ;;  %v4714_v5 = vpop.eup %4713  ;;  %v4911_v50 = vld [vmem:[%s5439_s13 + $0x30] sm:$0xff] }
 0x285   : > { %v1678_v53 = vpop.permute.xlu1 %1677  ;;  %v6714_v43 = vadd.f32 1.0, %v4712_v54  ;;  %v4299_v28 = vmul.f32 -1.442695, %v2330_v8  ;;  %v1537_v15 = vmul.f32 %v5807_v41, %v1448_v34  ;;  %v2117_v59 = vsel %vm6710_vm13, %v6507_v4, %v2113_v19  ;;  %v6721_v44 = vpop.permute.xlu2 %1223 }
 0x286   : > { %v722_v61 = vmul.f32 %v6283_v2, %v8314_v62  ;;  %v6708_v26 = vpop.permute.xlu0 %1675  ;;  %v2126_v56 = vsub.f32 1.0, %v2125_v7  ;;  %4719 = vpow2.f32 %v4255_v6  ;;  %v2121_v58 = vor.u32 1.1754944e-38, %v2120_v60  ;;  %v4716_v30 = vpop.eup %4715  ;;  %8317 = vst [vmem:[#allocation29_spill] sm:$0xff] %v6721_v44 }
 0x287   : > { %v1453_v12 = vmul.f32 %v6594_v40, %v1452_v47  ;;  %v1694_v3 = vadd.f32 %v1678_v53, %v5897_v45  ;;  %vm2119_vm14 = vcmp.eq.f32.partialorder %v2118_v52, 8.507059e+37  ;;  %vm1456_vm15 = vweird.f32 %v6594_v40 }
 0x288   : > { %1556 = vrot.lane.b32.xlu2 %v1537_v15, %s5220_s23  ;;  %v1459_v41 = vand.u32 2147483647, %v6515_v33  ;;  %v2122_v20 = vsel %vm2119_vm14, %v2121_v58, %v2117_v59  ;;  %vm1455_vm1 = vweird.f32 %v6515_v33  ;;  %v1461_v49 = vand.u32 2147483648, %v6515_v33 }
 0x289   : > { %v1454_v4 = vadd.f32 %v6594_v40, %v1453_v12  ;;  %v6731_v47 = vadd.f32 %v6283_v2, %v722_v61  ;;  %v730_v55 = vand.u32 2147483648, %v6250_v51  ;;  %4721 = vrcp.f32 %v6714_v43  ;;  %vm6736_vm2 = vmor %vm1455_vm1, %vm1456_vm15 }
 0x28a   : > { %v2187_v10 = vmul.f32 %v4911_v50, %v2122_v20  ;;  %v6740_v27 = vpop.eup %4717  ;;  %v6742_v19 = vadd.f32 1.0, %v4714_v5  ;;  %4723 = vpow2.f32 %v4299_v28  ;;  %v1462_v54 = vor.u32 1.1754944e-38, %v1461_v49 }
 0x28b   : > { %v1458_v33 = vsel %vm6736_vm2, %v6594_v40, %v1454_v4  ;;  %v4256_v7 = vmul.f32 -1.442695, %v1356_v23  ;;  %v4273_v6 = vmul.f32 -1.442695, %v1694_v3  ;;  %vm1460_vm3 = vcmp.eq.f32.partialorder %v1459_v41, 8.507059e+37 }
 0x28c   : > { %2206 = vrot.lane.b32.xlu1 %v2187_v10, %s5220_s23  ;;  %v2127_v34 = vmul.f32 %v6691_v9, %v2126_v56  ;;  %v4720_v52 = vpop.eup %4719  ;;  %v6749_v60 = vadd.f32 1.0, %v4716_v30  ;;  %4725 = vpow2.f32 %v4303_v29  ;;  %v1463_v62 = vsel %vm1460_vm3, %v1462_v54, %v1458_v33  ;;  %v4912_v10 = vld [vmem:[%s5439_s13 + $0x40] sm:$0xff] }
 0x28d   : > { %v2314_v53 = vpop.permute.xlu1 %2313  ;;  %vm2130_vm4 = vweird.f32 %v6691_v9  ;;  %v1538_v63 = vmul.f32 %v5794_v37, %v1463_v62  ;;  %vm2129_vm5 = vweird.f32 %v6638_v14  ;;  %vm724_vm6 = vweird.f32 %v6250_v51  ;;  %v6777_v3 = vpop.permute.xlu2 %2505 }
 0x28e   : > { %v2306_v61 = vpop.permute.xlu0 %2305  ;;  %v2128_v23 = vadd.f32 %v6691_v9, %v2127_v34  ;;  %4727 = vrcp.f32 %v6742_v19  ;;  %vm6758_vm7 = vmor %vm2129_vm5, %vm2130_vm4  ;;  %v2133_v29 = vand.u32 2147483647, %v6638_v14  ;;  %v2135_v28 = vand.u32 2147483648, %v6638_v14 }
 0x28f   : > { %v2329_v40 = vadd.f32 %v2306_v61, %v5802_v39  ;;  %v6764_v15 = vpop.eup %4721  ;;  %vm725_vm8 = vweird.f32 %v6283_v2  ;;  %4729 = vpow2.f32 %v4273_v6  ;;  %1558 = vrot.lane.b32.xlu0 %v1538_v63, %s5220_s23  ;;  %v4220_v58 = vmul.f32 -1.442695, %v5835_v16 }
 0x290   : > { %v2132_v59 = vsel %vm6758_vm7, %v6691_v9, %v2128_v23  ;;  %v4724_v56 = vpop.eup %4723  ;;  %4731 = vrcp.f32 %v6749_v60  ;;  %v1693_v14 = vadd.f32 %v6708_v26, %v5892_v38  ;;  %v2136_v12 = vor.u32 1.1754944e-38, %v2135_v28  ;;  %vm6799_vm10 = vmor %vm724_vm6, %vm725_vm8 }
 0x291   : > { %v4298_v37 = vmul.f32 -1.442695, %v2329_v40  ;;  %4733 = vpow2.f32 %v4256_v7  ;;  %v6775_v30 = vadd.f32 1.0, %v4720_v52  ;;  %v2333_v41 = vadd.f32 %v2314_v53, %v5862_v48 }
 0x292   : > { %vm2134_vm9 = vcmp.eq.f32.partialorder %v2133_v29, 8.507059e+37  ;;  %v4726_v20 = vpop.eup %4725  ;;  %v6781_v9 = vadd.f32 1.0, %v6553_v25  ;;  %v1803_v4 = vmul.f32 %v6669_v35, %v6603_v1  ;;  %v728_v26 = vand.u32 2147483647, %v6250_v51 }
 0x293   : > { %4735 = vpow2.f32 %v4298_v37  ;;  %v2137_v49 = vsel %vm2134_vm9, %v2136_v12, %v2132_v59  ;;  %v6786_v50 = vadd.f32 1.0, %v4724_v56  ;;  %v2400_v54 = vmul.f32 %v6764_v15, %v6714_v43 }
 0x294   : > { %v2188_v8 = vmul.f32 %v4912_v10, %v2137_v49  ;;  %v6793_v7 = vpop.eup %4727  ;;  %4737 = vpow2.f32 %v4220_v58  ;;  %v4272_v6 = vmul.f32 -1.442695, %v1693_v14  ;;  %v4302_v52 = vmul.f32 -1.442695, %v2333_v41 }
 0x295   : > { %v6789_v33 = vpop.permute.xlu1 %1221  ;;  %v4730_v34 = vpop.eup %4729  ;;  %4739 = vrcp.f32 %v6775_v30  ;;  %v2401_v62 = vsub.f32 1.0, %v2400_v54  ;;  %v731_v63 = vor.u32 1.1754944e-38, %v730_v55  ;;  %v1804_v40 = vsub.f32 1.0, %v1803_v4 }
 0x296   : > { %8322 = vst [vmem:[#allocation30_spill] sm:$0xff] %v6789_v33  ;;  %v6803_v53 = vpop.permute.xlu0 %1219  ;;  %2208 = vrot.lane.b32.xlu2 %v2188_v8, %s5220_s23  ;;  %v6807_v61 = vpop.eup %4731  ;;  %4741 = vrcp.f32 %v6781_v9  ;;  %v6812_v23 = vadd.f32 1.0, %v4726_v20  ;;  %v727_v29 = vsel %vm6799_vm10, %v6283_v2, %v6731_v47  ;;  %vm729_vm11 = vcmp.eq.f32.partialorder %v728_v26, 8.507059e+37 }
 0x297   : > { %v4734_v5 = vpop.eup %4733  ;;  %4743 = vrcp.f32 %v6786_v50  ;;  %v6821_v37 = vmul.f32 %v6740_v27, %v6683_v0  ;;  %v6823_v51 = vadd.f32 1.0, %v4730_v34  ;;  %v2402_v55 = vmul.f32 %v6764_v15, %v2401_v62 }
 0x298   : > { %4745 = vpow2.f32 %v4272_v6  ;;  %v6828_v59 = vmul.f32 %v6793_v7, %v6742_v19  ;;  %v6834_v47 = vsel %vm729_vm11, %v731_v63, %v727_v29  ;;  %v6837_v58 = vadd.f32 1.0, %v6365_v13  ;;  %v6854_v13 = vpop.permute.xlu2 %2511 }
 0x299   : > { %v4736_v28 = vpop.eup %4735  ;;  %4747 = vpow2.f32 %v4302_v52  ;;  %8325 = vst [vmem:[#allocation31_spill] sm:$0xff] %v6834_v47  ;;  %v1805_v14 = vmul.f32 %v6669_v35, %v1804_v40  ;;  %v6845_v41 = vmul.f32 %v5952_v42, %v6834_v47  ;;  %v6849_v20 = vmul.f32 %v6807_v61, %v6749_v60 }
 0x29a   : > { %v6830_v56 = vadd.f32 1.0, %v4736_v28  ;;  %v6832_v2 = vpop.eup %4737  ;;  %4749 = vrcp.f32 %v6812_v23  ;;  %v6851_v4 = vadd.f32 1.0, %v4734_v5  ;;  %v2403_v8 = vadd.f32 %v6764_v15, %v2402_v55 }
 0x29b   : > { %v6841_v12 = vpop.eup %4739  ;;  %vm2405_vm12 = vweird.f32 %v6764_v15  ;;  %v1774_v25 = vsub.f32 1.0, %v6828_v59  ;;  %v2408_v34 = vand.u32 2147483647, %v6714_v43  ;;  %v2410_v52 = vand.u32 2147483648, %v6714_v43 }
 0x29c   : > { %4751 = vrcp.f32 %v6830_v56  ;;  %v6858_v26 = vpop.eup %4741  ;;  %v6872_v63 = vmul.f32 %v6841_v12, %v6775_v30  ;;  %vm2404_vm13 = vweird.f32 %v6714_v43  ;;  %v1806_v40 = vadd.f32 %v6669_v35, %v1805_v14 }
 0x29d   : > { %v6856_v49 = vpop.permute.xlu1 %2319  ;;  %4753 = vrcp.f32 %v6823_v51  ;;  %v6864_v54 = vpop.eup %4743  ;;  %vm1808_vm14 = vweird.f32 %v6669_v35  ;;  %v1497_v29 = vsub.f32 1.0, %v6849_v20  ;;  %vm6881_vm15 = vmor %vm2404_vm13, %vm2405_vm12  ;;  %v1813_v59 = vand.u32 2147483648, %v6603_v1 }
 0x29e   : > { %v2312_v42 = vpop.permute.xlu0 %2311  ;;  %v4746_v62 = vpop.eup %4745  ;;  %4755 = vrcp.f32 %v6851_v4  ;;  %v2407_v43 = vsel %vm6881_vm15, %v6764_v15, %v2403_v8  ;;  %vm1807_vm1 = vweird.f32 %v6603_v1  ;;  %v1811_v14 = vand.u32 2147483647, %v6603_v1 }
 0x29f   : > { %v2332_v6 = vadd.f32 %v2312_v42, %v5846_v32  ;;  %v4748_v5 = vpop.eup %4747  ;;  %v2385_v20 = vmul.f32 %v6864_v54, %v6786_v50  ;;  %v6895_v10 = vadd.f32 1.0, %v4746_v62  ;;  %vm2409_vm2 = vcmp.eq.f32.partialorder %v2408_v34, 8.507059e+37  ;;  %vm6899_vm3 = vmor %vm1807_vm1, %vm1808_vm14 }
 0x2a0   : > { %v6886_v42 = vpop.eup %4749  ;;  %v2411_v47 = vor.u32 1.1754944e-38, %v2410_v52  ;;  %v6906_v1 = vadd.f32 1.0, %v4748_v5  ;;  %v1810_v62 = vsel %vm6899_vm3, %v6669_v35, %v1806_v40  ;;  %v2380_v16 = vand.u32 2147483648, %v6830_v56  ;;  %v6920_v44 = vpop.permute.xlu2 %2517 }
 0x2a1   : > { %v4301_v28 = vmul.f32 -1.442695, %v2332_v6  ;;  %v1814_v57 = vor.u32 1.1754944e-38, %v1813_v59  ;;  %vm1812_vm4 = vcmp.eq.f32.partialorder %v1811_v14, 8.507059e+37  ;;  %v2386_v8 = vsub.f32 1.0, %v2385_v20 }
 0x2a2   : > { %v4752_v6 = vpop.eup %4751  ;;  %v2412_v34 = vsel %vm2409_vm2, %v2411_v47, %v2407_v43  ;;  %v2445_v47 = vmul.f32 %v6886_v42, %v6812_v23  ;;  %v1775_v40 = vmul.f32 %v6793_v7, %v1774_v25  ;;  %vm2374_vm5 = vweird.f32 %v6830_v56 }
 0x2a3   : > { %4757 = vpow2.f32 %v4301_v28  ;;  %v6903_v15 = vpop.eup %4753  ;;  %v2370_v55 = vmul.f32 %v4752_v6, %v6830_v56  ;;  %v2378_v28 = vand.u32 2147483647, %v6830_v56  ;;  %v1815_v35 = vsel %vm1812_vm4, %v1814_v57, %v1810_v62 }
 0x2a4   : > { %v6914_v5 = vpop.eup %4755  ;;  %v6918_v11 = vmul.f32 %v6903_v15, %v6823_v51  ;;  %vm2375_vm6 = vweird.f32 %v4752_v6  ;;  %vm2389_vm7 = vweird.f32 %v6786_v50  ;;  %v2381_v57 = vor.u32 1.1754944e-38, %v2380_v16 }
 0x2a5   : > { %v2510_v52 = vpop.permute.xlu1 %2509  ;;  %v2371_v32 = vsub.f32 1.0, %v2370_v55  ;;  %vm6929_vm8 = vcmp.eq.f32.partialorder %v2378_v28, 8.507059e+37  ;;  %vm1777_vm9 = vweird.f32 %v6742_v19  ;;  %v1498_v25 = vmul.f32 %v6807_v61, %v1497_v29  ;;  %vm2376_vm11 = vmor %vm2374_vm5, %vm2375_vm6 }
 0x2a6   : > { %v2531_v39 = vmul.f32 %v2510_v52, %v2412_v34  ;;  %v2318_v33 = vpop.permute.xlu0 %2317  ;;  %vm1778_vm10 = vweird.f32 %v6793_v7  ;;  %v1781_v56 = vand.u32 2147483647, %v6742_v19  ;;  %v1783_v62 = vand.u32 2147483648, %v6742_v19 }
 0x2a7   : > { %v2335_v59 = vadd.f32 %v2318_v33, %v5892_v38  ;;  %v2372_v43 = vmul.f32 %v4752_v6, %v2371_v32  ;;  %v1776_v32 = vadd.f32 %v6793_v7, %v1775_v40  ;;  %v1499_v16 = vadd.f32 %v6807_v61, %v1498_v25  ;;  %vm6952_vm14 = vmor %vm1777_vm9, %vm1778_vm10 }
 0x2a8   : > { %2549 = vrot.lane.b32.xlu0 %v2531_v39, %s5220_s23  ;;  %v2387_v39 = vmul.f32 %v6864_v54, %v2386_v8  ;;  %vm1500_vm12 = vweird.f32 %v6749_v60  ;;  %vm1501_vm13 = vweird.f32 %v6807_v61  ;;  %v1504_v40 = vand.u32 2147483647, %v6749_v60 }
 0x2a9   : > { %v4758_v14 = vpop.eup %4757  ;;  %v2373_v33 = vadd.f32 %v4752_v6, %v2372_v43  ;;  %v4304_v34 = vmul.f32 -1.442695, %v2335_v59  ;;  %vm2390_vm15 = vweird.f32 %v6864_v54  ;;  %vm6964_vm1 = vmor %vm1500_vm12, %vm1501_vm13  ;;  %v2446_v20 = vsub.f32 1.0, %v2445_v47 }
 0x2aa   : > { %v6935_v55 = vadd.f32 1.0, %v4758_v14  ;;  %v1876_v14 = vmul.f32 %v5878_v18, %v1815_v35  ;;  %v2388_v25 = vadd.f32 %v6864_v54, %v2387_v39  ;;  %v2393_v18 = vand.u32 2147483647, %v6786_v50  ;;  %vm6989_vm2 = vmor %vm2389_vm7, %vm2390_vm15 }
 0x2ab   : > { %v2377_v52 = vsel %vm2376_vm11, %v4752_v6, %v2373_v33  ;;  %v1506_v6 = vand.u32 2147483648, %v6749_v60  ;;  %v1780_v60 = vsel %vm6952_vm14, %v6793_v7, %v1776_v32  ;;  %v1784_v35 = vor.u32 1.1754944e-38, %v1783_v62  ;;  %v6983_v7 = vpop.permute.xlu2 %2662 }
 0x2ac   : > { %4759 = vrcp.f32 %v6935_v55  ;;  %v2382_v8 = vsel %vm6929_vm8, %v2381_v57, %v2377_v52  ;;  %v2395_v57 = vand.u32 2147483648, %v6786_v50  ;;  %v6980_v47 = vmul.f32 %v6914_v5, %v6851_v4 }
 0x2ad   : > { %v6946_v29 = vpop.permute.xlu1 %1227  ;;  %v2529_v43 = vmul.f32 %v6777_v3, %v2382_v8  ;;  %v1503_v3 = vsel %vm6964_vm1, %v6807_v61, %v1499_v16  ;;  %4761 = vpow2.f32 %v4304_v34  ;;  %v1507_v33 = vor.u32 1.1754944e-38, %v1506_v6 }
 0x2ae   : > { %v6958_v59 = vpop.permute.xlu0 %1225  ;;  %v1834_v39 = vsub.f32 1.0, %v6918_v11  ;;  %vm1782_vm3 = vcmp.eq.f32.partialorder %v1781_v56, 8.507059e+37  ;;  %vm1505_vm4 = vcmp.eq.f32.partialorder %v1504_v40, 8.507059e+37  ;;  %v2392_v32 = vsel %vm6989_vm2, %v6864_v54, %v2388_v25 }
 0x2af   : > { %2545 = vrot.lane.b32.xlu1 %v2529_v43, %s5220_s23  ;;  %v1785_v62 = vsel %vm1782_vm3, %v1784_v35, %v1780_v60  ;;  %v1508_v16 = vsel %vm1505_vm4, %v1507_v33, %v1503_v3  ;;  %v8338_v11 = vsub.f32 1.0, %v6872_v63  ;;  %4763 = vrcp.f32 %v6895_v10 }
 0x2b0   : > { %1897 = vrot.lane.b32.xlu0 %v1876_v14, %s5220_s23  ;;  %v2447_v50 = vmul.f32 %v6886_v42, %v2446_v20  ;;  %v2455_v8 = vand.u32 2147483648, %v6812_v23  ;;  %v2396_v56 = vor.u32 1.1754944e-38, %v2395_v57  ;;  %4765 = vrcp.f32 %v6906_v1 }
 0x2b1   : > { %v1468_v34 = vmul.f32 %v6841_v12, %v8338_v11  ;;  %vm2394_vm5 = vcmp.eq.f32.partialorder %v2393_v18, 8.507059e+37  ;;  %vm1471_vm6 = vweird.f32 %v6841_v12  ;;  %v1874_v40 = vmul.f32 %v5837_v22, %v1785_v62 }
 0x2b2   : > { %v6999_v52 = vpop.eup %4759  ;;  %v2397_v63 = vsel %vm2394_vm5, %v2396_v56, %v2392_v32  ;;  %v1541_v6 = vmul.f32 %v5810_v46, %v1508_v16  ;;  %v1476_v43 = vand.u32 2147483648, %v6775_v30  ;;  %vm1470_vm7 = vweird.f32 %v6775_v30 }
 0x2b3   : > { %v1469_v54 = vadd.f32 %v6841_v12, %v1468_v34  ;;  %v4762_v14 = vpop.eup %4761  ;;  %v2415_v25 = vmul.f32 %v6999_v52, %v6935_v55  ;;  %v1474_v20 = vand.u32 2147483647, %v6775_v30  ;;  %v1835_v57 = vmul.f32 %v6903_v15, %v1834_v39  ;;  %vm7023_vm9 = vmor %vm1470_vm7, %vm1471_vm6 }
 0x2b4   : > { %v2336_v60 = vadd.f32 %v6856_v49, %v5897_v45  ;;  %v2448_v22 = vadd.f32 %v6886_v42, %v2447_v50  ;;  %vm2450_vm8 = vweird.f32 %v6886_v42  ;;  %vm1837_vm10 = vweird.f32 %v6823_v51  ;;  %v7054_v50 = vpop.permute.xlu2 %2668 }
 0x2b5   : > { %v7007_v28 = vpop.permute.xlu1 %2515  ;;  %v1473_v30 = vsel %vm7023_vm9, %v6841_v12, %v1469_v54  ;;  %v1836_v49 = vadd.f32 %v6903_v15, %v1835_v57  ;;  %vm1838_vm11 = vweird.f32 %v6903_v15  ;;  %v7035_v18 = vpop.eup %4763  ;;  %v7037_v35 = vadd.f32 1.0, %v4762_v14 }
 0x2b6   : > { %v2508_v19 = vpop.permute.xlu0 %2507  ;;  %v1477_v33 = vor.u32 1.1754944e-38, %v1476_v43  ;;  %vm7040_vm12 = vmor %vm1837_vm10, %vm1838_vm11  ;;  %v1841_v61 = vand.u32 2147483647, %v6823_v51  ;;  %v1843_v12 = vand.u32 2147483648, %v6823_v51  ;;  %v7046_v32 = vpop.eup %4765  ;;  %v2416_v62 = vsub.f32 1.0, %v2415_v25 }
 0x2b7   : > { %v2530_v46 = vmul.f32 %v2508_v19, %v2397_v63  ;;  %1893 = vrot.lane.b32.xlu1 %v1874_v40, %s5220_s23  ;;  %vm1475_vm13 = vcmp.eq.f32.partialorder %v1474_v20, 8.507059e+37  ;;  %v1840_v16 = vsel %vm7040_vm12, %v6903_v15, %v1836_v49  ;;  %v8343_v11 = vsub.f32 1.0, %v6821_v37 }
 0x2b8   : > { %1564 = vrot.lane.b32.xlu0 %v1541_v6, %s5220_s23  ;;  %v1478_v56 = vsel %vm1475_vm13, %v1477_v33, %v1473_v30  ;;  %v1844_v54 = vor.u32 1.1754944e-38, %v1843_v12  ;;  %vm1792_vm14 = vweird.f32 %v6683_v0  ;;  %vm1793_vm15 = vweird.f32 %v6740_v27 }
 0x2b9   : > { %2547 = vrot.lane.b32.xlu2 %v2530_v46, %s5220_s23  ;;  %v1790_v34 = vmul.f32 %v6740_v27, %v8343_v11  ;;  %vm1842_vm1 = vcmp.eq.f32.partialorder %v1841_v61, 8.507059e+37  ;;  %v1796_v63 = vand.u32 2147483647, %v6683_v0  ;;  %v1798_v40 = vand.u32 2147483648, %v6683_v0  ;;  %vm7067_vm3 = vmor %vm1792_vm14, %vm1793_vm15 }
 0x2ba   : > { %v1818_v37 = vmul.f32 %v7035_v18, %v6895_v10  ;;  %vm2449_vm2 = vweird.f32 %v6812_v23  ;;  %v2453_v15 = vand.u32 2147483647, %v6812_v23  ;;  %v1845_v43 = vsel %vm1842_vm1, %v1844_v54, %v1840_v16 }
 0x2bb   : > { %v1791_v51 = vadd.f32 %v6740_v27, %v1790_v34  ;;  %v4305_v25 = vmul.f32 -1.442695, %v2336_v60  ;;  %vm7073_vm4 = vmor %vm2449_vm2, %vm2450_vm8  ;;  %v1539_v20 = vmul.f32 %v5775_v24, %v1478_v56  ;;  %v1878_v57 = vmul.f32 %v5883_v21, %v1845_v43 }
 0x2bc   : > { %v1482_v3 = vsub.f32 1.0, %v6980_v47  ;;  %v2452_v60 = vsel %vm7073_vm4, %v6886_v42, %v2448_v22  ;;  %v2456_v30 = vor.u32 1.1754944e-38, %v2455_v8  ;;  %v1799_v49 = vor.u32 1.1754944e-38, %v1798_v40  ;;  %v8348_v22 = vld [vmem:[#allocation20_spill] sm:$0xff] }
 0x2bd   : > { %v7065_v6 = vpop.permute.xlu1 %2660  ;;  %v1795_v46 = vsel %vm7067_vm3, %v6740_v27, %v1791_v51  ;;  %4767 = vrcp.f32 %v7037_v35  ;;  %v2430_v24 = vmul.f32 %v7046_v32, %v6906_v1  ;;  %vm1797_vm5 = vcmp.eq.f32.partialorder %v1796_v63, 8.507059e+37  ;;  %v7096_v27 = vpop.f32.mrf.mxu3 }
 0x2be   : > { %v7077_v0 = vpop.permute.xlu0 %2513  ;;  %v2417_v21 = vmul.f32 %v6999_v52, %v2416_v62  ;;  %v1237_v42 = vadd.f32 %v6611_v36, %v6845_v41  ;;  %vm2454_vm6 = vcmp.eq.f32.partialorder %v2453_v15, 8.507059e+37  ;;  %v1800_v23 = vsel %vm1797_vm5, %v1799_v49, %v1795_v46 }
 0x2bf   : > { %1560 = vrot.lane.b32.xlu1 %v1539_v20, %s5220_s23  ;;  %vm2420_vm7 = vweird.f32 %v6999_v52  ;;  %v1819_v47 = vsub.f32 1.0, %v1818_v37  ;;  %4769 = vpow2.f32 %v4305_v25  ;;  %v2457_v8 = vsel %vm2454_vm6, %v2456_v30, %v2452_v60 }
 0x2c0   : > { %1901 = vrot.lane.b32.xlu0 %v1878_v57, %s5220_s23  ;;  %v1875_v33 = vmul.f32 %v8348_v22, %v1800_v23  ;;  %v2418_v61 = vadd.f32 %v6999_v52, %v2417_v21  ;;  %vm2419_vm8 = vweird.f32 %v6935_v55  ;;  %v2423_v12 = vand.u32 2147483647, %v6935_v55  ;;  %v8353_v23 = vld [vmem:[#allocation15_spill] sm:$0xff] }
 0x2c1   : > { %v2425_v62 = vand.u32 2147483648, %v6935_v55  ;;  %v2431_v16 = vsub.f32 1.0, %v2430_v24  ;;  %vm2421_vm9 = vmor %vm2419_vm8, %vm2420_vm7  ;;  %v1483_v41 = vmul.f32 %v6914_v5, %v1482_v3  ;;  %vm1486_vm10 = vweird.f32 %v6914_v5 }
 0x2c2   : > { %v1551_v39 = vpop.permute.xlu2 %1550  ;;  %1895 = vrot.lane.b32.xlu2 %v1875_v33, %s5220_s23  ;;  %4771 = vrcp.f32 %v6837_v58  ;;  %v2534_v11 = vmul.f32 %v7007_v28, %v2457_v8  ;;  %v2422_v56 = vsel %vm2421_vm9, %v6999_v52, %v2418_v61  ;;  %vm2424_vm11 = vcmp.eq.f32.partialorder %v2423_v12, 8.507059e+37 }
 0x2c3   : > { %v7106_v36 = vadd.f32 %v1551_v39, %v1237_v42  ;;  %v2426_v54 = vor.u32 1.1754944e-38, %v2425_v62  ;;  %v7116_v55 = vpop.eup %4767  ;;  %v1484_v63 = vadd.f32 %v6914_v5, %v1483_v41  ;;  %vm1485_vm12 = vweird.f32 %v6851_v4  ;;  %v2644_v41 = vpop.f32.mrf.mxu2 }
 0x2c4   : > { %v1489_v40 = vand.u32 2147483647, %v6851_v4  ;;  %vm7123_vm13 = vmor %vm1485_vm12, %vm1486_vm10  ;;  %v1491_v28 = vand.u32 2147483648, %v6851_v4  ;;  %v1820_v52 = vmul.f32 %v7035_v18, %v1819_v47  ;;  %v765_v14 = vmul.f32 %v6858_v26, %v6781_v9 }
 0x2c5   : > { %v7113_v34 = vpop.permute.xlu1 %2666  ;;  %v2427_v37 = vsel %vm2424_vm11, %v2426_v54, %v2422_v56  ;;  %v4770_v43 = vpop.eup %4769  ;;  %v2432_v25 = vmul.f32 %v7046_v32, %v2431_v16  ;;  %v1488_v20 = vsel %vm7123_vm13, %v6914_v5, %v1484_v63  ;;  %v2460_v57 = vmul.f32 %v7116_v55, %v7037_v35  ;;  %v8354_v54 = vld [vmem:[#allocation19_spill] sm:$0xff] }
 0x2c6   : > { %v7118_v51 = vpop.permute.xlu0 %2519  ;;  %v2532_v19 = vmul.f32 %v6854_v13, %v2427_v37  ;;  %vm1490_vm14 = vcmp.eq.f32.partialorder %v1489_v40, 8.507059e+37  ;;  %v1492_v4 = vor.u32 1.1754944e-38, %v1491_v28  ;;  %v1821_v46 = vadd.f32 %v7035_v18, %v1820_v52  ;;  %v7147_v5 = vpop.f32.mrf.mxu3 }
 0x2c7   : > { %vm1822_vm15 = vweird.f32 %v6895_v10  ;;  %vm1823_vm1 = vweird.f32 %v7035_v18  ;;  %v1826_v13 = vand.u32 2147483647, %v6895_v10  ;;  %v1828_v3 = vand.u32 2147483648, %v6895_v10  ;;  %v7184_v40 = vpop.f32.mrf.mxu0 }
 0x2c8   : > { %2555 = vrot.lane.b32.xlu0 %v2534_v11, %s5220_s23  ;;  %2551 = vrot.lane.b32.xlu1 %v2532_v19, %s5220_s23  ;;  %v7145_v60 = vpop.eup %4771  ;;  %v7149_v30 = vadd.f32 1.0, %v4770_v43  ;;  %vm2435_vm2 = vweird.f32 %v7046_v32  ;;  %v1493_v24 = vsel %vm1490_vm14, %v1492_v4, %v1488_v20  ;;  %vm7154_vm3 = vmor %vm1822_vm15, %vm1823_vm1  ;;  %v2433_v42 = vadd.f32 %v7046_v32, %v2432_v25 }
 0x2c9   : > { %v1540_v47 = vmul.f32 %v8353_v23, %v1493_v24  ;;  %v1825_v10 = vsel %vm7154_vm3, %v7035_v18, %v1821_v46  ;;  %v1829_v8 = vor.u32 1.1754944e-38, %v1828_v3  ;;  %v7164_v22 = vadd.f32 1.0, %v6832_v2  ;;  %v7224_v23 = vld [vmem:[%s5439_s13 + $0x18] sm:$0xff]  ;;  %v8362_v24 = vld [vmem:[#allocation22_spill] sm:$0xff] }
 0x2ca   : > { %v7152_v49 = vpop.permute.xlu2 %2202  ;;  %v766_v33 = vsub.f32 1.0, %v765_v14  ;;  %v2440_v39 = vand.u32 2147483648, %v6906_v1  ;;  %vm1827_vm4 = vcmp.eq.f32.partialorder %v1826_v13, 8.507059e+37  ;;  %v2461_v12 = vsub.f32 1.0, %v2460_v57 }
 0x2cb   : > { %vm2434_vm5 = vweird.f32 %v6906_v1  ;;  %v2438_v62 = vand.u32 2147483647, %v6906_v1  ;;  %1562 = vrot.lane.b32.xlu2 %v1540_v47, %s5220_s23  ;;  %v1830_v18 = vsel %vm1827_vm4, %v1829_v8, %v1825_v10  ;;  %v735_v2 = vmul.f32 %v7145_v60, %v6837_v58  ;;  %v2647_v10 = vpop.f32.mrf.mxu2 }
 0x2cc   : > { %4773 = vrcp.f32 %v7149_v30  ;;  %vm2436_vm6 = vmor %vm2434_vm5, %vm2435_vm2  ;;  %v4222_v11 = vmul.f32 -1.442695, %v5862_v48  ;;  %v1877_v1 = vmul.f32 %v8354_v54, %v1830_v18  ;;  %v767_v63 = vmul.f32 %v6858_v26, %v766_v33 }
 0x2cd   : > { %v7167_v61 = vpop.permute.xlu1 %2200  ;;  %v2437_v56 = vsel %vm2436_vm6, %v7046_v32, %v2433_v42  ;;  %v2441_v37 = vor.u32 1.1754944e-38, %v2440_v39  ;;  %4775 = vrcp.f32 %v7164_v22  ;;  %vm2439_vm7 = vcmp.eq.f32.partialorder %v2438_v62, 8.507059e+37 }
 0x2ce   : > { %v7172_v16 = vpop.permute.xlu0 %2658  ;;  %v2462_v15 = vmul.f32 %v7116_v55, %v2461_v12  ;;  %v736_v28 = vsub.f32 1.0, %v735_v2  ;;  %vm769_vm8 = vweird.f32 %v6781_v9  ;;  %vm770_vm9 = vweird.f32 %v6858_v26  ;;  %v7198_v20 = vpop.f32.mrf.mxu3 }
 0x2cf   : > { %v2442_v52 = vsel %vm2439_vm7, %v2441_v37, %v2437_v56  ;;  %4777 = vpow2.f32 %v4222_v11  ;;  %v768_v25 = vadd.f32 %v6858_v26, %v767_v63  ;;  %v775_v19 = vand.u32 2147483648, %v6781_v9  ;;  %vm7214_vm11 = vmor %vm769_vm8, %vm770_vm9 }
 0x2d0   : > { %2670 = vrot.lane.b32.xlu0 %v2644_v41, %s5218_s20  ;;  %1899 = vrot.lane.b32.xlu1 %v1877_v1, %s5220_s23  ;;  %v2533_v32 = vmul.f32 %v7077_v0, %v2442_v52  ;;  %v773_v4 = vand.u32 2147483647, %v6781_v9  ;;  %v2463_v0 = vadd.f32 %v7116_v55, %v2462_v15  ;;  %vm2465_vm10 = vweird.f32 %v7116_v55  ;;  %v7248_v41 = vpop.f32.mrf.mxu0 }
 0x2d1   : > { %v737_v3 = vmul.f32 %v7145_v60, %v736_v28  ;;  %v2470_v21 = vand.u32 2147483648, %v7037_v35  ;;  %vm2464_vm12 = vweird.f32 %v7037_v35  ;;  %v2468_v9 = vand.u32 2147483647, %v7037_v35  ;;  %v7267_v28 = vld [vmem:[%s5439_s13 + $0x8] sm:$0xff] }
 0x2d2   : > { %v7189_v43 = vpop.permute.xlu2 %1889  ;;  %v7194_v14 = vpop.eup %4773  ;;  %vm739_vm13 = vweird.f32 %v6837_v58  ;;  %vm740_vm14 = vweird.f32 %v7145_v60  ;;  %v776_v47 = vor.u32 1.1754944e-38, %v775_v19  ;;  %vm7232_vm15 = vmor %vm2464_vm12, %vm2465_vm10  ;;  %v745_v39 = vand.u32 2147483648, %v6837_v58 }
 0x2d3   : > { %2553 = vrot.lane.b32.xlu2 %v2533_v32, %s5220_s23  ;;  %v2475_v42 = vmul.f32 %v7194_v14, %v7149_v30  ;;  %v772_v12 = vsel %vm7214_vm11, %v6858_v26, %v768_v25  ;;  %vm774_vm1 = vcmp.eq.f32.partialorder %v773_v4, 8.507059e+37  ;;  %v2467_v35 = vsel %vm7232_vm15, %v7116_v55, %v2463_v0  ;;  %vm7256_vm2 = vmor %vm739_vm13, %vm740_vm14  ;;  %v8361_v25 = vld [vmem:[#allocation24_spill] sm:$0xff]  ;;  %v7281_v0 = vld [vmem:[%s5439_s13 + $0x48] sm:$0xff] }
 0x2d4   : > { %v738_v62 = vadd.f32 %v7145_v60, %v737_v3  ;;  %v743_v18 = vand.u32 2147483647, %v6837_v58  ;;  %v2471_v26 = vor.u32 1.1754944e-38, %v2470_v21  ;;  %vm2469_vm3 = vcmp.eq.f32.partialorder %v2468_v9, 8.507059e+37 }
 0x2d5   : > { %v1888_v57 = vpop.permute.xlu1 %1887  ;;  %v2476_v55 = vsub.f32 1.0, %v2475_v42  ;;  %v7260_v54 = vsel %vm774_vm1, %v776_v47, %v772_v12  ;;  %v746_v15 = vor.u32 1.1754944e-38, %v745_v39  ;;  %vm2480_vm5 = vweird.f32 %v7194_v14  ;;  %v7307_v12 = vld [vmem:[%s5439_s13 + $0x38] sm:$0xff] }
 0x2d6   : > { %v7203_v46 = vadd.f32 %v1888_v57, %v7106_v36  ;;  %v7205_v13 = vpop.permute.xlu0 %2664  ;;  %v7219_v36 = vpop.eup %4775  ;;  %v2472_v37 = vsel %vm2469_vm3, %v2471_v26, %v2467_v35  ;;  %v742_v52 = vsel %vm7256_vm2, %v7145_v60, %v738_v62  ;;  %vm744_vm4 = vcmp.eq.f32.partialorder %v743_v18, 8.507059e+37 }
 0x2d7   : > { %v4778_v33 = vpop.eup %4777  ;;  %v750_v2 = vmul.f32 %v7219_v36, %v7164_v22  ;;  %v7264_v63 = vpop.f32.mrf.mxu3  ;;  %v886_v19 = vmul.f32 %v8361_v25, %v7260_v54  ;;  %v2477_v57 = vmul.f32 %v7194_v14, %v2476_v55  ;;  %v2535_v4 = vmul.f32 %v6920_v44, %v2472_v37 }
 0x2d8   : > { %2844 = vrot.lane.b32.xlu0 %v7224_v23, %s5219_s27  ;;  %2672 = vrot.lane.b32.xlu1 %v2647_v10, %s5218_s20  ;;  %v7262_v1 = vadd.f32 1.0, %v4778_v33  ;;  %v7286_v3 = vsel %vm744_vm4, %v746_v15, %v742_v52  ;;  %v7293_v44 = vpop.f32.mrf.mxu0  ;;  %vm754_vm6 = vweird.f32 %v7164_v22  ;;  %vm755_vm7 = vweird.f32 %v7219_v36 }
 0x2d9   : > { %v751_v32 = vsub.f32 1.0, %v750_v2  ;;  %v1240_v60 = vadd.f32 %v6803_v53, %v886_v19  ;;  %v884_v21 = vmul.f32 %v8362_v24, %v7286_v3  ;;  %v2478_v47 = vadd.f32 %v7194_v14, %v2477_v57  ;;  %vm7319_vm10 = vmor %vm754_vm6, %vm755_vm7  ;;  %v8365_v24 = vld [vmem:[#allocation23_spill] sm:$0xff] }
 0x2da   : > { %v7250_v11 = vpop.permute.xlu2 %2214  ;;  %4779 = vrcp.f32 %v7262_v1  ;;  %v2485_v8 = vand.u32 2147483648, %v7149_v30  ;;  %v760_v33 = vand.u32 2147483648, %v7164_v22  ;;  %vm2479_vm8 = vweird.f32 %v7149_v30 }
 0x2db   : > { %2842 = vrot.lane.b32.xlu2 %v7267_v28, %s5219_s27  ;;  %v752_v42 = vmul.f32 %v7219_v36, %v751_v32  ;;  %v1238_v53 = vadd.f32 %v6546_v31, %v884_v21  ;;  %v2483_v39 = vand.u32 2147483647, %v7149_v30  ;;  %v758_v31 = vand.u32 2147483647, %v7164_v22  ;;  %vm2481_vm9 = vmor %vm2479_vm8, %vm2480_vm5  ;;  %v7329_v32 = vld [vmem:[%s5439_s13 + $0x28] sm:$0xff]  ;;  %v8366_v30 = vld [vmem:[#allocation21_spill] sm:$0xff] }
 0x2dc   : > { %v2482_v56 = vsel %vm2481_vm9, %v7194_v14, %v2478_v47  ;;  %v2486_v55 = vor.u32 1.1754944e-38, %v2485_v8  ;;  %v761_v15 = vor.u32 1.1754944e-38, %v760_v33  ;;  %vm784_vm13 = vweird.f32 %v7262_v1 }
 0x2dd   : > { %v753_v18 = vadd.f32 %v7219_v36, %v752_v42  ;;  %vm2484_vm11 = vcmp.eq.f32.partialorder %v2483_v39, 8.507059e+37  ;;  %vm759_vm12 = vcmp.eq.f32.partialorder %v758_v31, 8.507059e+37  ;;  %v7337_v25 = vpop.permute.xlu1 %2212  ;;  %v4224_v47 = vmul.f32 -1.442695, %v5892_v38 }
 0x2de   : > { %v7271_v58 = vpop.permute.xlu0 %2210  ;;  %v2487_v14 = vsel %vm2484_vm11, %v2486_v55, %v2482_v56  ;;  %v788_v39 = vand.u32 2147483647, %v7262_v1 }
 0x2df   : > { %v2975_v2 = vpop.f32.mrf.mxu3  ;;  %v757_v22 = vsel %vm7319_vm10, %v7219_v36, %v753_v18  ;;  %4781 = vpow2.f32 %v4224_v47 }
 0x2e0   : > { %2850 = vrot.lane.b32.xlu0 %v7281_v0, %s5219_s27  ;;  %2557 = vrot.lane.b32.xlu1 %v2535_v4, %s5220_s23  ;;  %v4780_v62 = vpop.eup %4779  ;;  %v7339_v19 = vsel %vm759_vm12, %v761_v15, %v757_v22  ;;  %vm789_vm1 = vcmp.eq.f32.partialorder %v788_v39, 8.507059e+37 }
 0x2e1   : > { %v780_v52 = vmul.f32 %v4780_v62, %v7262_v1  ;;  %v885_v21 = vmul.f32 %v8365_v24, %v7339_v19  ;;  %vm785_vm14 = vweird.f32 %v4780_v62  ;;  %v8369_v24 = vld [vmem:[#allocation14_spill] sm:$0xff] }
 0x2e2   : > { %v1557_v9 = vpop.permute.xlu2 %1556  ;;  %vm786_vm15 = vmor %vm784_vm13, %vm785_vm14 }
 0x2e3   : > { %v7297_v10 = vadd.f32 %v1557_v9, %v1240_v60  ;;  %2848 = vrot.lane.b32.xlu2 %v7307_v12, %s5219_s27  ;;  %v781_v57 = vsub.f32 1.0, %v780_v52  ;;  %v790_v9 = vand.u32 2147483648, %v7262_v1 }
 0x2e5   : > { %v782_v36 = vmul.f32 %v4780_v62, %v781_v57  ;;  %v791_v31 = vor.u32 1.1754944e-38, %v790_v9  ;;  %v4782_v56 = vpop.eup %4781  ;;  %v8370_v9 = vld [vmem:[#allocation18_spill] sm:$0xff] }
 0x2e6   : > { %v1553_v35 = vpop.permute.xlu0 %1552  ;;  %v7367_v52 = vadd.f32 1.0, %v4782_v56  ;;  %v2685_v47 = vadd.f32 %v7205_v13, %v8370_v9 }
 0x2e7   : > { %v1575_v26 = vadd.f32 %v1553_v35, %v1238_v53  ;;  %v2978_v60 = vpop.f32.mrf.mxu3  ;;  %v783_v33 = vadd.f32 %v4780_v62, %v782_v36 }
 0x2e8   : > { %2999 = vrot.lane.b32.xlu0 %v7198_v20, %s5218_s20  ;;  %2846 = vrot.lane.b32.xlu1 %v7329_v32, %s5219_s27  ;;  %v2536_v20 = vmul.f32 %v7118_v51, %v2487_v14  ;;  %v1239_v51 = vadd.f32 %v6483_v17, %v885_v21  ;;  %v4225_v17 = vmul.f32 -1.442695, %v5897_v45  ;;  %v7373_v14 = vadd.f32 %v7167_v61, %v7203_v46 }
 0x2e9   : > { %v1912_v37 = vadd.f32 %v7189_v43, %v1575_v26  ;;  %v3309_v43 = vpop.f32.mrf.mxu0  ;;  %v787_v26 = vsel %vm786_vm15, %v4780_v62, %v783_v33  ;;  %v2682_v21 = vadd.f32 %v7172_v16, %v8369_v24  ;;  %v4317_v39 = vmul.f32 -1.442695, %v2685_v47 }
 0x2ea   : > { %4783 = vpow2.f32 %v4225_v17  ;;  %vm814_vm2 = vweird.f32 %v7367_v52 }
 0x2eb   : > { %2559 = vrot.lane.b32.xlu2 %v2536_v20, %s5220_s23  ;;  %v4314_v46 = vmul.f32 -1.442695, %v2682_v21 }
 0x2ee   : > { %v2205_v4 = vpop.permute.xlu0 %2204 }
 0x2ef   : > { %v2981_v1 = vpop.f32.mrf.mxu3 }
 0x2f0   : > { %3005 = vrot.lane.b32.xlu0 %v2978_v60, %s5218_s20  ;;  %2995 = vrot.lane.b32.xlu1 %v7096_v27, %s5218_s20  ;;  %v2225_v27 = vadd.f32 %v7152_v49, %v1912_v37  ;;  %v4223_v49 = vmul.f32 -1.442695, %v8366_v30  ;;  %v4784_v62 = vpop.eup %4783  ;;  %v7389_v36 = vpop.permute.xlu2 %2208 }
 0x2f1   : > { %v3312_v53 = vpop.f32.mrf.mxu0  ;;  %v7375_v20 = vadd.f32 1.0, %v4784_v62 }
 0x2f2   : > { %4785 = vpow2.f32 %v4223_v49 }
 0x2f3   : > { %v1555_v42 = vpop.permute.xlu1 %1554  ;;  %2997 = vrot.lane.b32.xlu2 %v7147_v5, %s5218_s20  ;;  %v7360_v5 = vsel %vm789_vm1, %v791_v31, %v787_v26  ;;  %4787 = vrcp.f32 %v7367_v52  ;;  %vm829_vm4 = vweird.f32 %v7375_v20 }
 0x2f4   : > { %v1576_v8 = vadd.f32 %v1555_v42, %v1239_v51  ;;  %4789 = vrcp.f32 %v7375_v20 }
 0x2f6   : > { %v1892_v35 = vpop.permute.xlu0 %1891 }
 0x2f7   : > { %v1913_v18 = vadd.f32 %v1892_v35, %v1576_v8 }
 0x2f8   : > { %3332 = vrot.lane.b32.xlu0 %v7184_v40, %s5218_s20  ;;  %3001 = vrot.lane.b32.xlu1 %v7264_v63, %s5218_s20  ;;  %v8367_v40 = vld [vmem:[#allocation25_spill] sm:$0xff]  ;;  %v8368_v63 = vld [vmem:[#allocation30_spill] sm:$0xff] }
 0x2f9   : > { %v3315_v55 = vpop.f32.mrf.mxu0  ;;  %v2226_v37 = vadd.f32 %v2205_v4, %v1913_v18  ;;  %v887_v15 = vmul.f32 %v8367_v40, %v7360_v5  ;;  %v2984_v4 = vpop.f32.mrf.mxu3  ;;  %v820_v40 = vand.u32 2147483648, %v7367_v52 }
 0x2fb   : > { %3003 = vrot.lane.b32.xlu2 %v2975_v2, %s5218_s20  ;;  %v1241_v22 = vadd.f32 %v8368_v63, %v887_v15 }
 0x2fe   : > { %v7429_v15 = vpop.permute.xlu1 %2206 }
 0x300   : > { %3338 = vrot.lane.b32.xlu0 %v3309_v43, %s5218_s20  ;;  %3007 = vrot.lane.b32.xlu1 %v2981_v1, %s5218_s20  ;;  %v4786_v43 = vpop.eup %4785 }
 0x301   : > { %v1559_v2 = vpop.permute.xlu0 %1558  ;;  %v3318_v60 = vpop.f32.mrf.mxu0  ;;  %v7385_v61 = vadd.f32 1.0, %v4786_v43 }
 0x302   : > { %v7377_v57 = vadd.f32 %v1559_v2, %v1241_v22  ;;  %v7391_v51 = vpop.eup %4787  ;;  %v833_v2 = vand.u32 2147483647, %v7375_v20  ;;  %v8381_v22 = vld [vmem:[#allocation28_spill] sm:$0xff] }
 0x303   : > { %3009 = vrot.lane.b32.xlu2 %v2984_v4, %s5218_s20  ;;  %v7393_v42 = vpop.eup %4789  ;;  %4791 = vrcp.f32 %v7385_v61  ;;  %v810_v16 = vmul.f32 %v7391_v51, %v7367_v52  ;;  %vm815_vm3 = vweird.f32 %v7391_v51  ;;  %v835_v4 = vand.u32 2147483648, %v7375_v20 }
 0x304   : > { %4793 = vpow2.f32 %v4314_v46  ;;  %v825_v8 = vmul.f32 %v7393_v42, %v7375_v20  ;;  %vm830_vm5 = vweird.f32 %v7393_v42  ;;  %vm7439_vm6 = vmor %vm814_vm2, %vm815_vm3  ;;  %v821_v46 = vor.u32 1.1754944e-38, %v820_v40  ;;  %v8380_v40 = vld [vmem:[#allocation27_spill] sm:$0xff] }
 0x305   : > { %v811_v33 = vsub.f32 1.0, %v810_v16  ;;  %4795 = vpow2.f32 %v4317_v39  ;;  %vm7447_vm7 = vmor %vm829_vm4, %vm830_vm5  ;;  %vm7461_vm9 = vcmp.eq.f32.partialorder %v833_v2, 8.507059e+37  ;;  %v836_v39 = vor.u32 1.1754944e-38, %v835_v4 }
 0x306   : > { %v826_v31 = vsub.f32 1.0, %v825_v8  ;;  %vm799_vm10 = vweird.f32 %v7385_v61 }
 0x307   : > { %v812_v13 = vmul.f32 %v7391_v51, %v811_v33 }
 0x308   : > { %3344 = vrot.lane.b32.xlu0 %v3318_v60, %s5218_s20  ;;  %3334 = vrot.lane.b32.xlu1 %v7248_v41, %s5218_s20  ;;  %v7403_v41 = vld [vmem:[%s5439_s13 + $0x68] sm:$0xff] }
 0x309   : > { %v7410_v35 = vpop.eup %4791  ;;  %v3321_v56 = vpop.f32.mrf.mxu0  ;;  %v813_v62 = vadd.f32 %v7391_v51, %v812_v13 }
 0x30a   : > { %v4794_v18 = vpop.eup %4793  ;;  %v795_v26 = vmul.f32 %v7410_v35, %v7385_v61  ;;  %vm800_vm11 = vweird.f32 %v7410_v35 }
 0x30b   : > { %3336 = vrot.lane.b32.xlu2 %v7293_v44, %s5218_s20  ;;  %v7418_v1 = vadd.f32 1.0, %v4794_v18  ;;  %v4796_v43 = vpop.eup %4795  ;;  %v817_v20 = vsel %vm7439_vm6, %v7391_v51, %v813_v62  ;;  %vm7494_vm12 = vmor %vm799_vm10, %vm800_vm11 }
 0x30d   : > { %4797 = vrcp.f32 %v7418_v1  ;;  %vm2727_vm15 = vweird.f32 %v7418_v1 }
 0x310   : > { %2854 = vrot.lane.b32.xlu0 %v7403_v41, %s5219_s27  ;;  %3340 = vrot.lane.b32.xlu1 %v3312_v53, %s5218_s20  ;;  %v827_v53 = vmul.f32 %v7393_v42, %v826_v31 }
 0x312   : > { %v828_v60 = vadd.f32 %v7393_v42, %v827_v53 }
 0x313   : > { %v2548_v44 = vpop.permute.xlu2 %2547  ;;  %3342 = vrot.lane.b32.xlu2 %v3315_v55, %s5218_s20  ;;  %v818_v55 = vand.u32 2147483647, %v7367_v52  ;;  %v7452_v52 = vld [vmem:[%s5439_s13 + $0x58] sm:$0xff]  ;;  %v7475_v31 = vpop.eup %4797 }
 0x314   : > { %v7412_v17 = vadd.f32 %v2548_v44, %v2225_v27  ;;  %v8371_v27 = vld [vmem:[#allocation16_spill] sm:$0xff]  ;;  %v7465_v44 = vadd.f32 1.0, %v4796_v43  ;;  %v832_v51 = vsel %vm7447_vm7, %v7393_v42, %v828_v60  ;;  %v805_v42 = vand.u32 2147483648, %v7385_v61 }
 0x315   : > { %v2683_v49 = vadd.f32 %v7065_v6, %v8371_v27  ;;  %v796_v6 = vsub.f32 1.0, %v795_v26  ;;  %vm819_vm8 = vcmp.eq.f32.partialorder %v818_v55, 8.507059e+37  ;;  %v4920_v26 = vld [vmem:[%s5439_s13 + $0x78] sm:$0xff]  ;;  %vm2728_vm14 = vweird.f32 %v7475_v31 }
 0x316   : > { %v7479_v13 = vsel %vm819_vm8, %v821_v46, %v817_v20  ;;  %vm2729_vm1 = vmor %vm2727_vm15, %vm2728_vm14  ;;  %vm2772_vm4 = vweird.f32 %v7465_v44 }
 0x317   : > { %v4315_v21 = vmul.f32 -1.442695, %v2683_v49  ;;  %v797_v8 = vmul.f32 %v7410_v35, %v796_v6  ;;  %v806_v6 = vor.u32 1.1754944e-38, %v805_v42  ;;  %v8384_v42 = vld [vmem:[#allocation29_spill] sm:$0xff] }
 0x318   : > { %3181 = vrot.lane.b32.xlu0 %v7224_v23, %s5220_s23  ;;  %3346 = vrot.lane.b32.xlu1 %v3321_v56, %s5218_s20  ;;  %v7491_v56 = vsel %vm7461_vm9, %v836_v39, %v832_v51 }
 0x319   : > { %4799 = vpow2.f32 %v4315_v21  ;;  %v890_v2 = vmul.f32 %v8381_v22, %v7491_v56 }
 0x31a   : > { %v2550_v23 = vpop.permute.xlu0 %2549  ;;  %4801 = vrcp.f32 %v7465_v44 }
 0x31b   : > { %v7435_v63 = vadd.f32 %v2550_v23, %v2226_v37  ;;  %2852 = vrot.lane.b32.xlu2 %v7452_v52, %s5219_s27  ;;  %v889_v23 = vmul.f32 %v8380_v40, %v7479_v13  ;;  %v1244_v21 = vadd.f32 %v6946_v29, %v890_v2 }
 0x31c   : > { %v1896_v16 = vpop.permute.xlu2 %1895 }
 0x31d   : > { %v1915_v47 = vadd.f32 %v1896_v16, %v7377_v57  ;;  %v2686_v57 = vadd.f32 %v7113_v34, %v5862_v48  ;;  %v798_v34 = vadd.f32 %v7410_v35, %v797_v8  ;;  %v1243_v4 = vadd.f32 %v6958_v59, %v889_v23  ;;  %v8382_v16 = vld [vmem:[#allocation17_spill] sm:$0xff] }
 0x31e   : > { %v2684_v20 = vadd.f32 %v6983_v7, %v8382_v16  ;;  %v8383_v7 = vld [vmem:[#allocation26_spill] sm:$0xff] }
 0x31f   : > { %v2228_v18 = vadd.f32 %v7389_v36, %v1915_v47  ;;  %v803_v36 = vand.u32 2147483647, %v7385_v61  ;;  %v4318_v62 = vmul.f32 -1.442695, %v2686_v57  ;;  %v4800_v61 = vpop.eup %4799  ;;  %v802_v43 = vsel %vm7494_vm12, %v7410_v35, %v798_v34 }
 0x320   : > { %3187 = vrot.lane.b32.xlu0 %v7281_v0, %s5220_s23  ;;  %2856 = vrot.lane.b32.xlu1 %v4920_v26, %s5219_s27  ;;  %v7514_v37 = vpop.eup %4801  ;;  %v7518_v59 = vadd.f32 1.0, %v4800_v61 }
 0x321   : > { %v2546_v0 = vpop.permute.xlu1 %2545  ;;  %vm804_vm13 = vcmp.eq.f32.partialorder %v803_v36, 8.507059e+37  ;;  %4803 = vpow2.f32 %v4318_v62  ;;  %v2768_v57 = vmul.f32 %v7514_v37, %v7465_v44  ;;  %vm2773_vm3 = vweird.f32 %v7514_v37 }
 0x322   : > { %v1898_v53 = vpop.permute.xlu0 %1897  ;;  %v7485_v49 = vadd.f32 %v2546_v0, %v7373_v14  ;;  %v2723_v14 = vmul.f32 %v7475_v31, %v7418_v1  ;;  %v7522_v8 = vsel %vm804_vm13, %v806_v6, %v802_v43  ;;  %v4316_v0 = vmul.f32 -1.442695, %v2684_v20  ;;  %vm2774_vm5 = vmor %vm2772_vm4, %vm2773_vm3 }
 0x323   : > { %3179 = vrot.lane.b32.xlu2 %v7267_v28, %s5220_s23  ;;  %4805 = vrcp.f32 %v7518_v59  ;;  %v2769_v55 = vsub.f32 1.0, %v2768_v57  ;;  %vm2742_vm8 = vweird.f32 %v7518_v59 }
 0x324   : > { %v2724_v28 = vsub.f32 1.0, %v2723_v14  ;;  %4807 = vpow2.f32 %v4316_v0 }
 0x325   : > { %v1563_v60 = vpop.permute.xlu2 %1562 }
 0x326   : > { %v7512_v46 = vadd.f32 %v1563_v60, %v1243_v4  ;;  %v2725_v39 = vmul.f32 %v7475_v31, %v2724_v28  ;;  %v2770_v4 = vmul.f32 %v7514_v37, %v2769_v55 }
 0x328   : > { %3193 = vrot.lane.b32.xlu0 %v4920_v26, %s5220_s23  ;;  %3183 = vrot.lane.b32.xlu1 %v7329_v32, %s5220_s23  ;;  %v888_v26 = vmul.f32 %v8383_v7, %v7522_v8  ;;  %v4804_v32 = vpop.eup %4803  ;;  %v2771_v20 = vadd.f32 %v7514_v37, %v2770_v4 }
 0x329   : > { %v1894_v35 = vpop.permute.xlu1 %1893  ;;  %v7539_v40 = vadd.f32 1.0, %v4804_v32  ;;  %v4806_v6 = vpop.eup %4805 }
 0x32a   : > { %v1565_v47 = vpop.permute.xlu0 %1564  ;;  %v1914_v29 = vadd.f32 %v1894_v35, %v7297_v10  ;;  %v1242_v10 = vadd.f32 %v8384_v42, %v888_v26  ;;  %v2738_v43 = vmul.f32 %v4806_v6, %v7518_v59  ;;  %v4808_v60 = vpop.eup %4807  ;;  %vm2743_vm7 = vweird.f32 %v4806_v6 }
 0x32b   : > { %v1581_v33 = vadd.f32 %v1565_v47, %v1244_v21  ;;  %3185 = vrot.lane.b32.xlu2 %v7307_v12, %s5220_s23  ;;  %v2733_v12 = vand.u32 2147483648, %v7418_v1  ;;  %4809 = vrcp.f32 %v7539_v40  ;;  %vm2744_vm9 = vmor %vm2742_vm8, %vm2743_vm7  ;;  %vm2787_vm12 = vweird.f32 %v7539_v40 }
 0x32c   : > { %v2227_v51 = vadd.f32 %v7429_v15, %v1914_v29  ;;  %v2726_v15 = vadd.f32 %v7475_v31, %v2725_v39  ;;  %v2739_v29 = vsub.f32 1.0, %v2738_v43  ;;  %v7561_v39 = vadd.f32 1.0, %v4808_v60 }
 0x32d   : > { %v2554_v34 = vpop.permute.xlu2 %2553 }
 0x32e   : > { %v7535_v36 = vadd.f32 %v2554_v34, %v2228_v18  ;;  %v2731_v18 = vand.u32 2147483647, %v7418_v1  ;;  %v2730_v2 = vsel %vm2729_vm1, %v7475_v31, %v2726_v15  ;;  %v2740_v0 = vmul.f32 %v4806_v6, %v2739_v29 }
 0x32f   : > { %4811 = vrcp.f32 %v7561_v39  ;;  %vm2757_vm1 = vweird.f32 %v7561_v39 }
 0x330   : > { %3189 = vrot.lane.b32.xlu1 %v7452_v52, %s5220_s23  ;;  %v2734_v52 = vor.u32 1.1754944e-38, %v2733_v12  ;;  %vm2732_vm2 = vcmp.eq.f32.partialorder %v2731_v18, 8.507059e+37  ;;  %v2741_v15 = vadd.f32 %v4806_v6, %v2740_v0  ;;  %v2746_v12 = vand.u32 2147483647, %v7518_v59 }
 0x331   : > { %v1561_v23 = vpop.permute.xlu1 %1560 }
 0x332   : > { %v1902_v62 = vpop.permute.xlu0 %1901  ;;  %v1579_v14 = vadd.f32 %v1561_v23, %v1242_v10  ;;  %v2735_v1 = vsel %vm2732_vm2, %v2734_v52, %v2730_v2  ;;  %v2748_v23 = vand.u32 2147483648, %v7518_v59  ;;  %vm2747_vm10 = vcmp.eq.f32.partialorder %v2746_v12, 8.507059e+37 }
 0x333   : > { %v1918_v61 = vadd.f32 %v1902_v62, %v1581_v33  ;;  %3191 = vrot.lane.b32.xlu2 %v7403_v41, %s5220_s23  ;;  %v2776_v41 = vand.u32 2147483647, %v7465_v44  ;;  %v4810_v33 = vpop.eup %4809 }
 0x334   : > { %v1916_v22 = vadd.f32 %v1898_v53, %v1579_v14  ;;  %v2778_v53 = vand.u32 2147483648, %v7465_v44  ;;  %v2783_v32 = vmul.f32 %v4810_v33, %v7539_v40  ;;  %v2687_v14 = vadd.f32 %v7054_v50, %v8366_v30 }
 0x335   : > { %v2843_v21 = vpop.permute.xlu2 %2842  ;;  %vm2777_vm6 = vcmp.eq.f32.partialorder %v2776_v41, 8.507059e+37  ;;  %v4812_v62 = vpop.eup %4811  ;;  %v2231_v18 = vadd.f32 %v7250_v11, %v1918_v61  ;;  %v2749_v52 = vor.u32 1.1754944e-38, %v2748_v23  ;;  %vm2788_vm11 = vweird.f32 %v4810_v33 }
 0x336   : > { %v2866_v28 = vmul.f32 %v2843_v21, %v2735_v1  ;;  %v2229_v31 = vadd.f32 %v7271_v58, %v1916_v22  ;;  %v2775_v58 = vsel %vm2774_vm5, %v7514_v37, %v2771_v20  ;;  %v2779_v26 = vor.u32 1.1754944e-38, %v2778_v53  ;;  %vm2789_vm13 = vmor %vm2787_vm12, %vm2788_vm11 }
 0x337   : > { %v2784_v55 = vsub.f32 1.0, %v2783_v32  ;;  %v2745_v22 = vsel %vm2744_vm9, %v4806_v6, %v2741_v15  ;;  %v4319_v1 = vmul.f32 -1.442695, %v2687_v14  ;;  %v2793_v50 = vand.u32 2147483648, %v7539_v40 }
 0x338   : > { %2882 = vrot.lane.b32.xlu1 %v2866_v28, %s5220_s23  ;;  %v2780_v42 = vsel %vm2777_vm6, %v2779_v26, %v2775_v58  ;;  %v2750_v60 = vsel %vm2747_vm10, %v2749_v52, %v2745_v22  ;;  %v2791_v11 = vand.u32 2147483647, %v7539_v40  ;;  %vm2758_vm15 = vweird.f32 %v4812_v62 }
 0x339   : > { %v2785_v2 = vmul.f32 %v4810_v33, %v2784_v55  ;;  %4813 = vpow2.f32 %v4319_v1  ;;  %v2794_v53 = vor.u32 1.1754944e-38, %v2793_v50  ;;  %vm2759_vm2 = vmor %vm2757_vm1, %vm2758_vm15 }
 0x33a   : > { %v2556_v35 = vpop.permute.xlu0 %2555  ;;  %v2552_v57 = vpop.permute.xlu1 %2551  ;;  %vm2792_vm14 = vcmp.eq.f32.partialorder %v2791_v11, 8.507059e+37 }
 0x33b   : > { %v7559_v47 = vadd.f32 %v2556_v35, %v2229_v31  ;;  %v7563_v7 = vadd.f32 %v2552_v57, %v2227_v51  ;;  %v2786_v28 = vadd.f32 %v4810_v33, %v2785_v2 }
 0x33d   : > { %v2849_v44 = vpop.permute.xlu2 %2848  ;;  %v2790_v6 = vsel %vm2789_vm13, %v4810_v33, %v2786_v28 }
 0x33e   : > { %v2869_v10 = vmul.f32 %v2849_v44, %v2780_v42  ;;  %v2795_v41 = vsel %vm2792_vm14, %v2794_v53, %v2790_v6  ;;  %v2763_v42 = vand.u32 2147483648, %v7561_v39 }
 0x33f   : > { %v4814_v0 = vpop.eup %4813 }
 0x340   : > { %2888 = vrot.lane.b32.xlu1 %v2869_v10, %s5220_s23  ;;  %v7593_v15 = vadd.f32 1.0, %v4814_v0  ;;  %v2764_v12 = vor.u32 1.1754944e-38, %v2763_v42 }
 0x342   : > { %v2671_v34 = vpop.permute.xlu0 %2670  ;;  %v1900_v51 = vpop.permute.xlu1 %1899  ;;  %4815 = vrcp.f32 %v7593_v15  ;;  %vm2802_vm5 = vweird.f32 %v7593_v15 }
 0x343   : > { %v1917_v37 = vadd.f32 %v1900_v51, %v7512_v46  ;;  %v2753_v46 = vmul.f32 %v4812_v62, %v7561_v39  ;;  %v2688_v32 = vadd.f32 %v2671_v34, %v5892_v38 }
 0x345   : > { %v2560_v4 = vpop.permute.xlu2 %2559  ;;  %v2754_v61 = vsub.f32 1.0, %v2753_v46  ;;  %v2230_v57 = vadd.f32 %v7337_v25, %v1917_v37  ;;  %v2761_v25 = vand.u32 2147483647, %v7561_v39  ;;  %v4320_v34 = vmul.f32 -1.442695, %v2688_v32 }
 0x346   : > { %v7576_v43 = vadd.f32 %v2560_v4, %v2231_v18 }
 0x347   : > { %v2755_v35 = vmul.f32 %v4812_v62, %v2754_v61  ;;  %vm2762_vm3 = vcmp.eq.f32.partialorder %v2761_v25, 8.507059e+37  ;;  %4817 = vpow2.f32 %v4320_v34 }
 0x349   : > { %v2756_v40 = vadd.f32 %v4812_v62, %v2755_v35 }
 0x34a   : > { %v2845_v21 = vpop.permute.xlu0 %2844  ;;  %v2673_v20 = vpop.permute.xlu1 %2672 }
 0x34b   : > { %v2867_v59 = vmul.f32 %v2845_v21, %v2750_v60  ;;  %v2689_v33 = vadd.f32 %v2673_v20, %v5897_v45  ;;  %v2760_v23 = vsel %vm2759_vm2, %v4812_v62, %v2756_v40  ;;  %v7600_v21 = vpop.eup %4815 }
 0x34c   : > { %v2765_v2 = vsel %vm2762_vm3, %v2764_v12, %v2760_v23  ;;  %v2798_v53 = vmul.f32 %v7600_v21, %v7593_v15  ;;  %vm2803_vm4 = vweird.f32 %v7600_v21 }
 0x34d   : > { %2884 = vrot.lane.b32.xlu2 %v2867_v59, %s5220_s23  ;;  %v2998_v31 = vpop.permute.xlu2 %2997  ;;  %v4321_v37 = vmul.f32 -1.442695, %v2689_v33  ;;  %v4818_v59 = vpop.eup %4817  ;;  %vm7651_vm6 = vmor %vm2802_vm5, %vm2803_vm4 }
 0x34e   : > { %v3020_v10 = vadd.f32 %v2998_v31, %v8371_v27  ;;  %v7606_v35 = vadd.f32 1.0, %v4818_v59  ;;  %v2799_v40 = vsub.f32 1.0, %v2798_v53 }
 0x34f   : > { %4819 = vpow2.f32 %v4321_v37 }
 0x350   : > { %v4331_v18 = vmul.f32 -1.442695, %v3020_v10  ;;  %v2800_v12 = vmul.f32 %v7600_v21, %v2799_v40  ;;  %vm2817_vm11 = vweird.f32 %v7606_v35 }
 0x352   : > { %v2851_v29 = vpop.permute.xlu0 %2850  ;;  %v2558_v26 = vpop.permute.xlu1 %2557  ;;  %4821 = vpow2.f32 %v4331_v18 }
 0x353   : > { %v2870_v58 = vmul.f32 %v2851_v29, %v2795_v41  ;;  %v7585_v44 = vadd.f32 %v2558_v26, %v2230_v57 }
 0x355   : > { %2890 = vrot.lane.b32.xlu2 %v2870_v58, %s5220_s23  ;;  %v3004_v55 = vpop.permute.xlu2 %3003  ;;  %v4820_v50 = vpop.eup %4819 }
 0x356   : > { %v3023_v51 = vadd.f32 %v3004_v55, %v5862_v48  ;;  %v7608_v29 = vadd.f32 1.0, %v4820_v50  ;;  %v2806_v50 = vand.u32 2147483647, %v7593_v15 }
 0x358   : > { %v4334_v39 = vmul.f32 -1.442695, %v3023_v51  ;;  %v4822_v61 = vpop.eup %4821  ;;  %vm2807_vm7 = vcmp.eq.f32.partialorder %v2806_v50, 8.507059e+37 }
 0x359   : > { %v7610_v58 = vadd.f32 1.0, %v4822_v61 }
 0x35a   : > { %v3000_v14 = vpop.permute.xlu0 %2999  ;;  %v2847_v4 = vpop.permute.xlu1 %2846  ;;  %4823 = vpow2.f32 %v4334_v39 }
 0x35b   : > { %v3021_v22 = vadd.f32 %v3000_v14, %v8382_v16  ;;  %v2868_v52 = vmul.f32 %v2847_v4, %v2765_v2 }
 0x35d   : > { %v4332_v46 = vmul.f32 -1.442695, %v3021_v22  ;;  %2886 = vrot.lane.b32.xlu0 %v2868_v52, %s5220_s23  ;;  %v3010_v62 = vpop.permute.xlu2 %3009  ;;  %v2808_v52 = vand.u32 2147483648, %v7593_v15 }
 0x35e   : > { %v3026_v60 = vadd.f32 %v3010_v62, %v5897_v45 }
 0x35f   : > { %4825 = vpow2.f32 %v4332_v46  ;;  %v2809_v53 = vor.u32 1.1754944e-38, %v2808_v52  ;;  %v2821_v52 = vand.u32 2147483647, %v7606_v35 }
 0x360   : > { %v4337_v28 = vmul.f32 -1.442695, %v3026_v60  ;;  %v4824_v41 = vpop.eup %4823  ;;  %v2801_v60 = vadd.f32 %v7600_v21, %v2800_v12 }
 0x361   : > { %v7614_v33 = vadd.f32 1.0, %v4824_v41  ;;  %vm7693_vm13 = vcmp.eq.f32.partialorder %v2821_v52, 8.507059e+37 }
 0x362   : > { %v3006_v1 = vpop.permute.xlu0 %3005  ;;  %v2996_v11 = vpop.permute.xlu1 %2995  ;;  %4827 = vpow2.f32 %v4337_v28 }
 0x363   : > { %v3024_v20 = vadd.f32 %v3006_v1, %v8366_v30  ;;  %v3019_v6 = vadd.f32 %v2996_v11, %v8369_v24 }
 0x365   : > { %v4335_v31 = vmul.f32 -1.442695, %v3024_v20  ;;  %v4330_v57 = vmul.f32 -1.442695, %v3019_v6  ;;  %v3337_v26 = vpop.permute.xlu2 %3336  ;;  %v4826_v0 = vpop.eup %4825 }
 0x366   : > { %v3358_v32 = vadd.f32 %v3337_v26, %v8382_v16  ;;  %v7619_v34 = vadd.f32 1.0, %v4826_v0 }
 0x367   : > { %4829 = vpow2.f32 %v4335_v31 }
 0x368   : > { %4831 = vpow2.f32 %v4330_v57  ;;  %v4348_v10 = vmul.f32 -1.442695, %v3358_v32  ;;  %v4828_v55 = vpop.eup %4827 }
 0x369   : > { %4833 = vrcp.f32 %v7606_v35  ;;  %v7624_v18 = vadd.f32 1.0, %v4828_v55 }
 0x36a   : > { %v3333_v42 = vpop.permute.xlu0 %3332  ;;  %4835 = vrcp.f32 %v7608_v29  ;;  %v3002_v51 = vpop.permute.xlu1 %3001 }
 0x36b   : > { %v3356_v25 = vadd.f32 %v3333_v42, %v8369_v24  ;;  %4837 = vrcp.f32 %v7610_v58  ;;  %v3022_v16 = vadd.f32 %v3002_v51, %v8370_v9 }
 0x36c   : > { %4839 = vpow2.f32 %v4348_v10 }
 0x36d   : > { %v4830_v23 = vpop.eup %4829  ;;  %v4346_v37 = vmul.f32 -1.442695, %v3356_v25  ;;  %4841 = vrcp.f32 %v7614_v33  ;;  %v4333_v22 = vmul.f32 -1.442695, %v3022_v16  ;;  %v3343_v39 = vpop.permute.xlu2 %3342 }
 0x36e   : > { %v4832_v14 = vpop.eup %4831  ;;  %v7631_v4 = vadd.f32 1.0, %v4830_v23  ;;  %v3361_v62 = vadd.f32 %v3343_v39, %v8366_v30 }
 0x36f   : > { %4843 = vpow2.f32 %v4346_v37  ;;  %v7626_v24 = vpop.eup %4833  ;;  %v7629_v2 = vadd.f32 1.0, %v4832_v14 }
 0x370   : > { %4845 = vrcp.f32 %v7619_v34  ;;  %v7634_v46 = vpop.eup %4835  ;;  %v4351_v20 = vmul.f32 -1.442695, %v3361_v62  ;;  %vm2818_vm12 = vweird.f32 %v7626_v24 }
 0x371   : > { %4847 = vpow2.f32 %v4333_v22  ;;  %v7639_v1 = vpop.eup %4837  ;;  %v3068_v32 = vand.u32 2147483647, %v7629_v2  ;;  %v3070_v40 = vand.u32 2147483648, %v7629_v2  ;;  %vm3064_vm8 = vweird.f32 %v7629_v2  ;;  %vm2819_vm1 = vmor %vm2817_vm11, %vm2818_vm12 }
 0x372   : > { %4849 = vrcp.f32 %v7629_v2  ;;  %v3339_v59 = vpop.permute.xlu0 %3338  ;;  %v4840_v28 = vpop.eup %4839  ;;  %vm3080_vm4 = vweird.f32 %v7639_v1  ;;  %vm2832_vm12 = vweird.f32 %v7608_v29 }
 0x373   : > { %4851 = vrcp.f32 %v7624_v18  ;;  %v3359_v11 = vadd.f32 %v3339_v59, %v8370_v9  ;;  %v7646_v30 = vpop.eup %4841  ;;  %v7648_v61 = vadd.f32 1.0, %v4840_v28  ;;  %v3008_v6 = vpop.permute.xlu1 %3007  ;;  %v2805_v9 = vsel %vm7651_vm6, %v7600_v21, %v2801_v60 }
 0x374   : > { %4853 = vrcp.f32 %v7631_v4  ;;  %v3025_v57 = vadd.f32 %v3008_v6, %v5892_v38  ;;  %v2810_v21 = vsel %vm2807_vm7, %v2809_v53, %v2805_v9  ;;  %vm7676_vm9 = vcmp.eq.f32.partialorder %v3068_v32, 8.507059e+37 }
 0x375   : > { %v4844_v41 = vpop.eup %4843  ;;  %4855 = vpow2.f32 %v4351_v20  ;;  %v4349_v15 = vmul.f32 -1.442695, %v3359_v11  ;;  %v2853_v51 = vpop.permute.xlu2 %2852  ;;  %v3071_v39 = vor.u32 1.1754944e-38, %v3070_v40  ;;  %v2813_v28 = vmul.f32 %v7626_v24, %v7606_v35 }
 0x376   : > { %v7659_v26 = vpop.eup %4845  ;;  %4857 = vrcp.f32 %v7648_v61  ;;  %v7662_v0 = vadd.f32 1.0, %v4844_v41  ;;  %v4336_v10 = vmul.f32 -1.442695, %v3025_v57  ;;  %v2871_v16 = vmul.f32 %v2853_v51, %v2810_v21 }
 0x377   : > { %v4848_v42 = vpop.eup %4847  ;;  %4859 = vpow2.f32 %v4349_v15  ;;  %v2823_v20 = vand.u32 2147483648, %v7606_v35  ;;  %v2814_v40 = vsub.f32 1.0, %v2813_v28  ;;  %vm3079_vm6 = vweird.f32 %v7610_v58 }
 0x378   : > { %v4850_v25 = vpop.eup %4849  ;;  %v7666_v55 = vadd.f32 1.0, %v4848_v42  ;;  %4861 = vrcp.f32 %v7662_v0  ;;  %2892 = vrot.lane.b32.xlu0 %v2871_v16, %s5220_s23  ;;  %vm3081_vm7 = vmor %vm3079_vm6, %vm3080_vm4  ;;  %vm3095_vm6 = vweird.f32 %v7659_v26 }
 0x379   : > { %v7669_v23 = vpop.eup %4851  ;;  %4863 = vpow2.f32 %v4336_v10  ;;  %v3060_v37 = vmul.f32 %v4850_v25, %v7629_v2  ;;  %vm3065_vm10 = vweird.f32 %v4850_v25  ;;  %v2824_v21 = vor.u32 1.1754944e-38, %v2823_v20 }
 0x37a   : > { %v7673_v12 = vpop.eup %4853  ;;  %4865 = vrcp.f32 %v7666_v55  ;;  %v3345_v14 = vpop.permute.xlu0 %3344  ;;  %v2815_v52 = vmul.f32 %v7626_v24, %v2814_v40  ;;  %vm3066_vm14 = vmor %vm3064_vm8, %vm3065_vm10  ;;  %vm3109_vm15 = vweird.f32 %v7666_v55 }
 0x37b   : > { %v4856_v62 = vpop.eup %4855  ;;  %v3362_v60 = vadd.f32 %v3345_v14, %v5892_v38  ;;  %v3061_v59 = vsub.f32 1.0, %v3060_v37  ;;  %v3335_v6 = vpop.permute.xlu1 %3334 }
 0x37c   : > { %v7686_v50 = vpop.eup %4857  ;;  %v7688_v11 = vadd.f32 1.0, %v4856_v62  ;;  %v3357_v53 = vadd.f32 %v3335_v6, %v8371_v27  ;;  %v2816_v20 = vadd.f32 %v7626_v24, %v2815_v52 }
 0x37d   : > { %v4860_v31 = vpop.eup %4859  ;;  %v4352_v38 = vmul.f32 -1.442695, %v3362_v60  ;;  %v3062_v41 = vmul.f32 %v4850_v25, %v3061_v59  ;;  %v7701_v15 = vmul.f32 %v7686_v50, %v7648_v61  ;;  %v3180_v14 = vpop.permute.xlu2 %3179  ;;  %v3113_v60 = vand.u32 2147483647, %v7666_v55 }
 0x37e   : > { %v7697_v9 = vpop.eup %4861  ;;  %4867 = vrcp.f32 %v7688_v11  ;;  %v7704_v32 = vadd.f32 1.0, %v4860_v31  ;;  %v4347_v10 = vmul.f32 -1.442695, %v3357_v53  ;;  %v3115_v53 = vand.u32 2147483648, %v7666_v55 }
 0x37f   : > { %v4864_v42 = vpop.eup %4863  ;;  %v7708_v27 = vmul.f32 %v7697_v9, %v7662_v0  ;;  %4869 = vpow2.f32 %v4352_v38  ;;  %v3063_v37 = vadd.f32 %v4850_v25, %v3062_v41  ;;  %v3428_v59 = vsub.f32 1.0, %v7701_v15 }
 0x380   : > { %v4866_v51 = vpop.eup %4865  ;;  %v7710_v16 = vadd.f32 1.0, %v4864_v42  ;;  %4871 = vrcp.f32 %v7704_v32  ;;  %v3075_v38 = vmul.f32 %v7639_v1, %v7610_v58  ;;  %v2820_v22 = vsel %vm2819_vm1, %v7626_v24, %v2816_v20 }
 0x381   : > { %4873 = vpow2.f32 %v4347_v10  ;;  %v3105_v62 = vmul.f32 %v4866_v51, %v7666_v55  ;;  %v3067_v28 = vsel %vm3066_vm14, %v4850_v25, %v3063_v37  ;;  %v3398_v25 = vsub.f32 1.0, %v7708_v27 }
 0x382   : > { %4875 = vrcp.f32 %v7710_v16  ;;  %v2855_v6 = vpop.permute.xlu0 %2854  ;;  %v3072_v31 = vsel %vm7676_vm9, %v3071_v39, %v3067_v28  ;;  %vm3110_vm2 = vweird.f32 %v4866_v51  ;;  %v2825_v35 = vsel %vm7693_vm13, %v2824_v21, %v2820_v22 }
 0x383   : > { %v3106_v2 = vsub.f32 1.0, %v3105_v62  ;;  %v3203_v40 = vmul.f32 %v3180_v14, %v3072_v31  ;;  %v3341_v42 = vpop.permute.xlu1 %3340  ;;  %vm7739_vm3 = vcmp.eq.f32.partialorder %v3113_v60, 8.507059e+37  ;;  %v2872_v24 = vmul.f32 %v2855_v6, %v2825_v35  ;;  %vm3111_vm5 = vmor %vm3109_vm15, %vm3110_vm2 }
 0x384   : > { %v7732_v41 = vpop.eup %4867  ;;  %v3360_v10 = vadd.f32 %v3341_v42, %v5862_v48  ;;  %v3076_v48 = vsub.f32 1.0, %v3075_v38  ;;  %v3116_v31 = vor.u32 1.1754944e-38, %v3115_v53  ;;  %v3085_v42 = vand.u32 2147483648, %v7610_v58 }
 0x385   : > { %v4870_v39 = vpop.eup %4869  ;;  %v3107_v37 = vmul.f32 %v4866_v51, %v3106_v2  ;;  %v7747_v14 = vmul.f32 %v7732_v41, %v7688_v11  ;;  %3219 = vrot.lane.b32.xlu0 %v3203_v40, %s5220_s23  ;;  %2894 = vrot.lane.b32.xlu1 %v2872_v24, %s5220_s23  ;;  %v3186_v6 = vpop.permute.xlu2 %3185  ;;  %v3083_v40 = vand.u32 2147483647, %v7610_v58  ;;  %v3158_v52 = vand.u32 2147483647, %v7710_v16 }
 0x386   : > { %v7743_v62 = vpop.eup %4871  ;;  %v7749_v28 = vadd.f32 1.0, %v4870_v39  ;;  %v4350_v57 = vmul.f32 -1.442695, %v3360_v10  ;;  %v3077_v38 = vmul.f32 %v7639_v1, %v3076_v48  ;;  %vm3154_vm9 = vweird.f32 %v7710_v16 }
 0x387   : > { %v4874_v20 = vpop.eup %4873  ;;  %v3108_v21 = vadd.f32 %v4866_v51, %v3107_v37  ;;  %v3473_v22 = vsub.f32 1.0, %v7747_v14  ;;  %v7773_v10 = vmul.f32 %v7743_v62, %v7704_v32  ;;  %vm3084_vm8 = vcmp.eq.f32.partialorder %v3083_v40, 8.507059e+37 }
 0x388   : > { %v7753_v60 = vpop.eup %4875  ;;  %v7755_v2 = vadd.f32 1.0, %v4874_v20  ;;  %4877 = vrcp.f32 %v7749_v28  ;;  %v3078_v55 = vadd.f32 %v7639_v1, %v3077_v38  ;;  %v3160_v20 = vand.u32 2147483648, %v7710_v16 }
 0x389   : > { %4879 = vpow2.f32 %v4350_v57  ;;  %v3112_v53 = vsel %vm3111_vm5, %v4866_v51, %v3108_v21  ;;  %v3086_v51 = vor.u32 1.1754944e-38, %v3085_v42  ;;  %v3150_v58 = vmul.f32 %v7753_v60, %v7710_v16 }
 0x38a   : > { %4881 = vrcp.f32 %v7755_v2  ;;  %v3117_v39 = vsel %vm7739_vm3, %v3116_v31, %v3112_v53  ;;  %v3182_v37 = vpop.permute.xlu0 %3181  ;;  %v3082_v48 = vsel %vm3081_vm7, %v7639_v1, %v3078_v55  ;;  %vm3155_vm10 = vweird.f32 %v7753_v60 }
 0x38b   : > { %v3206_v35 = vmul.f32 %v3186_v6, %v3117_v39  ;;  %v3347_v24 = vpop.permute.xlu1 %3346  ;;  %v3087_v21 = vsel %vm3084_vm8, %v3086_v51, %v3082_v48  ;;  %v3151_v31 = vsub.f32 1.0, %v3150_v58  ;;  %v2828_v6 = vmul.f32 %v7634_v46, %v7608_v29  ;;  %vm3156_vm13 = vmor %vm3154_vm9, %vm3155_vm10 }
 0x38c   : > { %v3363_v57 = vadd.f32 %v3347_v24, %v5897_v45  ;;  %v3204_v53 = vmul.f32 %v3182_v37, %v3087_v21  ;;  %vm7790_vm11 = vcmp.eq.f32.partialorder %v3158_v52, 8.507059e+37  ;;  %v3161_v39 = vor.u32 1.1754944e-38, %v3160_v20 }
 0x38d   : > { %3225 = vrot.lane.b32.xlu0 %v3206_v35, %s5220_s23  ;;  %v3152_v42 = vmul.f32 %v7753_v60, %v3151_v31  ;;  %v2829_v55 = vsub.f32 1.0, %v2828_v6  ;;  %v2836_v35 = vand.u32 2147483647, %v7608_v29  ;;  %v2838_v37 = vand.u32 2147483648, %v7608_v29  ;;  %v3192_v20 = vpop.permute.xlu2 %3191 }
 0x38e   : > { %v7785_v38 = vpop.eup %4877  ;;  %v4353_v45 = vmul.f32 -1.442695, %v3363_v57  ;;  %3221 = vrot.lane.b32.xlu1 %v3204_v53, %s5220_s23  ;;  %vm2833_vm14 = vweird.f32 %v7634_v46  ;;  %vm3124_vm1 = vweird.f32 %v7614_v33  ;;  %vm3125_vm3 = vweird.f32 %v7646_v30 }
 0x38f   : > { %v4880_v40 = vpop.eup %4879  ;;  %v7807_v48 = vmul.f32 %v7785_v38, %v7749_v28  ;;  %v3153_v52 = vadd.f32 %v7753_v60, %v3152_v42  ;;  %v2830_v57 = vmul.f32 %v7634_v46, %v2829_v55  ;;  %vm7817_vm15 = vcmp.eq.f32.partialorder %v2836_v35, 8.507059e+37  ;;  %vm2834_vm2 = vmor %vm2832_vm12, %vm2833_vm14 }
 0x390   : > { %v7795_v51 = vpop.eup %4881  ;;  %v7797_v58 = vadd.f32 1.0, %v4880_v40  ;;  %4883 = vpow2.f32 %v4353_v45  ;;  %v2839_v53 = vor.u32 1.1754944e-38, %v2838_v37  ;;  %v3120_v40 = vmul.f32 %v7646_v30, %v7614_v33  ;;  %vm3126_vm7 = vmor %vm3124_vm1, %vm3125_vm3 }
 0x391   : > { %v3412_v24 = vmul.f32 %v7795_v51, %v7755_v2  ;;  %v3157_v6 = vsel %vm3156_vm13, %v7753_v60, %v3153_v52  ;;  %v2831_v45 = vadd.f32 %v7634_v46, %v2830_v57  ;;  %v3128_v55 = vand.u32 2147483647, %v7614_v33 }
 0x392   : > { %4885 = vrcp.f32 %v7797_v58  ;;  %v3162_v16 = vsel %vm7790_vm11, %v3161_v39, %v3157_v6  ;;  %v3090_v60 = vmul.f32 %v7659_v26, %v7619_v34  ;;  %v3130_v37 = vand.u32 2147483648, %v7614_v33 }
 0x393   : > { %v3413_v31 = vsub.f32 1.0, %v3412_v24  ;;  %v2857_v42 = vpop.permute.xlu1 %2856  ;;  %v3209_v35 = vmul.f32 %v3192_v20, %v3162_v16  ;;  %v3121_v24 = vsub.f32 1.0, %v3120_v40  ;;  %v2835_v1 = vsel %vm2834_vm2, %v7634_v46, %v2831_v45 }
 0x394   : > { %vm7835_vm4 = vcmp.eq.f32.partialorder %v3128_v55, 8.507059e+37  ;;  %vm3094_vm5 = vweird.f32 %v7619_v34  ;;  %v2840_v29 = vsel %vm7817_vm15, %v2839_v53, %v2835_v1  ;;  %v3091_v57 = vsub.f32 1.0, %v3090_v60  ;;  %v4921_v60 = vld [vmem:[%s5439_s13 + $0x18] sm:$0xff] }
 0x395   : > { %3231 = vrot.lane.b32.xlu0 %v3209_v35, %s5220_s23  ;;  %v3122_v20 = vmul.f32 %v7646_v30, %v3121_v24  ;;  %v2873_v40 = vmul.f32 %v2857_v42, %v2840_v29  ;;  %v3098_v16 = vand.u32 2147483647, %v7619_v34  ;;  %v3100_v45 = vand.u32 2147483648, %v7619_v34  ;;  %v3188_v24 = vpop.permute.xlu0 %3187  ;;  %vm3096_vm10 = vmor %vm3094_vm5, %vm3095_vm6 }
 0x396   : > { %v4884_v52 = vpop.eup %4883  ;;  %v3092_v55 = vmul.f32 %v7659_v26, %v3091_v57  ;;  %v3414_v35 = vmul.f32 %v7795_v51, %v3413_v31  ;;  %v3131_v42 = vor.u32 1.1754944e-38, %v3130_v37  ;;  %vm3416_vm9 = vweird.f32 %v7755_v2 }
 0x397   : > { %v7848_v6 = vadd.f32 1.0, %v4884_v52  ;;  %v3123_v53 = vadd.f32 %v7646_v30, %v3122_v20  ;;  %2896 = vrot.lane.b32.xlu2 %v2873_v40, %s5220_s23  ;;  %vm7863_vm8 = vcmp.eq.f32.partialorder %v3098_v16, 8.507059e+37  ;;  %v3101_v1 = vor.u32 1.1754944e-38, %v3100_v45 }
 0x398   : > { %v7846_v46 = vpop.eup %4885  ;;  %v3093_v31 = vadd.f32 %v7659_v26, %v3092_v55  ;;  %v3415_v29 = vadd.f32 %v7795_v51, %v3414_v35  ;;  %vm3417_vm11 = vweird.f32 %v7795_v51  ;;  %v3420_v20 = vand.u32 2147483647, %v7755_v2 }
 0x399   : > { %v3457_v21 = vmul.f32 %v7846_v46, %v7797_v58  ;;  %4887 = vrcp.f32 %v7848_v6  ;;  %v3127_v52 = vsel %vm3126_vm7, %v7646_v30, %v3123_v53  ;;  %v3422_v30 = vand.u32 2147483648, %v7755_v2  ;;  %vm3418_vm12 = vmor %vm3416_vm9, %vm3417_vm11 }
 0x39a   : > { %v3132_v33 = vsel %vm7835_vm4, %v3131_v42, %v3127_v52  ;;  %v3097_v16 = vsel %vm3096_vm10, %v7659_v26, %v3093_v31  ;;  %v3165_v39 = vmul.f32 %v7669_v23, %v7624_v18  ;;  %v3419_v34 = vsel %vm3418_vm12, %v7795_v51, %v3415_v29 }
 0x39b   : > { %v3184_v37 = vpop.permute.xlu1 %3183  ;;  %v3458_v57 = vsub.f32 1.0, %v3457_v21  ;;  %v3207_v40 = vmul.f32 %v3188_v24, %v3132_v33  ;;  %v3102_v45 = vsel %vm7863_vm8, %v3101_v1, %v3097_v16  ;;  %v3423_v53 = vor.u32 1.1754944e-38, %v3422_v30 }
 0x39c   : > { %vm3169_vm13 = vweird.f32 %v7624_v18  ;;  %v3205_v2 = vmul.f32 %v3184_v37, %v3102_v45  ;;  %vm3421_vm14 = vcmp.eq.f32.partialorder %v3420_v20, 8.507059e+37  ;;  %v3166_v21 = vsub.f32 1.0, %v3165_v39 }
 0x39d   : > { %3227 = vrot.lane.b32.xlu1 %v3207_v40, %s5220_s23  ;;  %v3173_v26 = vand.u32 2147483647, %v7624_v18  ;;  %v3424_v35 = vsel %vm3421_vm14, %v3423_v53, %v3419_v34  ;;  %vm3170_vm15 = vweird.f32 %v7669_v23  ;;  %v3175_v42 = vand.u32 2147483648, %v7624_v18  ;;  %v3194_v39 = vpop.permute.xlu0 %3193 }
 0x39e   : > { %v3135_v51 = vmul.f32 %v7673_v12, %v7631_v4  ;;  %v3517_v1 = vmul.f32 %v4921_v60, %v3424_v35  ;;  %v3167_v52 = vmul.f32 %v7669_v23, %v3166_v21  ;;  %vm3139_vm1 = vweird.f32 %v7631_v4  ;;  %vm3171_vm4 = vmor %vm3169_vm13, %vm3170_vm15 }
 0x39f   : > { %v7889_v55 = vpop.eup %4887  ;;  %vm7900_vm2 = vcmp.eq.f32.partialorder %v3173_v26, 8.507059e+37  ;;  %v3176_v29 = vor.u32 1.1754944e-38, %v3175_v42  ;;  %3223 = vrot.lane.b32.xlu2 %v3205_v2, %s5220_s23  ;;  %v3143_v37 = vand.u32 2147483647, %v7631_v4  ;;  %vm3140_vm3 = vweird.f32 %v7673_v12 }
 0x3a0   : > { %v3502_v24 = vmul.f32 %v7889_v55, %v7848_v6  ;;  %v3136_v33 = vsub.f32 1.0, %v3135_v51  ;;  %3534 = vrot.lane.b32.xlu0 %v3517_v1, %s5220_s23  ;;  %v3168_v20 = vadd.f32 %v7669_v23, %v3167_v52  ;;  %v3145_v30 = vand.u32 2147483648, %v7631_v4  ;;  %vm3141_vm9 = vmor %vm3139_vm1, %vm3140_vm3  ;;  %v4926_v1 = vld [vmem:[%s5439_s13 + $0x58] sm:$0xff] }
 0x3a1   : > { %v3459_v40 = vmul.f32 %v7846_v46, %v3458_v57  ;;  %vm7916_vm5 = vcmp.eq.f32.partialorder %v3143_v37, 8.507059e+37  ;;  %vm3462_vm6 = vweird.f32 %v7846_v46  ;;  %vm3461_vm7 = vweird.f32 %v7797_v58  ;;  %v4922_v37 = vld [vmem:[%s5439_s13 + $0x48] sm:$0xff] }
 0x3a2   : > { %v3503_v16 = vsub.f32 1.0, %v3502_v24  ;;  %v3137_v45 = vmul.f32 %v7673_v12, %v3136_v33  ;;  %v3172_v53 = vsel %vm3171_vm4, %v7669_v23, %v3168_v20  ;;  %v3465_v57 = vand.u32 2147483647, %v7797_v58  ;;  %vm7928_vm8 = vmor %vm3461_vm7, %vm3462_vm6 }
 0x3a3   : > { %v3460_v2 = vadd.f32 %v7846_v46, %v3459_v40  ;;  %v3177_v18 = vsel %vm7900_vm2, %v3176_v29, %v3172_v53  ;;  %v3467_v35 = vand.u32 2147483648, %v7797_v58  ;;  %v3429_v23 = vmul.f32 %v7686_v50, %v3428_v59  ;;  %v3190_v51 = vpop.permute.xlu1 %3189 }
 0x3a4   : > { %v3138_v21 = vadd.f32 %v7673_v12, %v3137_v45  ;;  %v3210_v42 = vmul.f32 %v3194_v39, %v3177_v18  ;;  %v3146_v24 = vor.u32 1.1754944e-38, %v3145_v30  ;;  %vm3431_vm10 = vweird.f32 %v7648_v61 }
 0x3a5   : > { %v3464_v60 = vsel %vm7928_vm8, %v7846_v46, %v3460_v2  ;;  %v3468_v15 = vor.u32 1.1754944e-38, %v3467_v35  ;;  %v3430_v59 = vadd.f32 %v7686_v50, %v3429_v23  ;;  %vm3432_vm11 = vweird.f32 %v7686_v50  ;;  %v4923_v2 = vld [vmem:[%s5439_s13 + $0x28] sm:$0xff] }
 0x3a6   : > { %v3142_v58 = vsel %vm3141_vm9, %v7673_v12, %v3138_v21  ;;  %3233 = vrot.lane.b32.xlu1 %v3210_v42, %s5220_s23  ;;  %vm3466_vm12 = vcmp.eq.f32.partialorder %v3465_v57, 8.507059e+37  ;;  %vm7950_vm13 = vmor %vm3431_vm10, %vm3432_vm11  ;;  %v3435_v46 = vand.u32 2147483647, %v7648_v61  ;;  %v3437_v52 = vand.u32 2147483648, %v7648_v61 }
 0x3a7   : > { %v3147_v4 = vsel %vm7916_vm5, %v3146_v24, %v3142_v58  ;;  %v3469_v31 = vsel %vm3466_vm12, %v3468_v15, %v3464_v60  ;;  %v3434_v29 = vsel %vm7950_vm13, %v7686_v50, %v3430_v59  ;;  %v3504_v33 = vmul.f32 %v7889_v55, %v3503_v16  ;;  %v4925_v24 = vld [vmem:[%s5439_s13 + $0x8] sm:$0xff] }
 0x3a8   : > { %v3208_v12 = vmul.f32 %v3190_v51, %v3147_v4  ;;  %v3520_v20 = vmul.f32 %v4922_v37, %v3469_v31  ;;  %vm3436_vm14 = vcmp.eq.f32.partialorder %v3435_v46, 8.507059e+37  ;;  %v3438_v30 = vor.u32 1.1754944e-38, %v3437_v52 }
 0x3a9   : > { %vm3506_vm15 = vweird.f32 %v7848_v6  ;;  %v3505_v40 = vadd.f32 %v7889_v55, %v3504_v33  ;;  %vm3507_vm1 = vweird.f32 %v7889_v55  ;;  %v3510_v61 = vand.u32 2147483647, %v7848_v6  ;;  %v4927_v33 = vld [vmem:[%s5439_s13 + $0x38] sm:$0xff] }
 0x3aa   : > { %3229 = vrot.lane.b32.xlu2 %v3208_v12, %s5220_s23  ;;  %v3512_v39 = vand.u32 2147483648, %v7848_v6  ;;  %v3443_v50 = vsub.f32 1.0, %v7773_v10  ;;  %3540 = vrot.lane.b32.xlu0 %v3520_v20, %s5220_s23  ;;  %v3439_v16 = vsel %vm3436_vm14, %v3438_v30, %v3434_v29  ;;  %vm7969_vm2 = vmor %vm3506_vm15, %vm3507_vm1  ;;  %v3399_v34 = vmul.f32 %v7697_v9, %v3398_v25 }
 0x3ab   : > { %vm3402_vm3 = vweird.f32 %v7697_v9  ;;  %v3488_v53 = vsub.f32 1.0, %v7807_v48  ;;  %v3518_v57 = vmul.f32 %v4923_v2, %v3439_v16  ;;  %v3509_v10 = vsel %vm7969_vm2, %v7889_v55, %v3505_v40  ;;  %v2883_v45 = vpop.permute.xlu1 %2882 }
 0x3ac   : > { %vm3401_vm4 = vweird.f32 %v7662_v0  ;;  %v3513_v6 = vor.u32 1.1754944e-38, %v3512_v39  ;;  %v3400_v18 = vadd.f32 %v7697_v9, %v3399_v34  ;;  %v3405_v27 = vand.u32 2147483647, %v7662_v0 }
 0x3ad   : > { %v3407_v25 = vand.u32 2147483648, %v7662_v0  ;;  %vm3511_vm5 = vcmp.eq.f32.partialorder %v3510_v61, 8.507059e+37  ;;  %vm3403_vm6 = vmor %vm3401_vm4, %vm3402_vm3  ;;  %v3474_v48 = vmul.f32 %v7732_v41, %v3473_v22  ;;  %vm3477_vm7 = vweird.f32 %v7732_v41  ;;  %v4924_v0 = vld [vmem:[%s5439_s13 + $0x78] sm:$0xff]  ;;  %v4928_v61 = vld [vmem:[%s5439_s13 + $0x68] sm:$0xff]  ;;  %s4206_s13 = sshll.u32 %s5428_s26, 6  ;;  %s3672_s26 = ssub.s32 (%p8412_p2), 13, %s5476_s25 }
 0x3ae   : > { %v3480_v55 = vand.u32 2147483647, %v7688_v11  ;;  %3536 = vrot.lane.b32.xlu1 %v3518_v57, %s5220_s23  ;;  %v3514_v21 = vsel %vm3511_vm5, %v3513_v6, %v3509_v10  ;;  %v3404_v26 = vsel %vm3403_vm6, %v7697_v9, %v3400_v18  ;;  %vm3476_vm8 = vweird.f32 %v7688_v11  ;;  %s8026_s19 = scalar_lea.vmem [#allocation8], %s4206_s13   ;;  %s8076_s30 = scalar_lea.vmem [#allocation7], %s4206_s13  }
 0x3af   : > { %v3408_v35 = vor.u32 1.1754944e-38, %v3407_v25  ;;  %v3523_v23 = vmul.f32 %v4924_v0, %v3514_v21  ;;  %vm3406_vm9 = vcmp.eq.f32.partialorder %v3405_v27, 8.507059e+37  ;;  %v3475_v14 = vadd.f32 %v7732_v41, %v3474_v48  ;;  %vm3478_vm10 = vmor %vm3476_vm8, %vm3477_vm7  ;;  %p3673_p7 = scmp.lt.s32.totalorder (%p8412_p2), %s3672_s26, 8 }
 0x3b0   : > { %v3482_v22 = vand.u32 2147483648, %v7688_v11  ;;  %vm3481_vm11 = vcmp.eq.f32.partialorder %v3480_v55, 8.507059e+37  ;;  %v3444_v51 = vmul.f32 %v7743_v62, %v3443_v50  ;;  %vm3447_vm12 = vweird.f32 %v7743_v62  ;;  %v2885_v50 = vpop.permute.xlu2 %2884 }
 0x3b1   : > { %v3409_v42 = vsel %vm3406_vm9, %v3408_v35, %v3404_v26  ;;  %v3479_v9 = vsel %vm3478_vm10, %v7732_v41, %v3475_v14  ;;  %vm3446_vm13 = vweird.f32 %v7704_v32  ;;  %v3450_v11 = vand.u32 2147483647, %v7704_v32 }
 0x3b2   : > { %v3516_v60 = vmul.f32 %v4925_v24, %v3409_v42  ;;  %v3483_v58 = vor.u32 1.1754944e-38, %v3482_v22  ;;  %3546 = vrot.lane.b32.xlu0 %v3523_v23, %s5220_s23  ;;  %v3445_v15 = vadd.f32 %v7743_v62, %v3444_v51  ;;  %v3452_v59 = vand.u32 2147483648, %v7704_v32  ;;  %vm3448_vm14 = vmor %vm3446_vm13, %vm3447_vm12 }
 0x3b3   : > { %v3489_v41 = vmul.f32 %v7785_v38, %v3488_v53  ;;  %vm3451_vm15 = vcmp.eq.f32.partialorder %v3450_v11, 8.507059e+37  ;;  %vm3492_vm1 = vweird.f32 %v7785_v38  ;;  %v3497_v32 = vand.u32 2147483648, %v7749_v28 }
 0x3b4   : > { %3532 = vrot.lane.b32.xlu2 %v3516_v60, %s5220_s23  ;;  %v3484_v4 = vsel %vm3481_vm11, %v3483_v58, %v3479_v9  ;;  %v3449_v52 = vsel %vm3448_vm14, %v7743_v62, %v3445_v15  ;;  %v3453_v12 = vor.u32 1.1754944e-38, %v3452_v59  ;;  %vm3491_vm2 = vweird.f32 %v7749_v28 }
 0x3b5   : > { %v3521_v46 = vmul.f32 %v4926_v1, %v3484_v4  ;;  %v3490_v29 = vadd.f32 %v7785_v38, %v3489_v41  ;;  %v3495_v20 = vand.u32 2147483647, %v7749_v28  ;;  %vm3493_vm3 = vmor %vm3491_vm2, %vm3492_vm1  ;;  %v3498_v30 = vor.u32 1.1754944e-38, %v3497_v32  ;;  %v2889_v28 = vpop.permute.xlu1 %2888 }
 0x3b6   : > { %v3454_v31 = vsel %vm3451_vm15, %v3453_v12, %v3449_v52  ;;  %v2906_v48 = vadd.f32 %v2883_v45, %v7485_v49  ;;  %v2907_v0 = vadd.f32 %v2885_v50, %v7412_v17  ;;  %v2909_v14 = vadd.f32 %v2889_v28, %v7563_v7  ;;  %v8411_v28 = vld [vmem:[#allocation31_spill] sm:$0xff] }
 0x3b7   : > { %3542 = vrot.lane.b32.xlu1 %v3521_v46, %s5220_s23  ;;  %v3519_v37 = vmul.f32 %v4927_v33, %v3454_v31  ;;  %v3494_v62 = vsel %vm3493_vm3, %v7785_v38, %v3490_v29  ;;  %vm3496_vm4 = vcmp.eq.f32.partialorder %v3495_v20, 8.507059e+37 }
 0x3b8   : > { %v3499_v40 = vsel %vm3496_vm4, %v3498_v30, %v3494_v62  ;;  %v2891_v34 = vpop.permute.xlu2 %2890 }
 0x3b9   : > { %v3522_v39 = vmul.f32 %v4928_v61, %v3499_v40  ;;  %v2910_v9 = vadd.f32 %v2891_v34, %v7535_v36 }
 0x3bc   : > { %3538 = vrot.lane.b32.xlu2 %v3519_v37, %s5220_s23 }
 0x3c4   : > { %3544 = vrot.lane.b32.xlu2 %v3522_v39, %s5220_s23 }
 0x3cf   : > { %v2887_v16 = vpop.permute.xlu0 %2886 }
 0x3d0   : > { %v2908_v4 = vadd.f32 %v2887_v16, %v7435_v63 }
 0x3ea   : > { %v2893_v53 = vpop.permute.xlu0 %2892 }
 0x3eb   : > { %v2911_v33 = vadd.f32 %v2893_v53, %v7559_v47 }
 0x3f1   : > { %v2897_v2 = vpop.permute.xlu2 %2896 }
 0x3f7   : > { %v3220_v57 = vpop.permute.xlu0 %3219  ;;  %v2895_v6 = vpop.permute.xlu1 %2894 }
 0x3f8   : > { %v3243_v55 = vadd.f32 %v3220_v57, %v2906_v48  ;;  %v2912_v7 = vadd.f32 %v2895_v6, %v7585_v44  ;;  %v2913_v44 = vadd.f32 %v2897_v2, %v7576_v43 }
 0x3f9   : > { %v3224_v10 = vpop.permute.xlu2 %3223 }
 0x3fa   : > { %v3245_v12 = vadd.f32 %v3224_v10, %v2908_v4 }
 0x3ff   : > { %v3226_v38 = vpop.permute.xlu0 %3225 }
 0x400   : > { %v3222_v27 = vpop.permute.xlu1 %3221  ;;  %v3246_v42 = vadd.f32 %v3226_v38, %v2909_v14 }
 0x401   : > { %v3244_v23 = vadd.f32 %v3222_v27, %v2907_v0 }
 0x404   : > { %v3230_v18 = vpop.permute.xlu2 %3229 }
 0x405   : > { %v3248_v62 = vadd.f32 %v3230_v18, %v2911_v33 }
 0x407   : > { %v3232_v25 = vpop.permute.xlu0 %3231 }
 0x408   : > { %v3249_v11 = vadd.f32 %v3232_v25, %v2912_v7 }
 0x40e   : > { %v3533_v21 = vpop.permute.xlu2 %3532 }
 0x40f   : > { %v3556_v26 = vadd.f32 %v3533_v21, %v3243_v55  ;;  %v3228_v35 = vpop.permute.xlu1 %3227 }
 0x410   : > { %v3247_v15 = vadd.f32 %v3228_v35, %v2910_v9 }
 0x411   : > { %4889 = vtanh.f32 %v3556_v26  ;;  %3652 = vst.msk [vmem:[%s8026_s19] sm:$0xff] %vm899_vm0, %v3556_v26 }
 0x412   : > { %v3535_v49 = vpop.permute.xlu0 %3534 }
 0x413   : > { %v3557_v22 = vadd.f32 %v3535_v49, %v3244_v23 }
 0x415   : > { %4891 = vtanh.f32 %v3557_v22  ;;  %3653 = vst.msk [vmem:[%s8026_s19 + $0x8] sm:$0xff] %vm899_vm0, %v3557_v22 }
 0x416   : > { %v3539_v51 = vpop.permute.xlu2 %3538 }
 0x417   : > { %v4890_v17 = vpop.eup %4889  ;;  %v3559_v24 = vadd.f32 %v3539_v51, %v3246_v42 }
 0x418   : > { %3580 = vrot.lane.b32.xlu1 %v4890_v17, %s5220_s23  ;;  %v3234_v60 = vpop.permute.xlu1 %3233 }
 0x419   : > { %4893 = vtanh.f32 %v3559_v24  ;;  %3655 = vst.msk [vmem:[%s8026_s19 + $0x18] sm:$0xff] %vm899_vm0, %v3559_v24  ;;  %v3250_v63 = vadd.f32 %v3234_v60, %v2913_v44 }
 0x41b   : > { %v4892_v58 = vpop.eup %4891 }
 0x41c   : > { %v3541_v59 = vpop.permute.xlu0 %3540  ;;  %3582 = vrot.lane.b32.xlu2 %v4892_v58, %s5220_s23 }
 0x41d   : > { %v3560_v41 = vadd.f32 %v3541_v59, %v3247_v15 }
 0x41e   : > { %v3545_v1 = vpop.permute.xlu2 %3544 }
 0x41f   : > { %v4894_v46 = vpop.eup %4893  ;;  %v3562_v52 = vadd.f32 %v3545_v1, %v3249_v11  ;;  %4895 = vtanh.f32 %v3560_v41  ;;  %3656 = vst.msk [vmem:[%s8026_s19 + $0x20] sm:$0xff] %vm899_vm0, %v3560_v41 }
 0x420   : > { %3586 = vrot.lane.b32.xlu1 %v4894_v46, %s5220_s23  ;;  %v3537_v36 = vpop.permute.xlu1 %3536 }
 0x421   : > { %4897 = vtanh.f32 %v3562_v52  ;;  %3658 = vst.msk [vmem:[%s8026_s19 + $0x30] sm:$0xff] %vm899_vm0, %v3562_v52  ;;  %v3558_v31 = vadd.f32 %v3537_v36, %v3245_v12 }
 0x423   : > { %4899 = vtanh.f32 %v3558_v31  ;;  %3654 = vst.msk [vmem:[%s8026_s19 + $0x10] sm:$0xff] %vm899_vm0, %v3558_v31 }
 0x424   : > { %v3547_v29 = vpop.permute.xlu0 %3546 }
 0x425   : > { %v4896_v32 = vpop.eup %4895  ;;  %v3563_v37 = vadd.f32 %v3547_v29, %v3250_v63 }
 0x426   : > { %3588 = vrot.lane.b32.xlu2 %v4896_v32, %s5220_s23 }
 0x427   : > { %v4898_v20 = vpop.eup %4897  ;;  %4901 = vtanh.f32 %v3563_v37  ;;  %3659 = vst.msk [vmem:[%s8026_s19 + $0x38] sm:$0xff] %vm899_vm0, %v3563_v37 }
 0x428   : > { %3592 = vrot.lane.b32.xlu1 %v4898_v20, %s5220_s23 }
 0x429   : > { %v3543_v43 = vpop.permute.xlu1 %3542  ;;  %v4900_v30 = vpop.eup %4899 }
 0x42a   : > { %v3561_v40 = vadd.f32 %v3543_v43, %v3248_v62  ;;  %3584 = vrot.lane.b32.xlu0 %v4900_v30, %s5220_s23 }
 0x42c   : > { %4903 = vtanh.f32 %v3561_v40  ;;  %3657 = vst.msk [vmem:[%s8026_s19 + $0x28] sm:$0xff] %vm899_vm0, %v3561_v40 }
 0x42d   : > { %v4902_v61 = vpop.eup %4901 }
 0x42e   : > { %3594 = vrot.lane.b32.xlu2 %v4902_v61, %s5220_s23 }
 0x432   : > { %v4904_v47 = vpop.eup %4903 }
 0x433   : > { %3590 = vrot.lane.b32.xlu0 %v4904_v47, %s5220_s23 }
 0x476   : > { %v3583_v39 = vpop.permute.xlu2 %3582 }
 0x477   : > { %v3605_v50 = vmul.f32 %v3583_v39, %v7286_v3 }
 0x479   : > { %3622 = vrot.lane.b32.xlu1 %v3605_v50, %s5218_s20 }
 0x480   : > { %v3589_v16 = vpop.permute.xlu2 %3588 }
 0x481   : > { %v3608_v45 = vmul.f32 %v3589_v16, %v7360_v5 }
 0x483   : > { %3628 = vrot.lane.b32.xlu1 %v3608_v45, %s5218_s20 }
 0x488   : > { %v3595_v34 = vpop.permute.xlu2 %3594 }
 0x489   : > { %v3611_v53 = vmul.f32 %v3595_v34, %v7491_v56 }
 0x48a   : > { %v3581_v2 = vpop.permute.xlu1 %3580 }
 0x48b   : > { %v3604_v57 = vmul.f32 %v3581_v2, %v8411_v28  ;;  %3634 = vrot.lane.b32.xlu1 %v3611_v53, %s5218_s20 }
 0x48d   : > { %3620 = vrot.lane.b32.xlu0 %v3604_v57, %s5218_s20 }
 0x492   : > { %v3587_v10 = vpop.permute.xlu1 %3586 }
 0x493   : > { %v3607_v3 = vmul.f32 %v3587_v10, %v7260_v54 }
 0x495   : > { %3626 = vrot.lane.b32.xlu0 %v3607_v3, %s5218_s20 }
 0x49a   : > { %v3593_v6 = vpop.permute.xlu1 %3592 }
 0x49b   : > { %v3610_v5 = vmul.f32 %v3593_v6, %v7479_v13 }
 0x49c   : > { %v3585_v38 = vpop.permute.xlu0 %3584 }
 0x49d   : > { %3632 = vrot.lane.b32.xlu0 %v3610_v5, %s5218_s20  ;;  %v3606_v56 = vmul.f32 %v3585_v38, %v7339_v19 }
 0x49f   : > { %3624 = vrot.lane.b32.xlu2 %v3606_v56, %s5218_s20 }
 0x4a5   : > { %v3591_v18 = vpop.permute.xlu0 %3590 }
 0x4a6   : > { %v3609_v27 = vmul.f32 %v3591_v18, %v7522_v8 }
 0x4a8   : > { %3630 = vrot.lane.b32.xlu2 %v3609_v27, %s5218_s20  ;;  %s4392_s20 = sshll.u32 (%p8412_p2), %s5285_s9, 6 }
 0x4a9   : > { %s8101_s24 = scalar_lea.vmem (%p8412_p2), %s8216_s7, %s4392_s20  }
 0x4eb   : > { %v3623_v25 = vpop.permute.xlu1 %3622 }
 0x4ec   : > { %3645 = vst.msk [vmem:[%s8076_s30 + $0x8] sm:$0xff] %vm899_vm0, %v3623_v25 }
 0x4f5   : > { %v3629_v54 = vpop.permute.xlu1 %3628 }
 0x4f6   : > { %3648 = vst.msk [vmem:[%s8076_s30 + $0x20] sm:$0xff] %vm899_vm0, %v3629_v54 }
 0x4f9   : > { %v3625_v19 = vpop.permute.xlu2 %3624 }
 0x4fa   : > { %3646 = vst.msk [vmem:[%s8076_s30 + $0x10] sm:$0xff] %vm899_vm0, %v3625_v19 }
 0x4fd   : > { %v3635_v13 = vpop.permute.xlu1 %3634 }
 0x4fe   : > { %3651 = vst.msk [vmem:[%s8076_s30 + $0x38] sm:$0xff] %vm899_vm0, %v3635_v13 }
 0x4ff   : > { %v3621_v8 = vpop.permute.xlu0 %3620 }
 0x500   : > { %3644 = vst.msk [vmem:[%s8076_s30] sm:$0xff] %vm899_vm0, %v3621_v8 }
 0x502   : > { %v3631_v48 = vpop.permute.xlu2 %3630 }
 0x503   : > { %3649 = vst.msk [vmem:[%s8076_s30 + $0x28] sm:$0xff] %vm899_vm0, %v3631_v48 }
 0x507   : > { %v3627_v55 = vpop.permute.xlu0 %3626 }
 0x508   : > { %3647 = vst.msk [vmem:[%s8076_s30 + $0x18] sm:$0xff] %vm899_vm0, %v3627_v55 }
 0x50c   : > { %3670 = sbr.rel (!%p8412_p2) target bundleno = 1339 (0x53b), region = 64 }
 0x50f   : > { %v3633_v21 = vpop.permute.xlu0 %3632 }
 0x510   : > { %3650 = vst.msk [vmem:[%s8076_s30 + $0x30] sm:$0xff] %vm899_vm0, %v3633_v21 }
 0x511   : > { %s8432_s26 = smov (!%p3673_p7, %s3672_s26), 8 }
 0x512   : > { %s4357_s11 = sshll.u32 %s8432_s26, 3 }
 0x513   : > { %p4360_p9 = scmp.eq.s32.totalorder %s4357_s11, 0 }
 0x514   : > { %s8107_s4 = sshrl.u32 (!%p4360_p9), %s8432_s26, 3 }
 0x515   : > { %3681 = sbr.rel (%p4360_p9) target bundleno = 1339 (0x53b), region = 68  ;;  %p4361_p12 = scmp.le.s32.totalorder (!%p4360_p9), %s8107_s4, 0 }
 0x51a   : > { %4072 = sbr.rel (%p4361_p12) target bundleno = 1322 (0x52a), region = 234  ;;  %s8413_s17 = smov (!%p4361_p12), %s8101_s24 }
 0x51b   : > { %s8414_s15 = smov (!%p4361_p12), %s8076_s30  ;;  %s8116_s21 = smov (!%p4361_p12), 0  }
 0x51c   : > { %s8118_s10 = smov (!%p4361_p12), 0  }
 0x51f LB: >> { %v3758_v26 = vld [vmem:[%s5151_s15] sm:$0xff]  ;;  %v3760_v35 = vld [vmem:[%s5151_s15 + $0x8] sm:$0xff]  ;;  %v3762_v0 = vld [vmem:[%s5151_s15 + $0x10] sm:$0xff]  ;;  %s3774_s27 = sadd.s32 1, %s5155_s21  ;;  %s3752_s10 = sadd.s32 1, %s5159_s10   ;;  %s5159_s10 = sphi %s8118_s10, %s3752_s10   ;;  %s5155_s21 = sphi %s8116_s21, %s8416_s21   ;;  %s5151_s15 = sphi %s8414_s15, %s3779_s15   ;;  %s5147_s17 = sphi %s8413_s17, %s8415_s17  }
 0x520   : >> { %3759 = vst [vmem:[%s5147_s17] sm:$0xff] %v3758_v26  ;;  %v3764_v23 = vld [vmem:[%s5151_s15 + $0x18] sm:$0xff]  ;;  %p3775_p13 = scmp.ge.s32.totalorder %s3774_s27, %s8107_s4  ;;  %v3766_v14 = vld [vmem:[%s5151_s15 + $0x20] sm:$0xff]  ;;  %v3768_v49 = vld [vmem:[%s5151_s15 + $0x28] sm:$0xff]  ;;  %p3751_p0 = scmp.ge.s32.totalorder %s3752_s10, %s8107_s4 }
 0x521   : >> { %3761 = vst [vmem:[%s5147_s17 + $0x8] sm:$0xff] %v3760_v35  ;;  %v3770_v22 = vld [vmem:[%s5151_s15 + $0x30] sm:$0xff]  ;;  %v3772_v42 = vld [vmem:[%s5151_s15 + $0x38] sm:$0xff] }
 0x522   : >> { %3763 = vst [vmem:[%s5147_s17 + $0x10] sm:$0xff] %v3762_v0  ;;  %s8434_s27 = smov (%p3775_p13, %s3774_s27), 0 }
 0x523   : >> { %3765 = vst [vmem:[%s5147_s17 + $0x18] sm:$0xff] %v3764_v23  ;;  %s4362_s23 = sshll.u32 %s8434_s27, 6  ;;  %s8416_s21 = smov %s8434_s27 }
 0x524   : >> { %3767 = vst [vmem:[%s5147_s17 + $0x20] sm:$0xff] %v3766_v14  ;;  %s3779_s15 = scalar_lea.vmem %s8076_s30, %s4362_s23 [#allocation7]   ;;  %s3780_s14 = scalar_lea.vmem %s8101_s24, %s4362_s23  }
 0x525   : >> { %3769 = vst [vmem:[%s5147_s17 + $0x28] sm:$0xff] %v3768_v49  ;;  %3754 = sbr.rel (!%p3751_p0) target bundleno = 1311 (0x51f), region = 240 }
 0x526   : >> { %3771 = vst [vmem:[%s5147_s17 + $0x30] sm:$0xff] %v3770_v22 }
 0x527   : >> { %3773 = vst [vmem:[%s5147_s17 + $0x38] sm:$0xff] %v3772_v42  ;;  %s8415_s17 = smov %s3780_s14 }
 0x52a PF: > { %s8137_s18 = sand.u32 7, %s8432_s26   ;;  %s4393_s13 = sshll.u32 %s8107_s4, 6 }
 0x52b   : > { %s3785_s20 = scalar_lea.vmem %s8076_s30, %s4393_s13 [#allocation7]   ;;  %s3787_s12 = scalar_lea.vmem %s8101_s24, %s4393_s13  }
 0x52c   : > { %p4367_p1 = scmp.le.s32.totalorder %s8137_s18, 0 }
 0x52d   : > { %s5161_s22 = smov (!%p4367_p1), %s3787_s12   ;;  %s5165_s11 = smov (!%p4367_p1), %s3785_s20  }
 0x52e   : > { %4086 = sbr.rel (%p4367_p1) target bundleno = 1339 (0x53b), region = 245  ;;  %s5169_s23 = smov (!%p4367_p1), 0  }
 0x52f   : > { %s5173_s27 = smov (!%p4367_p1), 0  }
 0x533 LB: >> { %v3797_v51 = vld [vmem:[%s5167_s11] sm:$0xff]  ;;  %s3799_s26 = sadd.s32 1, %s5171_s23  ;;  %s3791_s27 = sadd.s32 1, %s5175_s27   ;;  %s5175_s27 = sphi %s5173_s27, %s3791_s27   ;;  %s5171_s23 = sphi %s5169_s23, %s5170_s23   ;;  %s5167_s11 = sphi %s5165_s11, %s3804_s11   ;;  %s5163_s22 = sphi %s5161_s22, %s3805_s22  }
 0x534   : >> { %3798 = vst [vmem:[%s5163_s22] sm:$0xff] %v3797_v51  ;;  %p3800_p3 = scmp.ge.s32.totalorder %s3799_s26, %s8137_s18  ;;  %p3790_p6 = scmp.ge.s32.totalorder %s3791_s27, %s8137_s18 }
 0x536   : >> { %s8436_s26 = smov (%p3800_p3, %s3799_s26), 0  ;;  %3793 = sbr.rel (!%p3790_p6) target bundleno = 1331 (0x533), region = 251 }
 0x537   : >> { %s4368_s30 = sshll.u32 %s8436_s26, 3  ;;  %s5170_s23 = smov %s8436_s26  }
 0x538   : >> { %s3804_s11 = scalar_lea.vmem %s3785_s20, %s4368_s30 [#allocation7]   ;;  %s3805_s22 = scalar_lea.vmem %s3787_s12, %s4368_s30  }
 0x53b PF: > { %p8417_p5 = scmp.ne.s32.totalorder %s8238_s16, 0 }
 0x53c   : > { %s3813_s24 = ssub.s32 (%p8417_p5), 13, %s5476_s25  ;;  %s4395_s4 = sshll.u32 (%p8417_p5), %s5285_s9, 6 }
 0x53d   : > { %3811 = sbr.rel (!%p8417_p5) target bundleno = 1388 (0x56c), region = 116  ;;  %p3814_p10 = scmp.lt.s32.totalorder (%p8417_p5), %s3813_s24, 8 }
 0x53e   : > { %s8152_s21 = scalar_lea.vmem (%p8417_p5), %s8217_s8, %s4395_s4  }
 0x542   : > { %s8438_s24 = smov (!%p3814_p10, %s3813_s24), 8 }
 0x543   : > { %s4371_s10 = sshll.u32 %s8438_s24, 3 }
 0x544   : > { %p4374_p11 = scmp.eq.s32.totalorder %s4371_s10, 0 }
 0x545   : > { %s8158_s14 = sshrl.u32 (!%p4374_p11), %s8438_s24, 3 }
 0x546   : > { %3822 = sbr.rel (%p4374_p11) target bundleno = 1388 (0x56c), region = 120  ;;  %p4375_p4 = scmp.le.s32.totalorder (!%p4374_p11), %s8158_s14, 0 }
 0x54b   : > { %4100 = sbr.rel (%p4375_p4) target bundleno = 1371 (0x55b), region = 256  ;;  %s8418_s9 = smov (!%p4375_p4), %s8152_s21 }
 0x54c   : > { %s8419_s16 = smov (!%p4375_p4), %s8026_s19  ;;  %s8167_s25 = smov (!%p4375_p4), 0  }
 0x54d   : > { %s8169_s18 = smov (!%p4375_p4), 0  }
 0x550 LB: >> { %v3899_v17 = vld [vmem:[%s5183_s16] sm:$0xff]  ;;  %v3901_v24 = vld [vmem:[%s5183_s16 + $0x8] sm:$0xff]  ;;  %v3903_v60 = vld [vmem:[%s5183_s16 + $0x10] sm:$0xff]  ;;  %s3915_s13 = sadd.s32 1, %s5187_s25  ;;  %s3893_s18 = sadd.s32 1, %s5191_s18   ;;  %s5191_s18 = sphi %s8169_s18, %s3893_s18   ;;  %s5187_s25 = sphi %s8167_s25, %s8421_s25   ;;  %s5183_s16 = sphi %s8419_s16, %s3920_s16   ;;  %s5179_s9 = sphi %s8418_s9, %s8420_s9  }
 0x551   : >> { %3900 = vst [vmem:[%s5179_s9] sm:$0xff] %v3899_v17  ;;  %v3905_v9 = vld [vmem:[%s5183_s16 + $0x18] sm:$0xff]  ;;  %p3916_p8 = scmp.ge.s32.totalorder %s3915_s13, %s8158_s14  ;;  %v3907_v7 = vld [vmem:[%s5183_s16 + $0x20] sm:$0xff]  ;;  %v3909_v58 = vld [vmem:[%s5183_s16 + $0x28] sm:$0xff]  ;;  %p3892_p2 = scmp.ge.s32.totalorder %s3893_s18, %s8158_s14 }
 0x552   : >> { %3902 = vst [vmem:[%s5179_s9 + $0x8] sm:$0xff] %v3901_v24  ;;  %v3911_v15 = vld [vmem:[%s5183_s16 + $0x30] sm:$0xff]  ;;  %v3913_v11 = vld [vmem:[%s5183_s16 + $0x38] sm:$0xff] }
 0x553   : >> { %3904 = vst [vmem:[%s5179_s9 + $0x10] sm:$0xff] %v3903_v60  ;;  %s8440_s13 = smov (%p3916_p8, %s3915_s13), 0 }
 0x554   : >> { %3906 = vst [vmem:[%s5179_s9 + $0x18] sm:$0xff] %v3905_v9  ;;  %s4376_s20 = sshll.u32 %s8440_s13, 6  ;;  %s8421_s25 = smov %s8440_s13 }
 0x555   : >> { %3908 = vst [vmem:[%s5179_s9 + $0x20] sm:$0xff] %v3907_v7  ;;  %s3920_s16 = scalar_lea.vmem %s8026_s19, %s4376_s20 [#allocation8]   ;;  %s3921_s12 = scalar_lea.vmem %s8152_s21, %s4376_s20  }
 0x556   : >> { %3910 = vst [vmem:[%s5179_s9 + $0x28] sm:$0xff] %v3909_v58  ;;  %3895 = sbr.rel (!%p3892_p2) target bundleno = 1360 (0x550), region = 262 }
 0x557   : >> { %3912 = vst [vmem:[%s5179_s9 + $0x30] sm:$0xff] %v3911_v15 }
 0x558   : >> { %3914 = vst [vmem:[%s5179_s9 + $0x38] sm:$0xff] %v3913_v11  ;;  %s8420_s9 = smov %s3921_s12 }
 0x55b PF: > { %s8188_s22 = sand.u32 7, %s8438_s24   ;;  %s4396_s11 = sshll.u32 %s8158_s14, 6 }
 0x55c   : > { %s3926_s23 = scalar_lea.vmem %s8026_s19, %s4396_s11 [#allocation8]   ;;  %s3928_s27 = scalar_lea.vmem %s8152_s21, %s4396_s11  }
 0x55d   : > { %p4381_p7 = scmp.le.s32.totalorder %s8188_s22, 0 }
 0x55e   : > { %s5193_s26 = smov (!%p4381_p7), %s3928_s27   ;;  %s5197_s30 = smov (!%p4381_p7), %s3926_s23  }
 0x55f   : > { %4114 = sbr.rel (%p4381_p7) target bundleno = 1388 (0x56c), region = 267  ;;  %s5201_s4 = smov (!%p4381_p7), 0  }
 0x560   : > { %s5205_s17 = smov (!%p4381_p7), 0  }
 0x564 LB: >> { %v3938_v59 = vld [vmem:[%s5199_s30] sm:$0xff]  ;;  %s3940_s24 = sadd.s32 1, %s5203_s4  ;;  %s3932_s17 = sadd.s32 1, %s5207_s17   ;;  %s5207_s17 = sphi %s5205_s17, %s3932_s17   ;;  %s5203_s4 = sphi %s5201_s4, %s5202_s4   ;;  %s5199_s30 = sphi %s5197_s30, %s3945_s30   ;;  %s5195_s26 = sphi %s5193_s26, %s3946_s26  }
 0x565   : >> { %3939 = vst [vmem:[%s5195_s26] sm:$0xff] %v3938_v59  ;;  %p3941_p9 = scmp.ge.s32.totalorder %s3940_s24, %s8188_s22  ;;  %p3931_p12 = scmp.ge.s32.totalorder %s3932_s17, %s8188_s22 }
 0x567   : >> { %s8442_s24 = smov (%p3941_p9, %s3940_s24), 0  ;;  %3934 = sbr.rel (!%p3931_p12) target bundleno = 1380 (0x564), region = 273 }
 0x568   : >> { %s4382_s19 = sshll.u32 %s8442_s24, 3  ;;  %s5202_s4 = smov %s8442_s24  }
 0x569   : >> { %s3945_s30 = scalar_lea.vmem %s3926_s23, %s4382_s19 [#allocation8]   ;;  %s3946_s26 = scalar_lea.vmem %s3928_s27, %s4382_s19  }
 0x56c PF: > { %s8422_s30 = sld [smem:[#allocation12_spill]]  ;;  %s8424_s27 = smov %s5135_s28 }
 0x56d   : > { %s8423_s15 = sld [smem:[#allocation13_spill]]  ;;  %s8425_s28 = smov %s5139_s29 }
 0x572   : > { %p22_p13 = scmp.ge.s32.totalorder %s8422_s30, 4  }
 0x573   : > { %s8426_s29 = smov %s8423_s15 }
 0x574   :  { %24 = sbr.rel (!%p22_p13) target bundleno = 7 (0x7), region = 284 }
 0x579   :  { %3969 = vsyncpa [#allocation3], 1 }
 0x57a   :  { %3971 = vsyncpa [#allocation3 + $0x1], 1 }
 0x57b   :  { %3972 = vsyncpa [#allocation5], 1 }
 0x57c   :  { %3974 = vsyncpa [#allocation5 + $0x1], 1 }

</bundles_post_ra>
